<compile_context>
chip_gen: v7x
topology: tpu7x:2x2x1
jax: 0.10.0
libtpu: 0.0.40
codegen_flags: <defaults>
</compile_context>

<pallas_src>
import jax
import jax.numpy as jnp
from jax import lax
from jax.experimental import pallas as pl
from jax.experimental.pallas import tpu as pltpu


# ----------------------------------------------------------------------------
# Fused Pallas kernel factory: one (batch, row-strip) tile per grid step
# ----------------------------------------------------------------------------
def _make_bottleneck_kernel(th, W, Cin, Cmid, Cout, use_patches):
    """Build the fused kernel for fixed tile dims.

    Refs (per grid step):
      xm_ref: (1, th, W, Cin)   strip rows of x (also the residual identity)
      xt_ref: (1, 1,  W, Cin)   row above the strip (clamped -> replicates row 0)
      xb_ref: (1, 1,  W, Cin)   row below the strip (clamped -> replicates row H-1)
      w1_ref: (Cin, Cmid)       bf16 conv1 weight, bn1 scale folded
      w2_ref: (9*Cmid, Cmid)    bf16 conv2 weight (kh,kw,ci flattened), bn2 folded
      w3_ref: (Cmid, Cout)      bf16 conv3 weight, bn3 folded
      b*_ref: (1, C)            f32 folded BN biases
      o_ref : (1, th, W, Cout)
      scratch:
        a1p_ref:     (th+2, W+2, Cmid) bf16   padded conv1 activation strip
        patches_ref: (th*W, 9*Cmid)    bf16   im2col patches (only if use_patches)
    """

    def kernel(xm_ref, xt_ref, xb_ref,
               w1_ref, b1_ref, w2_ref, b2_ref, w3_ref, b3_ref,
               o_ref, *scratch):
        if use_patches:
            a1p_ref, patches_ref = scratch
        else:
            (a1p_ref,) = scratch

        # --- conv1x1 (bn1 folded) + bias + ReLU; bf16 MXU operands, f32 accumulate
        def conv1_rows(x_rows):                       # (r, W, Cin) -> (r, W, Cmid) bf16
            r = x_rows.shape[0]
            y = jnp.dot(x_rows.reshape(r * W, Cin).astype(jnp.bfloat16), w1_ref[...],
                        preferred_element_type=jnp.float32)
            y = jnp.maximum(y + b1_ref[...], 0.0)
            return y.reshape(r, W, Cmid).astype(jnp.bfloat16)

        # Write conv1 results straight into the padded scratch (no concat chain).
        # H-halo rows come from clamped BlockSpec fetches -> replicate pad along H
        # (pad commutes with the pointwise conv1).
        a1p_ref[0:1, 1:W + 1, :] = conv1_rows(xt_ref[0])
        a1p_ref[1:th + 1, 1:W + 1, :] = conv1_rows(xm_ref[0])
        a1p_ref[th + 1:th + 2, 1:W + 1, :] = conv1_rows(xb_ref[0])
        # Replicate pad along W: fill the two edge columns with small copies.
        a1p_ref[:, 0:1, :] = a1p_ref[:, 1:2, :]
        a1p_ref[:, W + 1:W + 2, :] = a1p_ref[:, W:W + 1, :]

        # --- 3x3 conv (VALID on the padded strip), bn2 folded + bias + ReLU
        if use_patches:
            # Cmid < 128: build one deep (K = 9*Cmid) matmul via an im2col scratch.
            for t in range(9):
                kh, kw = divmod(t, 3)
                patches_ref[:, t * Cmid:(t + 1) * Cmid] = (
                    a1p_ref[kh:kh + th, kw:kw + W, :].reshape(th * W, Cmid))
            a2 = jnp.dot(patches_ref[...], w2_ref[...],
                         preferred_element_type=jnp.float32)
        else:
            # Cmid >= 128: 9 accumulating lane-aligned matmuls, no patches buffer.
            a2 = jnp.zeros((th * W, Cmid), jnp.float32)
            for t in range(9):
                kh, kw = divmod(t, 3)
                tap = a1p_ref[kh:kh + th, kw:kw + W, :].reshape(th * W, Cmid)
                a2 = a2 + jnp.dot(tap, w2_ref[t * Cmid:(t + 1) * Cmid, :],
                                  preferred_element_type=jnp.float32)
        a2 = jnp.maximum(a2 + b2_ref[...], 0.0)           # (th*W, Cmid) f32

        # --- conv1x1 (bn3 folded) + residual add + ReLU (f32 epilogue)
        y = jnp.dot(a2.astype(jnp.bfloat16), w3_ref[...],
                    preferred_element_type=jnp.float32)
        y = y + b3_ref[...] + xm_ref[0].reshape(th * W, Cout).astype(jnp.float32)
        y = jnp.maximum(y, 0.0)
        o_ref[0] = y.reshape(th, W, Cout).astype(o_ref.dtype)

    return kernel


# ----------------------------------------------------------------------------
# Generation-aware strip-size selection
# ----------------------------------------------------------------------------
def _vmem_capacity_bytes():
    try:
        return int(pltpu.get_tpu_info().vmem_capacity_bytes)
    except Exception:
        return 64 << 20          # conservative (v7x-sized) fallback


def _choose_strip_rows(H, W, B, Cin, Cmid, Cout, x_bytes, budget_bytes,
                       use_patches, target_steps=4):
    """Largest divisor of H whose per-step VMEM footprint fits `budget_bytes`,
    splitting H only if the batch alone does not supply `target_steps` parallel
    grid steps (pipeline depth + v7x's two TensorCores)."""
    divisors = [t for t in range(H, 0, -1) if H % t == 0]

    def footprint(t):
        rows_h = t + 2
        weights = 2 * 2 * (Cin * Cmid + 9 * Cmid * Cmid + Cmid * Cout)   # bf16, dbl-buffered
        biases = 4 * (2 * Cmid + Cout)
        io = (2 * x_bytes * (t * W * Cin + 2 * W * Cin)                  # input strip + halos
              + 2 * x_bytes * (t * W * Cout))                            # output strip
        a1p = 2 * rows_h * (W + 2) * Cmid                                # bf16 scratch
        patches = (2 * t * W * 9 * Cmid) if use_patches else 0           # bf16 scratch
        acts = 4 * t * W * (Cmid + Cmid + Cout)                          # f32 conv1/a2/y temps
        return int(1.2 * (weights + biases + io + a1p + patches + acts))

    fitting = [t for t in divisors if footprint(t) <= budget_bytes] or [divisors[-1]]
    enough = [t for t in fitting if B * (H // t) >= target_steps]
    th = enough[0] if enough else fitting[0]
    return th, footprint(th)


# ----------------------------------------------------------------------------
# Fused forward (NHWC core + NCHW wrapper)
# ----------------------------------------------------------------------------
def bottleneck_forward_nhwc(x_nhwc, params):
    """x_nhwc: (B, H, W, Cin).  params: BN-folded bf16 weights + f32 biases."""
    w1, b1, w2, b2, w3, b3 = params
    B, H, W, Cin = x_nhwc.shape
    Cmid = w1.shape[1]
    Cout = w3.shape[1]
    if Cin != Cout:
        raise ValueError("identity residual requires inplanes == planes * expansion")

    x_bytes = jnp.dtype(x_nhwc.dtype).itemsize
    vmem_cap = _vmem_capacity_bytes()
    if vmem_cap >= (96 << 20):              # v5e / v6e: 128 MiB physical VMEM
        budget, base_limit = 24 << 20, 64 << 20
    else:                                   # v7x: 64 MiB physical VMEM
        budget, base_limit = 10 << 20, 32 << 20

    use_patches = Cmid < 128
    th, fp = _choose_strip_rows(H, W, B, Cin, Cmid, Cout, x_bytes, budget, use_patches)
    nstrips = H // th
    vmem_limit = int(min(vmem_cap, max(base_limit, 3 * fp)))

    def main_map(b, i):
        return (b, i, 0, 0)

    def top_map(b, i):          # row above the strip, clamped -> replicates row 0
        return (b, jnp.maximum(i * th - 1, 0), 0, 0)

    def bot_map(b, i):          # row below the strip, clamped -> replicates row H-1
        return (b, jnp.minimum(i * th + th, H - 1), 0, 0)

    const = lambda b, i: (0, 0)

    scratch_shapes = [pltpu.VMEM((th + 2, W + 2, Cmid), jnp.bfloat16)]
    if use_patches:
        scratch_shapes.append(pltpu.VMEM((th * W, 9 * Cmid), jnp.bfloat16))

    kernel = _make_bottleneck_kernel(th, W, Cin, Cmid, Cout, use_patches)

    return pl.pallas_call(
        kernel,
        out_shape=jax.ShapeDtypeStruct((B, H, W, Cout), x_nhwc.dtype),
        grid=(B, nstrips),
        in_specs=[
            pl.BlockSpec((1, th, W, Cin), main_map),
            pl.BlockSpec((1, 1, W, Cin), top_map),
            pl.BlockSpec((1, 1, W, Cin), bot_map),
            pl.BlockSpec((Cin, Cmid), const),
            pl.BlockSpec((1, Cmid), const),
            pl.BlockSpec((9 * Cmid, Cmid), const),
            pl.BlockSpec((1, Cmid), const),
            pl.BlockSpec((Cmid, Cout), const),
            pl.BlockSpec((1, Cout), const),
        ],
        out_specs=pl.BlockSpec((1, th, W, Cout), main_map),
        scratch_shapes=scratch_shapes,
        compiler_params=pltpu.CompilerParams(
            dimension_semantics=("parallel", "parallel"),
            vmem_limit_bytes=vmem_limit,
        ),
    )(x_nhwc, x_nhwc, x_nhwc, w1, b1, w2, b2, w3, b3)


def bottleneck_forward(x_nchw, params, stride=1):
    """NCHW wrapper for PyTorch parity.  The boundary transposes are XLA glue;
    keep the surrounding model channels-last and call bottleneck_forward_nhwc
    directly to avoid them entirely."""
    if stride != 1:
        raise NotImplementedError(
            "stride != 1 needs the downsample branch for the residual (not modeled)")
    x = jnp.transpose(x_nchw, (0, 2, 3, 1))              # NCHW -> NHWC
    out = bottleneck_forward_nhwc(x, params)
    return jnp.transpose(out, (0, 3, 1, 2))              # NHWC -> NCHW


# ----------------------------------------------------------------------------
# Parameter folding (BN inference scale folded into conv weights; weights bf16)
# ----------------------------------------------------------------------------
def fold_bottleneck_params(w1_oihw, bn1, w2_oihw, bn2, w3_oihw, bn3, eps=1e-5):
    def fold(g, be, m, v):
        s = g / jnp.sqrt(v + eps)
        return s, be - m * s

    s1, b1 = fold(*bn1)
    s2, b2 = fold(*bn2)
    s3, b3 = fold(*bn3)

    cmid = w1_oihw.shape[0]
    w1 = (w1_oihw[:, :, 0, 0].T * s1[None, :]).astype(jnp.bfloat16)          # (Cin, Cmid)
    w2 = (jnp.transpose(w2_oihw, (2, 3, 1, 0)) * s2[None, None, None, :])    # (kh,kw,ci,co)
    w2 = w2.reshape(9 * cmid, cmid).astype(jnp.bfloat16)                     # (kh,kw,ci) flat
    w3 = (w3_oihw[:, :, 0, 0].T * s3[None, :]).astype(jnp.bfloat16)          # (Cmid, Cout)
    return (w1, b1.reshape(1, -1).astype(jnp.float32),
            w2, b2.reshape(1, -1).astype(jnp.float32),
            w3, b3.reshape(1, -1).astype(jnp.float32))


# ----------------------------------------------------------------------------
# Pure-JAX reference (NCHW, lax.conv, f32 HIGHEST) for the correctness check
# ----------------------------------------------------------------------------
def bottleneck_reference(x, raw, stride=1):
    (w1o, g1, be1, m1, v1, w2o, g2, be2, m2, v2, w3o, g3, be3, m3, v3) = raw
    eps = 1e-5
    dn = ("NCHW", "OIHW", "NCHW")
    prec = lax.Precision.HIGHEST

    def bn(o, g, be, m, v):
        s = g / jnp.sqrt(v + eps)
        return o * s[None, :, None, None] + (be - m * s)[None, :, None, None]

    out = lax.conv_general_dilated(x, w1o, (1, 1), "VALID",
                                   dimension_numbers=dn, precision=prec)
    out = jnp.maximum(bn(out, g1, be1, m1, v1), 0.0)
    out = jnp.pad(out, ((0, 0), (0, 0), (1, 1), (1, 1)), mode="edge")
    out = lax.conv_general_dilated(out, w2o, (stride, stride), "VALID",
                                   dimension_numbers=dn, precision=prec)
    out = jnp.maximum(bn(out, g2, be2, m2, v2), 0.0)
    out = lax.conv_general_dilated(out, w3o, (1, 1), "VALID",
                                   dimension_numbers=dn, precision=prec)
    out = bn(out, g3, be3, m3, v3)
    return jnp.maximum(out + x, 0.0)


# ----------------------------------------------------------------------------
# Main
# ----------------------------------------------------------------------------
if __name__ == "__main__":
    # Small shapes consistent with the module: inplanes = planes * expansion (=4)
    # so the identity add works with downsample=None.  Cout=128 keeps the output
    # stores lane-dense.
    B, H, W = 2, 16, 16
    planes = 32
    inplanes = planes * 4          # 128
    width = planes                 # base_width=64, groups=1 -> width = planes
    cout = planes * 4              # 128
    stride = 1
    eps = 1e-5

    key = jax.random.PRNGKey(0)
    ks = jax.random.split(key, 8)

    x = jax.random.normal(ks[0], (B, inplanes, H, W), jnp.float32)

    # PyTorch-layout conv weights (O, I, kH, kW), deterministic synthetic init.
    w1_oihw = jax.random.normal(ks[1], (width, inplanes, 1, 1), jnp.float32) * 0.1
    w2_oihw = jax.random.normal(ks[2], (width, width, 3, 3), jnp.float32) * 0.1
    w3_oihw = jax.random.normal(ks[3], (cout, width, 1, 1), jnp.float32) * 0.1

    def bn_params(k, c):
        ka, kb, kc, kd = jax.random.split(k, 4)
        gamma = jax.random.uniform(ka, (c,), jnp.float32, 0.5, 1.5)
        beta = jax.random.normal(kb, (c,), jnp.float32) * 0.1
        mean = jax.random.normal(kc, (c,), jnp.float32) * 0.1
        var = jax.random.uniform(kd, (c,), jnp.float32, 0.5, 1.5)
        return gamma, beta, mean, var

    bn1 = bn_params(ks[4], width)
    bn2 = bn_params(ks[5], width)
    bn3 = bn_params(ks[6], cout)

    params = fold_bottleneck_params(w1_oihw, bn1, w2_oihw, bn2, w3_oihw, bn3, eps)

    out = bottleneck_forward(x, params, stride=stride)
    out = jax.block_until_ready(out)

    ref = bottleneck_reference(
        x, (w1_oihw, *bn1, w2_oihw, *bn2, w3_oihw, *bn3), stride=stride)
    ref = jax.block_until_ready(ref)

    assert out.shape == ref.shape == (B, cout, H, W)
    # bf16 MXU operands (kernel) vs f32 HIGHEST reference -> loosened tolerance.
    max_err = float(jnp.max(jnp.abs(out - ref)))
    assert jnp.allclose(out, ref, rtol=5e-2, atol=1e-1), f"max_err={max_err}"

    print("KERNEL_OK")
</pallas_src>

<mosaic_0001>
module attributes {stable_mosaic.version = 11 : i64} {
  func.func @kernel(%arg0: i32, %arg1: i32, %arg2: memref<1x8x16x128xf32, #tpu.memory_space<vmem>>, %arg3: memref<1x1x16x128xf32, #tpu.memory_space<vmem>>, %arg4: memref<1x1x16x128xf32, #tpu.memory_space<vmem>>, %arg5: memref<128x32xbf16, #tpu.memory_space<vmem>>, %arg6: memref<1x32xf32, #tpu.memory_space<vmem>>, %arg7: memref<288x32xbf16, #tpu.memory_space<vmem>>, %arg8: memref<1x32xf32, #tpu.memory_space<vmem>>, %arg9: memref<32x128xbf16, #tpu.memory_space<vmem>>, %arg10: memref<1x128xf32, #tpu.memory_space<vmem>>, %arg11: memref<1x8x16x128xf32, #tpu.memory_space<vmem>>, %arg12: memref<10x18x32xbf16, #tpu.memory_space<vmem>>, %arg13: memref<128x288xbf16, #tpu.memory_space<vmem>>) attributes {dimension_semantics = [#tpu.dimension_semantics<parallel>, #tpu.dimension_semantics<parallel>], iteration_bounds = array<i64: 2, 2>, scalar_prefetch = 0 : i64, scratch_operands = 2 : i64, tpu.core_type = #tpu.core_type<tc>, window_params = [{transform_indices = @transform_0, window_bounds = array<i64: 1, 8, 16, 128>}, {transform_indices = @transform_1, window_bounds = array<i64: 1, 1, 16, 128>}, {transform_indices = @transform_2, window_bounds = array<i64: 1, 1, 16, 128>}, {pipeline_mode = #tpu.pipeline_mode<synchronous>, transform_indices = @transform_3, window_bounds = array<i64: 128, 32>}, {pipeline_mode = #tpu.pipeline_mode<synchronous>, transform_indices = @transform_4, window_bounds = array<i64: 1, 32>}, {pipeline_mode = #tpu.pipeline_mode<synchronous>, transform_indices = @transform_5, window_bounds = array<i64: 288, 32>}, {pipeline_mode = #tpu.pipeline_mode<synchronous>, transform_indices = @transform_6, window_bounds = array<i64: 1, 32>}, {pipeline_mode = #tpu.pipeline_mode<synchronous>, transform_indices = @transform_7, window_bounds = array<i64: 32, 128>}, {pipeline_mode = #tpu.pipeline_mode<synchronous>, transform_indices = @transform_8, window_bounds = array<i64: 1, 128>}, {transform_indices = @transform_9, window_bounds = array<i64: 1, 8, 16, 128>}]} {
    %c0 = arith.constant 0 : index
    %c0_0 = arith.constant 0 : index
    %c0_1 = arith.constant 0 : index
    %c0_2 = arith.constant 0 : index
    %0 = vector.load %arg3[%c0, %c0_0, %c0_1, %c0_2] : memref<1x1x16x128xf32, #tpu.memory_space<vmem>>, vector<1x1x16x128xf32>
    %1 = vector.shape_cast %0 : vector<1x1x16x128xf32> to vector<1x16x128xf32>
    %2 = vector.shape_cast %1 : vector<1x16x128xf32> to vector<16x128xf32>
    %3 = arith.truncf %2 : vector<16x128xf32> to vector<16x128xbf16>
    %c0_3 = arith.constant 0 : index
    %c0_4 = arith.constant 0 : index
    %4 = vector.load %arg5[%c0_3, %c0_4] : memref<128x32xbf16, #tpu.memory_space<vmem>>, vector<128x32xbf16>
    %cst = arith.constant dense<0.000000e+00> : vector<16x32xf32>
    %5 = tpu.matmul %3, %4, %cst {dimension_numbers = #tpu.dot_dimension_numbers<[1], [0], [0], [1], [0, 0, 1, 1], [], []>} : vector<16x128xbf16>, vector<128x32xbf16>, vector<16x32xf32> -> vector<16x32xf32>
    %c0_5 = arith.constant 0 : index
    %c0_6 = arith.constant 0 : index
    %6 = vector.load %arg6[%c0_5, %c0_6] : memref<1x32xf32, #tpu.memory_space<vmem>>, vector<1x32xf32>
    %7 = vector.broadcast %6 : vector<1x32xf32> to vector<16x32xf32>
    %8 = arith.addf %5, %7 : vector<16x32xf32>
    %cst_7 = arith.constant 0.000000e+00 : f32
    %9 = vector.broadcast %cst_7 : f32 to vector<16x32xf32>
    %10 = arith.maximumf %8, %9 : vector<16x32xf32>
    %11 = vector.shape_cast %10 : vector<16x32xf32> to vector<1x16x32xf32>
    %12 = arith.truncf %11 : vector<1x16x32xf32> to vector<1x16x32xbf16>
    %c0_8 = arith.constant 0 : index
    %c1 = arith.constant 1 : index
    %c0_9 = arith.constant 0 : index
    %13 = vector.load %arg12[%c0_8, %c1, %c0_9] : memref<10x18x32xbf16, #tpu.memory_space<vmem>>, vector<1x16x32xbf16>
    tpu.vector_store %arg12[%c0_8, %c1, %c0_9], %12 {strides = array<i32>} : memref<10x18x32xbf16, #tpu.memory_space<vmem>>, vector<1x16x32xbf16>,
    %c0_10 = arith.constant 0 : index
    %c0_11 = arith.constant 0 : index
    %c0_12 = arith.constant 0 : index
    %c0_13 = arith.constant 0 : index
    %14 = vector.load %arg2[%c0_10, %c0_11, %c0_12, %c0_13] : memref<1x8x16x128xf32, #tpu.memory_space<vmem>>, vector<1x8x16x128xf32>
    %15 = vector.shape_cast %14 : vector<1x8x16x128xf32> to vector<8x16x128xf32>
    %16 = vector.shape_cast %15 : vector<8x16x128xf32> to vector<128x128xf32>
    %17 = arith.truncf %16 : vector<128x128xf32> to vector<128x128xbf16>
    %c0_14 = arith.constant 0 : index
    %c0_15 = arith.constant 0 : index
    %18 = vector.load %arg5[%c0_14, %c0_15] : memref<128x32xbf16, #tpu.memory_space<vmem>>, vector<128x32xbf16>
    %cst_16 = arith.constant dense<0.000000e+00> : vector<128x32xf32>
    %19 = tpu.matmul %17, %18, %cst_16 {dimension_numbers = #tpu.dot_dimension_numbers<[1], [0], [0], [1], [0, 0, 1, 1], [], []>} : vector<128x128xbf16>, vector<128x32xbf16>, vector<128x32xf32> -> vector<128x32xf32>
    %c0_17 = arith.constant 0 : index
    %c0_18 = arith.constant 0 : index
    %20 = vector.load %arg6[%c0_17, %c0_18] : memref<1x32xf32, #tpu.memory_space<vmem>>, vector<1x32xf32>
    %21 = vector.broadcast %20 : vector<1x32xf32> to vector<128x32xf32>
    %22 = arith.addf %19, %21 : vector<128x32xf32>
    %cst_19 = arith.constant 0.000000e+00 : f32
    %23 = vector.broadcast %cst_19 : f32 to vector<128x32xf32>
    %24 = arith.maximumf %22, %23 : vector<128x32xf32>
    %25 = vector.shape_cast %24 : vector<128x32xf32> to vector<8x16x32xf32>
    %26 = arith.truncf %25 : vector<8x16x32xf32> to vector<8x16x32xbf16>
    %c1_20 = arith.constant 1 : index
    %c1_21 = arith.constant 1 : index
    %c0_22 = arith.constant 0 : index
    %27 = vector.load %arg12[%c1_20, %c1_21, %c0_22] : memref<10x18x32xbf16, #tpu.memory_space<vmem>>, vector<8x16x32xbf16>
    tpu.vector_store %arg12[%c1_20, %c1_21, %c0_22], %26 {strides = array<i32>} : memref<10x18x32xbf16, #tpu.memory_space<vmem>>, vector<8x16x32xbf16>,
    %c0_23 = arith.constant 0 : index
    %c0_24 = arith.constant 0 : index
    %c0_25 = arith.constant 0 : index
    %c0_26 = arith.constant 0 : index
    %28 = vector.load %arg4[%c0_23, %c0_24, %c0_25, %c0_26] : memref<1x1x16x128xf32, #tpu.memory_space<vmem>>, vector<1x1x16x128xf32>
    %29 = vector.shape_cast %28 : vector<1x1x16x128xf32> to vector<1x16x128xf32>
    %30 = vector.shape_cast %29 : vector<1x16x128xf32> to vector<16x128xf32>
    %31 = arith.truncf %30 : vector<16x128xf32> to vector<16x128xbf16>
    %c0_27 = arith.constant 0 : index
    %c0_28 = arith.constant 0 : index
    %32 = vector.load %arg5[%c0_27, %c0_28] : memref<128x32xbf16, #tpu.memory_space<vmem>>, vector<128x32xbf16>
    %cst_29 = arith.constant dense<0.000000e+00> : vector<16x32xf32>
    %33 = tpu.matmul %31, %32, %cst_29 {dimension_numbers = #tpu.dot_dimension_numbers<[1], [0], [0], [1], [0, 0, 1, 1], [], []>} : vector<16x128xbf16>, vector<128x32xbf16>, vector<16x32xf32> -> vector<16x32xf32>
    %c0_30 = arith.constant 0 : index
    %c0_31 = arith.constant 0 : index
    %34 = vector.load %arg6[%c0_30, %c0_31] : memref<1x32xf32, #tpu.memory_space<vmem>>, vector<1x32xf32>
    %35 = vector.broadcast %34 : vector<1x32xf32> to vector<16x32xf32>
    %36 = arith.addf %33, %35 : vector<16x32xf32>
    %cst_32 = arith.constant 0.000000e+00 : f32
    %37 = vector.broadcast %cst_32 : f32 to vector<16x32xf32>
    %38 = arith.maximumf %36, %37 : vector<16x32xf32>
    %39 = vector.shape_cast %38 : vector<16x32xf32> to vector<1x16x32xf32>
    %40 = arith.truncf %39 : vector<1x16x32xf32> to vector<1x16x32xbf16>
    %c9 = arith.constant 9 : index
    %c1_33 = arith.constant 1 : index
    %c0_34 = arith.constant 0 : index
    %41 = vector.load %arg12[%c9, %c1_33, %c0_34] : memref<10x18x32xbf16, #tpu.memory_space<vmem>>, vector<1x16x32xbf16>
    tpu.vector_store %arg12[%c9, %c1_33, %c0_34], %40 {strides = array<i32>} : memref<10x18x32xbf16, #tpu.memory_space<vmem>>, vector<1x16x32xbf16>,
    %c0_35 = arith.constant 0 : index
    %c1_36 = arith.constant 1 : index
    %c0_37 = arith.constant 0 : index
    %42 = vector.load %arg12[%c0_35, %c1_36, %c0_37] : memref<10x18x32xbf16, #tpu.memory_space<vmem>>, vector<10x1x32xbf16>
    %c0_38 = arith.constant 0 : index
    %c0_39 = arith.constant 0 : index
    %c0_40 = arith.constant 0 : index
    %43 = vector.load %arg12[%c0_38, %c0_39, %c0_40] : memref<10x18x32xbf16, #tpu.memory_space<vmem>>, vector<10x1x32xbf16>
    tpu.vector_store %arg12[%c0_38, %c0_39, %c0_40], %42 {strides = array<i32>} : memref<10x18x32xbf16, #tpu.memory_space<vmem>>, vector<10x1x32xbf16>,
    %c0_41 = arith.constant 0 : index
    %c16 = arith.constant 16 : index
    %c0_42 = arith.constant 0 : index
    %44 = vector.load %arg12[%c0_41, %c16, %c0_42] : memref<10x18x32xbf16, #tpu.memory_space<vmem>>, vector<10x1x32xbf16>
    %c0_43 = arith.constant 0 : index
    %c17 = arith.constant 17 : index
    %c0_44 = arith.constant 0 : index
    %45 = vector.load %arg12[%c0_43, %c17, %c0_44] : memref<10x18x32xbf16, #tpu.memory_space<vmem>>, vector<10x1x32xbf16>
    tpu.vector_store %arg12[%c0_43, %c17, %c0_44], %44 {strides = array<i32>} : memref<10x18x32xbf16, #tpu.memory_space<vmem>>, vector<10x1x32xbf16>,
    %c0_45 = arith.constant 0 : index
    %c0_46 = arith.constant 0 : index
    %c0_47 = arith.constant 0 : index
    %46 = vector.load %arg12[%c0_45, %c0_46, %c0_47] : memref<10x18x32xbf16, #tpu.memory_space<vmem>>, vector<8x16x32xbf16>
    %47 = vector.shape_cast %46 : vector<8x16x32xbf16> to vector<128x32xbf16>
    %c0_48 = arith.constant 0 : index
    %c0_49 = arith.constant 0 : index
    %48 = vector.load %arg13[%c0_48, %c0_49] : memref<128x288xbf16, #tpu.memory_space<vmem>>, vector<128x32xbf16>
    tpu.vector_store %arg13[%c0_48, %c0_49], %47 {strides = array<i32>} : memref<128x288xbf16, #tpu.memory_space<vmem>>, vector<128x32xbf16>,
    %c0_50 = arith.constant 0 : index
    %c1_51 = arith.constant 1 : index
    %c0_52 = arith.constant 0 : index
    %49 = vector.load %arg12[%c0_50, %c1_51, %c0_52] : memref<10x18x32xbf16, #tpu.memory_space<vmem>>, vector<8x16x32xbf16>
    %50 = vector.shape_cast %49 : vector<8x16x32xbf16> to vector<128x32xbf16>
    %c0_53 = arith.constant 0 : index
    %c32 = arith.constant 32 : index
    %51 = vector.load %arg13[%c0_53, %c32] : memref<128x288xbf16, #tpu.memory_space<vmem>>, vector<128x32xbf16>
    tpu.vector_store %arg13[%c0_53, %c32], %50 {strides = array<i32>} : memref<128x288xbf16, #tpu.memory_space<vmem>>, vector<128x32xbf16>,
    %c0_54 = arith.constant 0 : index
    %c2 = arith.constant 2 : index
    %c0_55 = arith.constant 0 : index
    %52 = vector.load %arg12[%c0_54, %c2, %c0_55] : memref<10x18x32xbf16, #tpu.memory_space<vmem>>, vector<8x16x32xbf16>
    %53 = vector.shape_cast %52 : vector<8x16x32xbf16> to vector<128x32xbf16>
    %c0_56 = arith.constant 0 : index
    %c64 = arith.constant 64 : index
    %54 = vector.load %arg13[%c0_56, %c64] : memref<128x288xbf16, #tpu.memory_space<vmem>>, vector<128x32xbf16>
    tpu.vector_store %arg13[%c0_56, %c64], %53 {strides = array<i32>} : memref<128x288xbf16, #tpu.memory_space<vmem>>, vector<128x32xbf16>,
    %c1_57 = arith.constant 1 : index
    %c0_58 = arith.constant 0 : index
    %c0_59 = arith.constant 0 : index
    %55 = vector.load %arg12[%c1_57, %c0_58, %c0_59] : memref<10x18x32xbf16, #tpu.memory_space<vmem>>, vector<8x16x32xbf16>
    %56 = vector.shape_cast %55 : vector<8x16x32xbf16> to vector<128x32xbf16>
    %c0_60 = arith.constant 0 : index
    %c96 = arith.constant 96 : index
    %57 = vector.load %arg13[%c0_60, %c96] : memref<128x288xbf16, #tpu.memory_space<vmem>>, vector<128x32xbf16>
    tpu.vector_store %arg13[%c0_60, %c96], %56 {strides = array<i32>} : memref<128x288xbf16, #tpu.memory_space<vmem>>, vector<128x32xbf16>,
    %c1_61 = arith.constant 1 : index
    %c1_62 = arith.constant 1 : index
    %c0_63 = arith.constant 0 : index
    %58 = vector.load %arg12[%c1_61, %c1_62, %c0_63] : memref<10x18x32xbf16, #tpu.memory_space<vmem>>, vector<8x16x32xbf16>
    %59 = vector.shape_cast %58 : vector<8x16x32xbf16> to vector<128x32xbf16>
    %c0_64 = arith.constant 0 : index
    %c128 = arith.constant 128 : index
    %60 = vector.load %arg13[%c0_64, %c128] : memref<128x288xbf16, #tpu.memory_space<vmem>>, vector<128x32xbf16>
    tpu.vector_store %arg13[%c0_64, %c128], %59 {strides = array<i32>} : memref<128x288xbf16, #tpu.memory_space<vmem>>, vector<128x32xbf16>,
    %c1_65 = arith.constant 1 : index
    %c2_66 = arith.constant 2 : index
    %c0_67 = arith.constant 0 : index
    %61 = vector.load %arg12[%c1_65, %c2_66, %c0_67] : memref<10x18x32xbf16, #tpu.memory_space<vmem>>, vector<8x16x32xbf16>
    %62 = vector.shape_cast %61 : vector<8x16x32xbf16> to vector<128x32xbf16>
    %c0_68 = arith.constant 0 : index
    %c160 = arith.constant 160 : index
    %63 = vector.load %arg13[%c0_68, %c160] : memref<128x288xbf16, #tpu.memory_space<vmem>>, vector<128x32xbf16>
    tpu.vector_store %arg13[%c0_68, %c160], %62 {strides = array<i32>} : memref<128x288xbf16, #tpu.memory_space<vmem>>, vector<128x32xbf16>,
    %c2_69 = arith.constant 2 : index
    %c0_70 = arith.constant 0 : index
    %c0_71 = arith.constant 0 : index
    %64 = vector.load %arg12[%c2_69, %c0_70, %c0_71] : memref<10x18x32xbf16, #tpu.memory_space<vmem>>, vector<8x16x32xbf16>
    %65 = vector.shape_cast %64 : vector<8x16x32xbf16> to vector<128x32xbf16>
    %c0_72 = arith.constant 0 : index
    %c192 = arith.constant 192 : index
    %66 = vector.load %arg13[%c0_72, %c192] : memref<128x288xbf16, #tpu.memory_space<vmem>>, vector<128x32xbf16>
    tpu.vector_store %arg13[%c0_72, %c192], %65 {strides = array<i32>} : memref<128x288xbf16, #tpu.memory_space<vmem>>, vector<128x32xbf16>,
    %c2_73 = arith.constant 2 : index
    %c1_74 = arith.constant 1 : index
    %c0_75 = arith.constant 0 : index
    %67 = vector.load %arg12[%c2_73, %c1_74, %c0_75] : memref<10x18x32xbf16, #tpu.memory_space<vmem>>, vector<8x16x32xbf16>
    %68 = vector.shape_cast %67 : vector<8x16x32xbf16> to vector<128x32xbf16>
    %c0_76 = arith.constant 0 : index
    %c224 = arith.constant 224 : index
    %69 = vector.load %arg13[%c0_76, %c224] : memref<128x288xbf16, #tpu.memory_space<vmem>>, vector<128x32xbf16>
    tpu.vector_store %arg13[%c0_76, %c224], %68 {strides = array<i32>} : memref<128x288xbf16, #tpu.memory_space<vmem>>, vector<128x32xbf16>,
    %c2_77 = arith.constant 2 : index
    %c2_78 = arith.constant 2 : index
    %c0_79 = arith.constant 0 : index
    %70 = vector.load %arg12[%c2_77, %c2_78, %c0_79] : memref<10x18x32xbf16, #tpu.memory_space<vmem>>, vector<8x16x32xbf16>
    %71 = vector.shape_cast %70 : vector<8x16x32xbf16> to vector<128x32xbf16>
    %c0_80 = arith.constant 0 : index
    %c256 = arith.constant 256 : index
    %72 = vector.load %arg13[%c0_80, %c256] : memref<128x288xbf16, #tpu.memory_space<vmem>>, vector<128x32xbf16>
    tpu.vector_store %arg13[%c0_80, %c256], %71 {strides = array<i32>} : memref<128x288xbf16, #tpu.memory_space<vmem>>, vector<128x32xbf16>,
    %c0_81 = arith.constant 0 : index
    %c0_82 = arith.constant 0 : index
    %73 = vector.load %arg13[%c0_81, %c0_82] : memref<128x288xbf16, #tpu.memory_space<vmem>>, vector<128x288xbf16>
    %c0_83 = arith.constant 0 : index
    %c0_84 = arith.constant 0 : index
    %74 = vector.load %arg7[%c0_83, %c0_84] : memref<288x32xbf16, #tpu.memory_space<vmem>>, vector<288x32xbf16>
    %cst_85 = arith.constant dense<0.000000e+00> : vector<128x32xf32>
    %75 = tpu.matmul %73, %74, %cst_85 {dimension_numbers = #tpu.dot_dimension_numbers<[1], [0], [0], [1], [0, 0, 1, 1], [], []>} : vector<128x288xbf16>, vector<288x32xbf16>, vector<128x32xf32> -> vector<128x32xf32>
    %c0_86 = arith.constant 0 : index
    %c0_87 = arith.constant 0 : index
    %76 = vector.load %arg8[%c0_86, %c0_87] : memref<1x32xf32, #tpu.memory_space<vmem>>, vector<1x32xf32>
    %77 = vector.broadcast %76 : vector<1x32xf32> to vector<128x32xf32>
    %78 = arith.addf %75, %77 : vector<128x32xf32>
    %cst_88 = arith.constant 0.000000e+00 : f32
    %79 = vector.broadcast %cst_88 : f32 to vector<128x32xf32>
    %80 = arith.maximumf %78, %79 : vector<128x32xf32>
    %81 = arith.truncf %80 : vector<128x32xf32> to vector<128x32xbf16>
    %c0_89 = arith.constant 0 : index
    %c0_90 = arith.constant 0 : index
    %82 = vector.load %arg9[%c0_89, %c0_90] : memref<32x128xbf16, #tpu.memory_space<vmem>>, vector<32x128xbf16>
    %cst_91 = arith.constant dense<0.000000e+00> : vector<128x128xf32>
    %83 = tpu.matmul %81, %82, %cst_91 {dimension_numbers = #tpu.dot_dimension_numbers<[1], [0], [0], [1], [0, 0, 1, 1], [], []>} : vector<128x32xbf16>, vector<32x128xbf16>, vector<128x128xf32> -> vector<128x128xf32>
    %c0_92 = arith.constant 0 : index
    %c0_93 = arith.constant 0 : index
    %84 = vector.load %arg10[%c0_92, %c0_93] : memref<1x128xf32, #tpu.memory_space<vmem>>, vector<1x128xf32>
    %85 = vector.broadcast %84 : vector<1x128xf32> to vector<128x128xf32>
    %86 = arith.addf %83, %85 : vector<128x128xf32>
    %c0_94 = arith.constant 0 : index
    %c0_95 = arith.constant 0 : index
    %c0_96 = arith.constant 0 : index
    %c0_97 = arith.constant 0 : index
    %87 = vector.load %arg2[%c0_94, %c0_95, %c0_96, %c0_97] : memref<1x8x16x128xf32, #tpu.memory_space<vmem>>, vector<1x8x16x128xf32>
    %88 = vector.shape_cast %87 : vector<1x8x16x128xf32> to vector<8x16x128xf32>
    %89 = vector.shape_cast %88 : vector<8x16x128xf32> to vector<128x128xf32>
    %90 = arith.addf %86, %89 : vector<128x128xf32>
    %cst_98 = arith.constant 0.000000e+00 : f32
    %91 = vector.broadcast %cst_98 : f32 to vector<128x128xf32>
    %92 = arith.maximumf %90, %91 : vector<128x128xf32>
    %93 = vector.shape_cast %92 : vector<128x128xf32> to vector<8x16x128xf32>
    %c0_99 = arith.constant 0 : index
    %c0_100 = arith.constant 0 : index
    %c0_101 = arith.constant 0 : index
    %c0_102 = arith.constant 0 : index
    %94 = vector.load %arg11[%c0_99, %c0_100, %c0_101, %c0_102] : memref<1x8x16x128xf32, #tpu.memory_space<vmem>>, vector<1x8x16x128xf32>
    %95 = vector.shape_cast %94 : vector<1x8x16x128xf32> to vector<8x16x128xf32>
    %96 = vector.shape_cast %93 : vector<8x16x128xf32> to vector<1x8x16x128xf32>
    tpu.vector_store %arg11[%c0_99, %c0_100, %c0_101, %c0_102], %96 {strides = array<i32>} : memref<1x8x16x128xf32, #tpu.memory_space<vmem>>, vector<1x8x16x128xf32>,
    return
  }
  func.func @transform_0(%arg0: i32, %arg1: i32) -> (i32, i32, i32, i32) {
    %c0_i32 = arith.constant 0 : i32
    %c0_i32_0 = arith.constant 0 : i32
    %c0_i32_1 = arith.constant 0 : i32
    return %arg0, %arg1, %c0_i32, %c0_i32_0 : i32, i32, i32, i32
  }
  func.func @transform_1(%arg0: i32, %arg1: i32) -> (i32, i32, i32, i32) {
    %c8_i32 = arith.constant 8 : i32
    %0 = arith.muli %arg1, %c8_i32 : i32
    %c1_i32 = arith.constant 1 : i32
    %1 = arith.subi %0, %c1_i32 : i32
    %c0_i32 = arith.constant 0 : i32
    %2 = arith.maxsi %1, %c0_i32 : i32
    %c0_i32_0 = arith.constant 0 : i32
    %c0_i32_1 = arith.constant 0 : i32
    %c0_i32_2 = arith.constant 0 : i32
    return %arg0, %2, %c0_i32_0, %c0_i32_1 : i32, i32, i32, i32
  }
  func.func @transform_2(%arg0: i32, %arg1: i32) -> (i32, i32, i32, i32) {
    %c8_i32 = arith.constant 8 : i32
    %0 = arith.muli %arg1, %c8_i32 : i32
    %c8_i32_0 = arith.constant 8 : i32
    %1 = arith.addi %0, %c8_i32_0 : i32
    %c15_i32 = arith.constant 15 : i32
    %2 = arith.minsi %1, %c15_i32 : i32
    %c0_i32 = arith.constant 0 : i32
    %c0_i32_1 = arith.constant 0 : i32
    %c0_i32_2 = arith.constant 0 : i32
    return %arg0, %2, %c0_i32, %c0_i32_1 : i32, i32, i32, i32
  }
  func.func @transform_3(%arg0: i32, %arg1: i32) -> (i32, i32) {
    %c0_i32 = arith.constant 0 : i32
    %c0_i32_0 = arith.constant 0 : i32
    %c0_i32_1 = arith.constant 0 : i32
    return %c0_i32, %c0_i32_0 : i32, i32
  }
  func.func @transform_4(%arg0: i32, %arg1: i32) -> (i32, i32) {
    %c0_i32 = arith.constant 0 : i32
    %c0_i32_0 = arith.constant 0 : i32
    %c0_i32_1 = arith.constant 0 : i32
    return %c0_i32, %c0_i32_0 : i32, i32
  }
  func.func @transform_5(%arg0: i32, %arg1: i32) -> (i32, i32) {
    %c0_i32 = arith.constant 0 : i32
    %c0_i32_0 = arith.constant 0 : i32
    %c0_i32_1 = arith.constant 0 : i32
    return %c0_i32, %c0_i32_0 : i32, i32
  }
  func.func @transform_6(%arg0: i32, %arg1: i32) -> (i32, i32) {
    %c0_i32 = arith.constant 0 : i32
    %c0_i32_0 = arith.constant 0 : i32
    %c0_i32_1 = arith.constant 0 : i32
    return %c0_i32, %c0_i32_0 : i32, i32
  }
  func.func @transform_7(%arg0: i32, %arg1: i32) -> (i32, i32) {
    %c0_i32 = arith.constant 0 : i32
    %c0_i32_0 = arith.constant 0 : i32
    %c0_i32_1 = arith.constant 0 : i32
    return %c0_i32, %c0_i32_0 : i32, i32
  }
  func.func @transform_8(%arg0: i32, %arg1: i32) -> (i32, i32) {
    %c0_i32 = arith.constant 0 : i32
    %c0_i32_0 = arith.constant 0 : i32
    %c0_i32_1 = arith.constant 0 : i32
    return %c0_i32, %c0_i32_0 : i32, i32
  }
  func.func @transform_9(%arg0: i32, %arg1: i32) -> (i32, i32, i32, i32) {
    %c0_i32 = arith.constant 0 : i32
    %c0_i32_0 = arith.constant 0 : i32
    %c0_i32_1 = arith.constant 0 : i32
    return %arg0, %arg1, %c0_i32, %c0_i32_0 : i32, i32, i32, i32
  }
}

</mosaic_0001>

<bundles_post_ra>
// kernel: tpu_custom_call.1
= control target key start
LH: loop header
LB: loop body
LE: loop exit
PB: predicated region body
PF: predicated region fallthrough
CT: control target
= control target key end

     0   :  { %s6211_s0 = inlined_call_operand.hbm [shape: f32[2,16,16,128], index: 0, kind: input, shape index: {}]   ;;  %s6212_s1 = inlined_call_operand.hbm [shape: f32[2,16,16,128], index: 1, kind: input, shape index: {}]   ;;  %s6213_s2 = inlined_call_operand.hbm [shape: f32[2,16,16,128], index: 2, kind: input, shape index: {}]   ;;  %s6214_s3 = inlined_call_operand.vmem [shape: bf16[128,32], index: 3, kind: input, shape index: {}]   ;;  %s6215_s4 = inlined_call_operand.vmem [shape: f32[1,32], index: 4, kind: input, shape index: {}]   ;;  %s6216_s5 = inlined_call_operand.vmem [shape: bf16[288,32], index: 5, kind: input, shape index: {}]   ;;  %s6217_s6 = inlined_call_operand.vmem [shape: f32[1,32], index: 6, kind: input, shape index: {}]   ;;  %s6218_s7 = inlined_call_operand.vmem [shape: bf16[32,128], index: 7, kind: input, shape index: {}]   ;;  %s6219_s8 = inlined_call_operand.vmem [shape: f32[1,128], index: 8, kind: input, shape index: {}]   ;;  %s6220_s9 = inlined_call_operand.hbm [shape: f32[2,16,16,128], index: 9, kind: output, shape index: {}]  }
   0x1   :  { %6247 = sst [smem:[#allocation27_spill]] %s6211_s0 }
   0x2   :  { %6248 = sst [smem:[#allocation28_spill]] %s6212_s1 }
   0x3   :  { %6249 = sst [smem:[#allocation29_spill]] %s6213_s2 }
   0x4   :  { %6250 = sst [smem:[#allocation30_spill]] %s6214_s3 }
   0x5   :  { %6251 = sst [smem:[#allocation31_spill]] %s6215_s4 }
   0x6   :  { %6252 = sst [smem:[#allocation32_spill]] %s6216_s5 }
   0x7   :  { %6253 = sst [smem:[#allocation33_spill]] %s6217_s6 }
   0x8   :  { %6254 = sst [smem:[#allocation34_spill]] %s6218_s7 }
   0x9   :  { %6255 = sst [smem:[#allocation35_spill]] %s6219_s8 }
   0xa   :  { %6256 = sst [smem:[#allocation36_spill]] %s6220_s9 }
   0xb   :  { %14 = vsyncpa [#allocation5], 0 }
   0xc   :  { %16 = vsyncpa [#allocation5 + $0x1], 0 }
   0xd   :  { %17 = vsyncpa [#allocation8], 0 }
   0xe   :  { %19 = vsyncpa [#allocation8 + $0x1], 0 }
   0xf   :  { %20 = vsyncpa [#allocation6], 0 }
  0x10   :  { %22 = vsyncpa [#allocation6 + $0x1], 0  ;;  %s4759_s30 = smov 0   ;;  %s4761_s10 = smov 0  }
  0x11   :  { %s4763_s11 = smov 0   ;;  %s4765_s12 = smov 0  }
  0x12   :  { %s4767_s13 = smov 0   ;;  %s4769_s14 = smov 0  }
  0x13   :  { %s4771_s15 = smov 0   ;;  %s4773_s16 = smov 0  }
  0x14   :  { %s4775_s17 = smov 0   ;;  %s4777_s18 = smov 0  }
  0x15   :  { %s4779_s19 = smov 0   ;;  %s4781_s20 = smov 0  }
  0x16   :  { %s4783_s21 = smov 0   ;;  %s4785_s22 = smov 0  }
  0x17 LB: > { %6257 = sst [smem:[#allocation15_spill]] %s4658_s13  ;;  %s4830_s23 = sadd.s32 4294967295, %s4694_s22   ;;  %s4694_s22 = sphi %s4785_s22, %s28_s22   ;;  %s4690_s21 = sphi %s4783_s21, %s6337_s21   ;;  %s4686_s20 = sphi %s4781_s20, %s6336_s20   ;;  %s4682_s19 = sphi %s4779_s19, %s6335_s19   ;;  %s4678_s18 = sphi %s4777_s18, %s6345_s18   ;;  %s4674_s17 = sphi %s4775_s17, %s6333_s17   ;;  %s4670_s16 = sphi %s4773_s16, %s6344_s16   ;;  %s4666_s15 = sphi %s4771_s15, %s6343_s15   ;;  %s4662_s14 = sphi %s4769_s14, %s6342_s14   ;;  %s4658_s13 = sphi %s4767_s13, %s6341_s13   ;;  %s4654_s12 = sphi %s4765_s12, %s6330_s12   ;;  %s4650_s11 = sphi %s4763_s11, %s6340_s11   ;;  %s4646_s10 = sphi %s4761_s10, %s6339_s10   ;;  %s4642_s30 = sphi %s4759_s30, %s6338_s30  }
  0x18   : > { %6258 = sst [smem:[#allocation16_spill]] %s4674_s17  ;;  %s37_s24 = sadd.s32 1, %s4686_s20 }
  0x19   : > { %6259 = sst [smem:[#allocation17_spill]] %s4678_s18  ;;  %p38_p0 = scmp.ge.s32.totalorder %s37_s24, 2 }
  0x1a   : > { %6260 = sst [smem:[#allocation18_spill]] %s4682_s19  ;;  %s40_s25 = sadd.s32 1, %s4690_s21 }
  0x1b   : > { %6261 = sst [smem:[#allocation19_spill]] %s4686_s20  ;;  %p6235_p1 = scmp.eq.s32.totalorder %s4694_s22, 0 }
  0x1c   : > { %6262 = sst [smem:[#allocation20_spill]] %s4690_s21  ;;  %p6234_p2 = scmp.eq.s32.totalorder %s4830_s23, 0 }
  0x1d   : > { %s6347_s24 = smov (%p38_p0, %s37_s24), 0  ;;  %s6349_s25 = smov (!%p38_p0, %s40_s25), %s4690_s21 }
  0x1e   : > { %6263 = sst [smem:[#allocation21_spill]] %s6347_s24  ;;  %s45_s26 = ssub.s32 %s4686_s20, %s6347_s24 }
  0x1f   : > { %s3758_s27 = sshll.u32 %s4686_s20, 3  ;;  %p42_p3 = scmp.ge.s32.totalorder %s6349_s25, 2 }
  0x20   : > { %s3759_s28 = sadd.s32 4294967295, %s3758_s27  ;;  %s3760_s29 = sshll.u32 %s6347_s24, 3 }
  0x21   : > { %p74_p4 = scmp.gt.s32.totalorder %s3759_s28, 0  ;;  %s6351_s25 = smov (%p42_p3, %s6349_s25), 0 }
  0x22   : > { %6264 = sst [smem:[#allocation22_spill]] %s6351_s25  ;;  %s4847_s9 = ssub.s32 %s4690_s21, %s6351_s25 }
  0x23   : > { %s6353_s28 = smov (!%p74_p4, %s3759_s28), 0  ;;  %6265 = sst [smem:[#allocation23_spill]] %s4847_s9 }
  0x24   : > { %s3761_s19 = sadd.s32 4294967295, %s3760_s29  ;;  %s4850_s18 = sor.u32 %s45_s26, %s4847_s9 }
  0x25   : > { %p78_p5 = scmp.gt.s32.totalorder %s3761_s19, 0  ;;  %s85_s8 = sadd.s32 1, %s4662_s14 }
  0x26   : > { %p92_p7 = scmp.ne.s32.totalorder %s4662_s14, %s4658_s13  ;;  %p98_p8 = scmp.ne.s32.totalorder %s4658_s13, %s4654_s12 }
  0x27   : > { %s6355_s19 = smov (!%p78_p5, %s3761_s19), 0  ;;  %s4858_s25 = sadd.s32 8, %s3758_s27 }
  0x28   : > { %s81_s24 = ssub.s32 %s6353_s28, %s6355_s19  ;;  %p4863_p9 = por %p92_p7, %p6235_p1 }
  0x29   : > { %s82_s6 = sor.u32 %s81_s24, %s4847_s9  ;;  %p4869_p11 = por %p98_p8, %p6234_p2 }
  0x2a   : > { %p83_p10 = scmp.eq.s32.totalorder %s82_s6, 0  ;;  %s4874_s12 = sadd.s32 8, %s3760_s29 }
  0x2b   : > { %s6267_s7 = scalar_select %p4869_p11, 1, 0 }
  0x2c   : > { %s4877_s19 = scalar_select %p83_p10, %s4662_s14, %s85_s8  }
  0x2d   : > { %6268 = sst [smem:[#allocation24_spill]] %s6267_s7  ;;  %p6233_p0 = scmp.lt.s32.totalorder %s4694_s22, 4 }
  0x2e   : > { %6269 = sst [smem:[#allocation25_spill]] %s4877_s19  ;;  %s4882_s24 = sshll.u32 %s4690_s21, 5 }
  0x2f   : > { %s354_s6 = sand.u32 1, %s4694_s22   ;;  %s356_s27 = sand.u32 1, %s4662_s14  }
  0x30   : > { %s3771_s4 = sshll.u32 %s356_s27, 4  ;;  %s3774_s5 = sshll.u32 %s6353_s28, 1 }
  0x31   : > { %s368_s3 = sadd.s32 %s3774_s5, %s4882_s24  ;;  %s358_s7 = scalar_lea.vmem [#allocation7], %s3771_s4 }
  0x32   : > { %s371_s13 = sshll.u32 %s358_s7, 4  ;;  %s3776_s2 = sshll.u32 %s368_s3, 7  ;;  %s4887_s13 = int_to_ptr.vmem [resolvable:$true] %s371_s13 }
  0x33   : > { %s6270_s1 = sld [smem:[#allocation28_spill]]  ;;  %p4898_p3 = pnand %p6233_p0, %p4863_p9 }
  0x34   : > { %s4904_s3 = scalar_lea.sflag [#allocation8], %s354_s6 }
  0x35   : > { %p4452_p8 = pneg %p4898_p3 }
  0x39   : > { %s4892_s8 = scalar_lea.hbm %s6270_s1, %s3776_s2  ;;  %s4455_s7 = scalar_lea.hbm %s6270_s1, 8192 }
  0x3a   : > { %s4450_s4 = scalar_lea.hbm %s4892_s8, 256  ;;  %p4456_p9 = scmp.lt.u32.totalorder %s4892_s8, %s6270_s1 }
  0x3b   : > { %p4451_p7 = scmp.ne.s32.totalorder %s4892_s8, %s4450_s4  ;;  %p4457_p12 = scmp.lt.u32.totalorder %s4455_s7, %s4450_s4 }
  0x3c   : > { %p4459_p2 = scmp.lt.u32.totalorder %s4450_s4, %s4892_s8 }
  0x3d   : > { %p4453_p10 = pnand %p4452_p8, %p4451_p7  ;;  %p4458_p0 = por %p4457_p12, %p4456_p9 }
  0x3f   : > { %p4454_p13 = pneg %p4453_p10  ;;  %p4460_p1 = por %p4459_p2, %p4458_p0 }
  0x41   : > { %p4461_p6 = pnand %p4460_p1, %p4454_p13 }
  0x43   : > { %4464 = shalt.err (!%p4461_p6)
}
  0x44   : > { %s4465_s26 = scalar_lea.vmem %s4887_s13, 256  ;;  %s4696_s6 = smov [#allocation7]  }
  0x45   : > { %p4466_p7 = scmp.ne.s32.totalorder %s4887_s13, %s4465_s26  ;;  %s4470_s29 = sshll.u32 %s4696_s6, 4  ;;  %s4471_s29 = int_to_ptr.vmem [resolvable:$false] %s4470_s29 }
  0x46   : > { %s4472_s2 = scalar_lea.vmem %s4471_s29, 512  ;;  %p4473_p5 = scmp.lt.s32.totalorder %s4887_s13, %s4471_s29 }
  0x47   : > { %p4468_p10 = pnand %p4466_p7, %p4452_p8  ;;  %p4474_p12 = scmp.lt.s32.totalorder %s4472_s2, %s4465_s26 }
  0x49   : > { %p4469_p4 = pneg %p4468_p10  ;;  %p4475_p9 = por %p4474_p12, %p4473_p5 }
  0x4b   : > { %p4476_p2 = pnand %p4475_p9, %p4469_p4 }
  0x4d   : > { %4479 = shalt.err (!%p4476_p2)
}
  0x4e   : > { %s6236_s4 = smov 128   ;;  %s6238_s5 = smov 8  }
  0x4f   : > { %4251 = dma.hbm_to_vmem [thread:$0]  (!%p4898_p3), %s4892_s8, 256, %s4887_s13, %s4904_s3, %s6236_s4, %s6236_s4, %s6238_s5  }
  0x50   : > { %p6272_p1 = scmp.lt.s32.totalorder %s4694_s22, 5  ;;  %p6273_p6 = scmp.ge.s32.totalorder %s4694_s22, 1 }
  0x51   : > { %s3757_s9 = sadd.s32 4294967294, %s4694_s22   ;;  %s49_s28 = sadd.s32 1, %s4674_s17 }
  0x52   : > { %p4939_p13 = pnand %p6273_p6, %p6272_p1  ;;  %p6275_p0 = scmp.eq.s32.totalorder %s4850_s18, 0 }
  0x53   : > { %p56_p4 = scmp.ne.s32.totalorder %s4674_s17, %s4670_s16  ;;  %p62_p5 = scmp.ne.s32.totalorder %s4670_s16, %s4666_s15 }
  0x54   : > { %s4948_s26 = scalar_select %p6275_p0, %s4674_s17, %s49_s28  }
  0x55   : > { %p286_p8 = scmp.eq.s32.totalorder %s4830_s23, 3  ;;  %p292_p7 = scmp.eq.s32.totalorder %s3757_s9, 3 }
  0x56   : > { %6276 = sst [smem:[#allocation26_spill]] %s4948_s26  ;;  %p6277_p10 = scmp.eq.s32.totalorder %s4694_s22, 0 }
  0x57   : > { %p6279_p3 = scmp.eq.s32.totalorder %s4830_s23, 0  ;;  %p4967_p2 = por %p286_p8, %p56_p4 }
  0x58   : > { %p4957_p12 = por %p6277_p10, %p56_p4  ;;  %p4971_p1 = por %p292_p7, %p62_p5 }
  0x59   : > { %p4963_p9 = por %p6279_p3, %p62_p5  ;;  %s330_s6 = sand.u32 1, %s4674_s17  }
  0x5a   : > { %s6281_s18 = scalar_select %p4967_p2, 1, 0 }
  0x5b   : > { %s6280_s8 = scalar_select %p4963_p9, 1, 0 }
  0x5c   : > { %s6282_s27 = scalar_select %p4971_p1, 1, 0 }
  0x5d   : > { %s3985_s29 = sshll.u32 %s4686_s20, 4  ;;  %s3766_s2 = sshll.u32 %s330_s6, 7 }
  0x5e   : > { %s341_s9 = sadd.s32 %s3985_s29, %s4882_s24  ;;  %s334_s4 = scalar_lea.vmem [#allocation4], %s3766_s2 }
  0x5f   : > { %s3770_s28 = sshll.u32 %s341_s9, 7  ;;  %s344_s5 = sshll.u32 %s334_s4, 4  ;;  %s4983_s5 = int_to_ptr.vmem [resolvable:$true] %s344_s5 }
  0x60   : > { %s6283_s0 = sld [smem:[#allocation27_spill]]  ;;  %p6284_p6 = scmp.lt.s32.totalorder %s4694_s22, 4 }
  0x61   : > { %s4993_s4 = scalar_lea.sflag [#allocation5], %s330_s6 }
  0x62   : > { %p4989_p0 = pnand %p6284_p6, %p4957_p12 }
  0x64   : > { %p4482_p5 = pneg %p4989_p0 }
  0x66   : > { %s4981_s26 = scalar_lea.hbm %s6283_s0, %s3770_s28  ;;  %s4485_s13 = scalar_lea.hbm %s6283_s0, 8192 }
  0x67   : > { %s4480_s29 = scalar_lea.hbm %s4981_s26, 2048  ;;  %p4486_p10 = scmp.lt.u32.totalorder %s4981_s26, %s6283_s0 }
  0x68   : > { %p4481_p4 = scmp.ne.s32.totalorder %s4981_s26, %s4480_s29  ;;  %p4487_p12 = scmp.lt.u32.totalorder %s4485_s13, %s4480_s29 }
  0x69   : > { %p4489_p6 = scmp.lt.u32.totalorder %s4480_s29, %s4981_s26 }
  0x6a   : > { %p4483_p8 = pnand %p4482_p5, %p4481_p4  ;;  %p4488_p3 = por %p4487_p12, %p4486_p10 }
  0x6c   : > { %p4484_p7 = pneg %p4483_p8  ;;  %p4490_p1 = por %p4489_p6, %p4488_p3 }
  0x6e   : > { %p4491_p2 = pnand %p4490_p1, %p4484_p7 }
  0x70   : > { %4494 = shalt.err (!%p4491_p2)
}
  0x71   : > { %s4495_s6 = scalar_lea.vmem %s4983_s5, 2048  ;;  %s4699_s28 = smov [#allocation4]  }
  0x72   : > { %p4496_p4 = scmp.ne.s32.totalorder %s4983_s5, %s4495_s6  ;;  %s4500_s1 = sshll.u32 %s4699_s28, 4  ;;  %s4501_s1 = int_to_ptr.vmem [resolvable:$false] %s4500_s1 }
  0x73   : > { %s4502_s21 = scalar_lea.vmem %s4501_s1, 4096  ;;  %p4503_p9 = scmp.lt.s32.totalorder %s4983_s5, %s4501_s1 }
  0x74   : > { %p4498_p8 = pnand %p4496_p4, %p4482_p5  ;;  %p4504_p10 = scmp.lt.s32.totalorder %s4502_s21, %s4495_s6 }
  0x76   : > { %p4499_p11 = pneg %p4498_p8  ;;  %p4505_p12 = por %p4504_p10, %p4503_p9 }
  0x78   : > { %p4506_p3 = pnand %p4505_p12, %p4499_p11 }
  0x7a   : > { %4509 = shalt.err (!%p4506_p3)
}
  0x7b   : > { %s6286_s29 = smov 8   ;;  %s6287_s13 = smov 128  }
  0x7c   : > { %s6288_s2 = sld [smem:[#allocation23_spill]]  ;;  %p6289_p11 = scmp.lt.s32.totalorder %s4858_s25, 15 }
  0x7d   : > { %4248 = dma.hbm_to_vmem [thread:$0]  (!%p4989_p0), %s4981_s26, 2048, %s4983_s5, %s4993_s4, %s6287_s13, %s6287_s13, %s6286_s29  }
  0x7e   : > { %s6357_s25 = smov (!%p6289_p11, %s4858_s25), 15  ;;  %p6290_p9 = scmp.lt.s32.totalorder %s4874_s12, 15 }
  0x7f   : > { %s121_s20 = sadd.s32 1, %s4650_s11  ;;  %p128_p2 = scmp.ne.s32.totalorder %s4650_s11, %s4646_s10 }
  0x80   : > { %s6359_s12 = smov (!%p6290_p9, %s4874_s12), 15  ;;  %p134_p1 = scmp.ne.s32.totalorder %s4646_s10, %s4642_s30 }
  0x81   : > { %s117_s9 = ssub.s32 %s6357_s25, %s6359_s12  ;;  %p6291_p5 = scmp.eq.s32.totalorder %s4694_s22, 0 }
  0x82   : > { %s118_s6 = sor.u32 %s117_s9, %s6288_s2  ;;  %p6293_p4 = scmp.eq.s32.totalorder %s4830_s23, 0 }
  0x83   : > { %p5038_p7 = por %p128_p2, %p6291_p5  ;;  %p119_p6 = scmp.eq.s32.totalorder %s118_s6, 0 }
  0x84   : > { %p5044_p8 = por %p134_p1, %p6293_p4  ;;  %s383_s26 = sand.u32 1, %s4650_s11  }
  0x85   : > { %s3779_s4 = sshll.u32 %s6357_s25, 1  ;;  %s3777_s12 = sshll.u32 %s383_s26, 4 }
  0x86   : > { %s6294_s5 = scalar_select %p5044_p8, 1, 0 }
  0x87   : > { %s5050_s1 = scalar_select %p119_p6, %s4650_s11, %s121_s20  }
  0x88   : > { %s395_s21 = sadd.s32 %s3779_s4, %s4882_s24  ;;  %s6295_s0 = sld [smem:[#allocation29_spill]] }
  0x89   : > { %s3781_s30 = sshll.u32 %s395_s21, 7  ;;  %s385_s6 = scalar_lea.vmem [#allocation9], %s3777_s12 }
  0x8a   : > { %s398_s19 = sshll.u32 %s385_s6, 4  ;;  %p6296_p0 = scmp.lt.s32.totalorder %s4694_s22, 4  ;;  %s5058_s19 = int_to_ptr.vmem [resolvable:$true] %s398_s19 }
  0x8c   : > { %p5064_p10 = pnand %p6296_p0, %p5038_p7 }
  0x8e   : > { %s5056_s17 = scalar_lea.hbm %s6295_s0, %s3781_s30  ;;  %p4512_p3 = pneg %p5064_p10 }
  0x8f   : > { %s4510_s24 = scalar_lea.hbm %s5056_s17, 256  ;;  %s4515_s4 = scalar_lea.hbm %s6295_s0, 8192 }
  0x90   : > { %p4511_p12 = scmp.ne.s32.totalorder %s5056_s17, %s4510_s24  ;;  %p4516_p2 = scmp.lt.u32.totalorder %s5056_s17, %s6295_s0 }
  0x91   : > { %p4517_p1 = scmp.lt.u32.totalorder %s4515_s4, %s4510_s24  ;;  %p4519_p7 = scmp.lt.u32.totalorder %s4510_s24, %s5056_s17 }
  0x92   : > { %p4513_p11 = pnand %p4512_p3, %p4511_p12 }
  0x93   : > { %p4518_p5 = por %p4517_p1, %p4516_p2 }
  0x94   : > { %p4514_p9 = pneg %p4513_p11 }
  0x95   : > { %p4520_p6 = por %p4519_p7, %p4518_p5 }
  0x97   : > { %p4521_p4 = pnand %p4520_p6, %p4514_p9 }
  0x99   : > { %4524 = shalt.err (!%p4521_p4)
}
  0x9a   : > { %s4525_s21 = scalar_lea.vmem %s5058_s19, 256  ;;  %s4700_s30 = smov [#allocation9]  }
  0x9b   : > { %p4526_p0 = scmp.ne.s32.totalorder %s5058_s19, %s4525_s21  ;;  %s4530_s2 = sshll.u32 %s4700_s30, 4  ;;  %s4531_s2 = int_to_ptr.vmem [resolvable:$false] %s4530_s2 }
  0x9c   : > { %s4532_s9 = scalar_lea.vmem %s4531_s2, 512  ;;  %p4533_p8 = scmp.lt.s32.totalorder %s5058_s19, %s4531_s2 }
  0x9d   : > { %p4528_p12 = pnand %p4526_p0, %p4512_p3  ;;  %p4534_p2 = scmp.lt.s32.totalorder %s4532_s9, %s4525_s21 }
  0x9f   : > { %p4529_p11 = pneg %p4528_p12  ;;  %p4535_p1 = por %p4534_p2, %p4533_p8 }
  0xa1   : > { %p4536_p5 = pnand %p4535_p1, %p4529_p11 }
  0xa3   : > { %4539 = shalt.err (!%p4536_p5)
}
  0xa4   : > { %4254 = dma.hbm_to_vmem [thread:$0]  (!%p5064_p10), %s5056_s17, 256, %s5058_s19, %s4904_s3, %s6287_s13, %s6287_s13, %s6286_s29  }
  0xa5   : > { %410 = sbr.rel (%p4939_p13) target bundleno = 1212 (0x4bc), region = 56  ;;  %s5100_s6 = sand.u32 (!%p4939_p13), 1, %s4670_s16  }
  0xa6   : > { %s3783_s24 = sshll.u32 (!%p4939_p13), %s5100_s6, 7  ;;  %s413_s20 = scalar_lea.sflag (!%p4939_p13), [#allocation5], %s5100_s6 }
  0xa7   : > { %s5106_s25 = scalar_lea.vmem (!%p4939_p13), [#allocation4], %s3783_s24  ;;  %p6298_p8 = scmp.ne.s32.totalorder (!%p4939_p13), %s6280_s8, 0 }
  0xac   : > { %4625 = dma.done.wait (%p6298_p8), %s413_s20, 2048  }
  0xad   : > { %4627 = vsyncadd (%p6298_p8), %s413_s20, 4294965248  ;;  %s6299_s17 = sld [smem:[#allocation15_spill]]  ;;  %s6300_s19 = sld [smem:[#allocation24_spill]] }
  0xae   : > { %s421_s3 = sand.u32 1, %s4830_s23  }
  0xaf   : > { %s422_s13 = scalar_lea.sflag [#allocation8], %s421_s3 }
  0xb3   : > { %s423_s7 = sand.u32 1, %s6299_s17   ;;  %p6301_p13 = scmp.ne.s32.totalorder %s6300_s19, 0 }
  0xb4   : > { %s5114_s29 = sshll.u32 %s423_s7, 4 }
  0xb5   : > { %s425_s26 = scalar_lea.vmem [#allocation7], %s5114_s29 }
  0xb6   : > { %4629 = dma.done.wait (%p6301_p13), %s422_s13, 256  }
  0xb7   : > { %4631 = vsyncadd (%p6301_p13), %s422_s13, 4294967040  ;;  %s432_s4 = sand.u32 1, %s4646_s10   ;;  %p6302_p10 = scmp.ne.s32.totalorder %s6294_s5, 0 }
  0xb8   : > { %s5122_s8 = sshll.u32 %s432_s4, 4 }
  0xb9   : > { %s434_s28 = scalar_lea.vmem [#allocation9], %s5122_s8 }
  0xba   : > { %4633 = dma.done.wait (%p6302_p10), %s422_s13, 256  }
  0xbb   : > { %4635 = vsyncadd (%p6302_p10), %s422_s13, 4294967040  ;;  %v4701_v0 = vmov 0.0   ;;  %vm4702_vm0 = vmmov 0   ;;  %s6303_s21 = sld [smem:[#allocation30_spill]]  ;;  %v649_v11 = vld [vmem:[%s5106_s25] sm:$0xff]  ;;  %v650_v13 = vld [vmem:[%s5106_s25 + $0x8] sm:$0xff] }
  0xbc   : > { %4125 = vmatprep.subr.bf16.mxu0 %v4701_v0  ;;  %4141 = vmatprep.mubr.msk.bf16.mxu0 %vm4702_vm0, %v4701_v0  ;;  %v665_v15 = vpack.c.bf16 %v650_v13, %v649_v11  ;;  %v490_v20 = vld [vmem:[%s425_s26] sm:$0xff]  ;;  %v491_v21 = vld [vmem:[%s425_s26 + $0x8] sm:$0xff]  ;;  %s6305_s26 = sld [smem:[#allocation32_spill]]  ;;  %s6306_s13 = sld [smem:[#allocation31_spill]]  ;;  %vm613_vm1 = vsmask.f32 256 }
  0xbd   : > { %v651_v22 = vld [vmem:[%s5106_s25 + $0x10] sm:$0xff]  ;;  %v652_v23 = vld [vmem:[%s5106_s25 + $0x18] sm:$0xff]  ;;  %v653_v24 = vld [vmem:[%s5106_s25 + $0x20] sm:$0xff]  ;;  %v492_v25 = vpack.c.bf16 %v491_v21, %v490_v20  ;;  %vm636_vm2 = vcmask 257024   ;;  %vm637_vm3 = vsmask.f32 7938 }
  0xbe   : > { %4161 = vmatprep.mubr.bf16.mxu1 %v665_v15  ;;  %v654_v26 = vld [vmem:[%s5106_s25 + $0x28] sm:$0xff]  ;;  %v666_v28 = vpack.c.bf16 %v652_v23, %v651_v22  ;;  %v655_v31 = vld [vmem:[%s5106_s25 + $0x30] sm:$0xff]  ;;  %v656_v32 = vld [vmem:[%s5106_s25 + $0x38] sm:$0xff]  ;;  %vm644_vm4 = vcmask 253952   ;;  %vm614_vm5 = vsmask.f32 4368 }
  0xbf   : > { %v667_v29 = vpack.c.bf16 %v654_v26, %v653_v24  ;;  %v657_v33 = vld [vmem:[%s5106_s25 + $0x40] sm:$0xff]  ;;  %v658_v34 = vld [vmem:[%s5106_s25 + $0x48] sm:$0xff]  ;;  %v668_v36 = vpack.c.bf16 %v656_v32, %v655_v31  ;;  %v659_v39 = vld [vmem:[%s5106_s25 + $0x50] sm:$0xff]  ;;  %s4703_s23 = smov 64   ;;  %vm1849_vm10 = vcmask 1042432   ;;  %vm1850_vm11 = vcmask 1046532  }
  0xc0   : > { %v669_v37 = vpack.c.bf16 %v658_v34, %v657_v33  ;;  %v660_v40 = vld [vmem:[%s5106_s25 + $0x58] sm:$0xff]  ;;  %v661_v41 = vld [vmem:[%s5106_s25 + $0x60] sm:$0xff]  ;;  %v662_v42 = vld [vmem:[%s5106_s25 + $0x68] sm:$0xff]  ;;  %s4704_s12 = smov 96   ;;  %vm1516_vm13 = vcmask 261120   ;;  %s6322_s17 = sld [smem:[#allocation33_spill]] }
  0xc1   : > { %s6304_s2 = smov %s6303_s21  ;;  %v4382_v1 = vld [vmem:[%s6303_s21] sm:$0xff]   ;;  %v670_v44 = vpack.c.bf16 %v660_v40, %v659_v39  ;;  %v671_v45 = vpack.c.bf16 %v662_v42, %v661_v41  ;;  %v663_v47 = vld [vmem:[%s5106_s25 + $0x70] sm:$0xff]  ;;  %v664_v48 = vld [vmem:[%s5106_s25 + $0x78] sm:$0xff]  ;;  %s4705_s21 = smov 32   ;;  %vm1549_vm14 = vsmask.f32 3328 }
  0xc2   : > { %v4383_v2 = vld [vmem:[%s6304_s2] sm:$0xff]   ;;  %4126 = vmatpush3.bf16.msra.mxu0 %v4382_v1  ;;  %v4384_v3 = vld [vmem:[%s6304_s2 + $0x8] sm:$0xff]   ;;  %v4387_v5 = vld [vmem:[%s6304_s2 + $0x10] sm:$0xff]   ;;  %v672_v50 = vpack.c.bf16 %v664_v48, %v663_v47  ;;  %s6307_s4 = smov %s6306_s13  ;;  %vm1550_vm15 = vsmask.f32 7440  ;;  %s6323_s29 = sld [smem:[#allocation35_spill]] }
  0xc3   : > { %4145 = vmatprep.subr.bf16.mxu1 %v4383_v2  ;;  %4127 = vmatprep.subr.bf16.mxu0 %v4701_v0  ;;  %v4385_v4 = vld [vmem:[%s6304_s2 + $0x8] sm:$0xff]   ;;  %v4386_v6 = vld [vmem:[%s6304_s2 + $0x10] sm:$0xff]   ;;  %v4389_v7 = vld [vmem:[%s6304_s2 + $0x18] sm:$0xff]   ;;  %s6083_s3 = scalar_lea.vmem [#allocation10], %s3783_s24  ;;  %s6324_s24 = sld [smem:[#allocation17_spill]] }
  0xc4   : > { %4146 = vmatpush3.bf16.msra.mxu1 %v4383_v2  ;;  %v4388_v8 = vld [vmem:[%s6304_s2 + $0x18] sm:$0xff]   ;;  %v4391_v9 = vld [vmem:[%s6304_s2 + $0x20] sm:$0xff]   ;;  %v4393_v12 = vld [vmem:[%s6304_s2 + $0x28] sm:$0xff]   ;;  %s6325_s7 = sld [smem:[#allocation18_spill]]  ;;  %s6326_s9 = sld [smem:[#allocation36_spill]] }
  0xc5   : > { %4147 = vmatprep.subr.bf16.mxu1 %v4385_v4  ;;  %v4390_v10 = vld [vmem:[%s6304_s2 + $0x20] sm:$0xff]   ;;  %v4392_v14 = vld [vmem:[%s6304_s2 + $0x28] sm:$0xff]   ;;  %v4395_v16 = vld [vmem:[%s6304_s2 + $0x30] sm:$0xff]   ;;  %p6327_p9 = scmp.ne.s32.totalorder %s6281_s18, 0  ;;  %s4706_s19 = smov [#allocation10]  }
  0xc6   : > { %4128 = vmatpush3.bf16.msra.mxu0 %v4384_v3  ;;  %v4394_v17 = vld [vmem:[%s6304_s2 + $0x30] sm:$0xff]   ;;  %v4396_v18 = vld [vmem:[%s6304_s2 + $0x38] sm:$0xff]   ;;  %v4398_v27 = vld [vmem:[%s6304_s2] sm:$0xff]  }
  0xc7   : > { %4129 = vmatprep.subr.bf16.mxu0 %v4701_v0  ;;  %v4397_v19 = vld [vmem:[%s6304_s2 + $0x38] sm:$0xff]   ;;  %v4399_v30 = vld [vmem:[%s6304_s2 + $0x8] sm:$0xff]   ;;  %v4400_v35 = vld [vmem:[%s6304_s2 + $0x10] sm:$0xff]  }
  0xc8   : > { %4148 = vmatpush3.bf16.msra.mxu1 %v4385_v4  ;;  %v4401_v38 = vld [vmem:[%s6304_s2 + $0x18] sm:$0xff]   ;;  %v4402_v43 = vld [vmem:[%s6304_s2 + $0x20] sm:$0xff]   ;;  %v4403_v46 = vld [vmem:[%s6304_s2 + $0x28] sm:$0xff]  }
  0xc9   : > { %4149 = vmatprep.subr.bf16.mxu1 %v4387_v5  ;;  %v4404_v49 = vld [vmem:[%s6304_s2 + $0x30] sm:$0xff]   ;;  %v4405_v51 = vld [vmem:[%s6304_s2 + $0x38] sm:$0xff]   ;;  %v4409_v55 = vld [vmem:[%s6305_s26 + $0x80] sm:$0xff]   ;;  %s4006_s8 = sshll.u32 %s6324_s24, 4 }
  0xca   : > { %4130 = vmatpush3.bf16.msra.mxu0 %v4386_v6  ;;  %v1122_v52 = vld [vmem:[%s434_s28] sm:$0xff]  ;;  %v1123_v53 = vld [vmem:[%s434_s28 + $0x8] sm:$0xff]  ;;  %vm5264_vm6 = vmand %vm636_vm2, %vm637_vm3 }
  0xcb   : > { %4131 = vmatprep.subr.bf16.mxu0 %v4701_v0  ;;  %v1124_v54 = vpack.c.bf16 %v1123_v53, %v1122_v52  ;;  %v4411_v56 = vld [vmem:[%s6305_s26 + $0x88] sm:$0xff]   ;;  %v5254_v57 = vld [vmem:[%s6306_s13] ss:$0 sm:$0xff]  ;;  %vm5270_vm7 = vmor %vm613_vm1, %vm614_vm5 }
  0xcc   : > { %4150 = vmatpush3.bf16.msra.mxu1 %v4387_v5  ;;  %v639_v24 = vld [vmem:[#allocation2] sm:$0xf]  ;;  %vm5278_vm8 = vmand %vm644_vm4, %vm613_vm1  ;;  %v1066_v47 = vld [vmem:[#allocation2 + $0xc] sm:$0xf]  ;;  %vm1792_vm1 = vcmask 523520  }
  0xcd   : > { %4151 = vmatprep.subr.bf16.mxu1 %v4389_v7  ;;  %vm5310_vm9 = vmand %vm644_vm4, %vm637_vm3  ;;  %v4435_v23 = vld [vmem:[%s6305_s26 + $0x68] sm:$0xff]   ;;  %vm2045_vm3 = vcmask 1048320  }
  0xce   : > { %4132 = vmatpush3.bf16.msra.mxu0 %v4388_v8  ;;  %vm5369_vm12 = vmor %vm1849_vm10, %vm1850_vm11 }
  0xcf   : > { %4133 = vmatprep.subr.bf16.mxu0 %v4701_v0 }
  0xd0   : > { %4152 = vmatpush3.bf16.msra.mxu1 %v4389_v7 }
  0xd1   : > { %4153 = vmatprep.subr.bf16.mxu1 %v4391_v9 }
  0xd2   : > { %4134 = vmatpush3.bf16.msra.mxu0 %v4390_v10 }
  0xd3   : > { %4135 = vmatprep.subr.bf16.mxu0 %v4701_v0 }
  0xd4   : > { %4154 = vmatpush3.bf16.msra.mxu1 %v4391_v9 }
  0xd5   : > { %4155 = vmatprep.subr.bf16.mxu1 %v4393_v12 }
  0xd6   : > { %4136 = vmatpush3.bf16.msra.mxu0 %v4392_v14 }
  0xd7   : > { %4137 = vmatprep.subr.bf16.mxu0 %v4701_v0 }
  0xd8   : > { %4156 = vmatpush3.bf16.msra.mxu1 %v4393_v12 }
  0xd9   : > { %4157 = vmatprep.subr.bf16.mxu1 %v4395_v16 }
  0xda   : > { %4138 = vmatpush3.bf16.msra.mxu0 %v4394_v17 }
  0xdb   : > { %4139 = vmatprep.subr.bf16.mxu0 %v4701_v0 }
  0xdc   : > { %4158 = vmatpush3.bf16.msra.mxu1 %v4395_v16 }
  0xdd   : > { %4159 = vmatprep.subr.bf16.mxu1 %v4397_v19 }
  0xde   : > { %4140 = vmatpush3.bf16.msra.mxu0 %v4396_v18 }
  0xdf   : > { %4177 = vmatprep.subr.bf16.mxu0 %v4701_v0 }
  0xe0   : > { %4160 = vmatpush3.bf16.msra.mxu1 %v4397_v19 }
  0xe1   : > { %4142 = vmatmul.mubr.bf16.vlgmr.msra.gmra.mrb[0].mxu0 %v492_v25 }
  0xe2   : > { %4178 = vmatpush3.bf16.msra.mxu0 %v4398_v27  ;;  %4193 = vmatprep.mubr.msk.bf16.mxu0 %vm4702_vm0, %v4701_v0  ;;  %vm5472_vm0 = vmor %vm1549_vm14, %vm1550_vm15 }
  0xe3   : > { %4162 = vmatmul.mubr.bf16.vlgmr.msra.gmra.mrb[0].mxu1 %v666_v28  ;;  %4179 = vmatprep.subr.bf16.mxu0 %v4701_v0 }
  0xe4   : > { %4165 = vmatprep.mubr.bf16.mxu1 %v667_v29 }
  0xe6   : > { %4180 = vmatpush3.bf16.msra.mxu0 %v4399_v30 }
  0xe7   : > { %4181 = vmatprep.subr.bf16.mxu0 %v4701_v0 }
  0xea   : > { %4182 = vmatpush3.bf16.msra.mxu0 %v4400_v35  ;;  %v1073_v35 = vld [vmem:[#allocation2 + $0x18] sm:$0xf] }
  0xeb   : > { %4166 = vmatmul.mubr.bf16.gmra.mrb[4].mxu1 %v668_v36  ;;  %4183 = vmatprep.subr.bf16.mxu0 %v4701_v0 }
  0xec   : > { %4169 = vmatprep.mubr.bf16.mxu1 %v669_v37 }
  0xee   : > { %4184 = vmatpush3.bf16.msra.mxu0 %v4401_v38 }
  0xef   : > { %4185 = vmatprep.subr.bf16.mxu0 %v4701_v0 }
  0xf2   : > { %4186 = vmatpush3.bf16.msra.mxu0 %v4402_v43 }
  0xf3   : > { %4170 = vmatmul.mubr.bf16.gmra.mrb[8].mxu1 %v670_v44  ;;  %4187 = vmatprep.subr.bf16.mxu0 %v4701_v0 }
  0xf4   : > { %4173 = vmatprep.mubr.bf16.mxu1 %v671_v45 }
  0xf6   : > { %4188 = vmatpush3.bf16.msra.mxu0 %v4403_v46  ;;  %v646_v46 = vld [vmem:[#allocation2 + $0x8] sm:$0x1] }
  0xf7   : > { %4189 = vmatprep.subr.bf16.mxu0 %v4701_v0 }
  0xfa   : > { %4190 = vmatpush3.bf16.msra.mxu0 %v4404_v49 }
  0xfb   : > { %4174 = vmatmul.mubr.bf16.gmra.mrb[12].mxu1 %v672_v50  ;;  %4191 = vmatprep.subr.bf16.mxu0 %v4701_v0 }
  0xfe   : > { %4192 = vmatpush3.bf16.msra.mxu0 %v4405_v51 }
  0xff   : > { %4197 = vmatprep.subr.bf16.mxu0 %v4409_v55 }
 0x101   : > { %4194 = vmatmul.mubr.bf16.vlgmr.msra.gmra.mrb[4].mxu0 %v1124_v54 }
 0x102   : > { %4198 = vmatpush3.bf16.msra.mxu0 %v4409_v55 }
 0x103   : > { %4199 = vmatprep.subr.bf16.mxu0 %v4411_v56 }
 0x106   : > { %4200 = vmatpush3.bf16.msra.mxu0 %v4411_v56  ;;  %v1077_v56 = vld [vmem:[#allocation2 + $0x20] sm:$0x1] }
 0x1b4   : > { %v598_v58 = vpop.f32.mrb[0].mxu0 }
 0x1b5   : > { %v599_v59 = vadd.f32 %v5254_v57, %v598_v58  ;;  %v4143_v60 = vpop.f32.mrb[1].mxu0 }
 0x1b6   : > { %v4163_v61 = vpop.f32.mrb[0].mxu1  ;;  %v601_v62 = vpop.f32.mrb[2].mxu0 }
 0x1b7   : > { %v605_v63 = vmax.f32 %v599_v59, 0.0  ;;  %v787_v0 = vadd.f32 %v4163_v61, %v5254_v57  ;;  %v602_v1 = vadd.f32 %v5254_v57, %v601_v62  ;;  %v778_v2 = vpop.f32.mrb[1].mxu1  ;;  %v4144_v3 = vpop.f32.mrb[3].mxu0 }
 0x1b8   : > { %v779_v4 = vadd.f32 %v5254_v57, %v778_v2  ;;  %v4164_v5 = vpop.f32.mrb[2].mxu1 }
 0x1b9   : > { %v3986_v6 = vpack.c.bf16 %v605_v63, %v605_v63  ;;  %v843_v7 = vmax.f32 %v787_v0, 0.0  ;;  %v606_v8 = vmax.f32 %v602_v1, 0.0  ;;  %v790_v9 = vadd.f32 %v4164_v5, %v5254_v57  ;;  %v781_v10 = vpop.f32.mrb[3].mxu1 }
 0x1ba   : > { %v841_v11 = vmax.f32 %v779_v4, 0.0  ;;  %v782_v12 = vadd.f32 %v5254_v57, %v781_v10 }
 0x1bb   : > { %v617_v13 = vshrl.u32 %v3986_v6, 16  ;;  %v620_v14 = vshll.u32 %v3986_v6, 16  ;;  %v3990_v15 = vpack.c.bf16 %v843_v7, %v843_v7  ;;  %v3987_v16 = vpack.c.bf16 %v606_v8, %v606_v8  ;;  %v1070_v6 = vld [vmem:[#allocation2 + $0x14] sm:$0x1] }
 0x1bc   : > { %v3988_v17 = vpack.c.bf16 %v841_v11, %v841_v11  ;;  %v844_v18 = vmax.f32 %v790_v9, 0.0  ;;  %v842_v19 = vmax.f32 %v782_v12, 0.0 }
 0x1bd   : > { %v619_v20 = vrot.slane %v617_v13, 7  ;;  %v923_v21 = vshrl.u32 %v3990_v15, 16  ;;  %v625_v22 = vshrl.u32 %v3987_v16, 16  ;;  %v926_v25 = vshll.u32 %v3990_v15, 16 }
 0x1be   : > { %v628_v26 = vshll.u32 %v3987_v16, 16  ;;  %v906_v27 = vshrl.u32 %v3988_v17, 16  ;;  %v3991_v28 = vpack.c.bf16 %v844_v18, %v844_v18  ;;  %v4167_v29 = vpop.f32.mrb[4].mxu1  ;;  %v909_v38 = vshll.u32 %v3988_v17, 16 }
 0x1bf   : > { %v622_v30 = vor.u32 %v620_v14, %v619_v20  ;;  %v623_v31 = vrot.slane %v619_v20, 4  ;;  %v925_v32 = vrot.slane %v923_v21, 7  ;;  %v627_v33 = vrot.slane %v625_v22, 7  ;;  %v794_v34 = vpop.f32.mrb[5].mxu1 }
 0x1c0   : > { %v908_v37 = vrot.slane %v906_v27, 7  ;;  %v931_v39 = vshrl.u32 %v3991_v28, 16  ;;  %v3989_v40 = vpack.c.bf16 %v842_v19, %v842_v19  ;;  %v4168_v41 = vpop.f32.mrb[6].mxu1  ;;  %v934_v48 = vshll.u32 %v3991_v28, 16 }
 0x1c1   : > { %v640_v42 = vsel %vm5264_vm6, %v622_v30, %v639_v24  ;;  %v928_v44 = vor.u32 %v926_v25, %v925_v32  ;;  %v630_v45 = vor.u32 %v628_v26, %v627_v33  ;;  %v797_v49 = vpop.f32.mrb[7].mxu1  ;;  %v929_v50 = vrot.slane %v925_v32, 4 }
 0x1c2   : > { %641 = vst [vmem:[#allocation2] sm:$0xf] %v640_v42  ;;  %v632_v51 = vrot.slane %v627_v33, 4  ;;  %v911_v52 = vor.u32 %v909_v38, %v908_v37  ;;  %v933_v53 = vrot.slane %v931_v39, 7  ;;  %v914_v58 = vshrl.u32 %v3989_v40, 16 }
 0x1c3   : > { %v1074_v54 = vsel %vm5264_vm6, %v928_v44, %v1073_v35  ;;  %v631_v55 = vsel %vm5270_vm7, %v623_v31, %v630_v45  ;;  %v917_v59 = vshll.u32 %v3989_v40, 16  ;;  %v803_v1 = vadd.f32 %v4167_v29, %v5254_v57 }
 0x1c4   : > { %1075 = vst [vmem:[#allocation2 + $0x18] sm:$0xf] %v1074_v54  ;;  %643 = vst.msk [vmem:[#allocation2 + $0x4] sm:$0xf] %vm636_vm2, %v631_v55  ;;  %v647_v60 = vsel %vm5278_vm8, %v632_v51, %v646_v46  ;;  %v1067_v61 = vsel %vm5264_vm6, %v911_v52, %v1066_v47  ;;  %v936_v62 = vor.u32 %v934_v48, %v933_v53  ;;  %v938_v63 = vrot.slane %v933_v53, 4 }
 0x1c5   : > { %648 = vst [vmem:[#allocation2 + $0x8] sm:$0x1] %v647_v60  ;;  %1068 = vst [vmem:[#allocation2 + $0xc] sm:$0xf] %v1067_v61  ;;  %v916_v0 = vrot.slane %v914_v58, 7  ;;  %v795_v2 = vadd.f32 %v5254_v57, %v794_v34  ;;  %v806_v3 = vadd.f32 %v4168_v41, %v5254_v57  ;;  %v798_v7 = vadd.f32 %v5254_v57, %v797_v49 }
 0x1c6   : > { %v937_v4 = vsel %vm5270_vm7, %v929_v50, %v936_v62  ;;  %v1078_v5 = vsel %vm5278_vm8, %v938_v63, %v1077_v56  ;;  %v4171_v8 = vpop.f32.mrb[8].mxu1  ;;  %v912_v9 = vrot.slane %v908_v37, 4  ;;  %v847_v12 = vmax.f32 %v803_v1, 0.0  ;;  %v1087_v51 = vld [vmem:[#allocation2 + $0x30] sm:$0xf] }
 0x1c7   : > { %1076 = vst.msk [vmem:[#allocation2 + $0x1c] sm:$0xf] %vm636_vm2, %v937_v4  ;;  %1079 = vst [vmem:[#allocation2 + $0x20] sm:$0x1] %v1078_v5  ;;  %v919_v10 = vor.u32 %v917_v59, %v916_v0  ;;  %v921_v11 = vrot.slane %v916_v0, 4  ;;  %v810_v13 = vpop.f32.mrb[9].mxu1  ;;  %v819_v16 = vadd.f32 %v4171_v8, %v5254_v57 }
 0x1c8   : > { %v845_v14 = vmax.f32 %v795_v2, 0.0  ;;  %v848_v15 = vmax.f32 %v806_v3, 0.0  ;;  %v4172_v17 = vpop.f32.mrb[10].mxu1  ;;  %v3994_v21 = vpack.c.bf16 %v847_v12, %v847_v12  ;;  %v846_v22 = vmax.f32 %v798_v7, 0.0  ;;  %v1080_v61 = vld [vmem:[#allocation2 + $0x24] sm:$0xf] }
 0x1c9   : > { %v1273_v18 = vld [vmem:[#allocation2] sm:$0x1]  ;;  %v920_v19 = vsel %vm5270_vm7, %v912_v9, %v919_v10  ;;  %v1071_v20 = vsel %vm5278_vm8, %v921_v11, %v1070_v6  ;;  %v813_v24 = vpop.f32.mrb[11].mxu1  ;;  %v851_v27 = vmax.f32 %v819_v16, 0.0  ;;  %v5317_v46 = vadd.f32 %v5254_v57, %v810_v13  ;;  %v1084_v16 = vld [vmem:[#allocation2 + $0x2c] sm:$0x1] }
 0x1ca   : > { %v1284_v25 = vshrl.u32 %v1273_v18, 16  ;;  %1069 = vst.msk [vmem:[#allocation2 + $0x10] sm:$0xf] %vm636_vm2, %v920_v19  ;;  %1072 = vst [vmem:[#allocation2 + $0x14] sm:$0x1] %v1071_v20  ;;  %v3992_v33 = vpack.c.bf16 %v845_v14, %v845_v14  ;;  %v3995_v34 = vpack.c.bf16 %v848_v15, %v848_v15  ;;  %v957_v39 = vshrl.u32 %v3994_v21, 16 }
 0x1cb   : > { %v1275_v26 = vld [vmem:[#allocation2 + $0x18] sm:$0x1]  ;;  %v3993_v40 = vpack.c.bf16 %v846_v22, %v846_v22  ;;  %v960_v45 = vshll.u32 %v3994_v21, 16  ;;  %v5320_v47 = vadd.f32 %v4172_v17, %v5254_v57  ;;  %v3998_v52 = vpack.c.bf16 %v851_v27, %v851_v27  ;;  %v1101_v22 = vld [vmem:[#allocation2 + $0x48] sm:$0xf] }
 0x1cc   : > { %v1343_v28 = vsel %vm5278_vm8, %v1284_v25, %v1273_v18  ;;  %v1294_v30 = vshrl.u32 %v1275_v26, 16  ;;  %v1372_v31 = vld [vmem:[#allocation2 + $0x8] sm:$0x1]  ;;  %v1274_v32 = vld [vmem:[#allocation2 + $0xc] sm:$0x1]  ;;  %v959_v54 = vrot.slane %v957_v39, 7  ;;  %v5329_v0 = vadd.f32 %v5254_v57, %v813_v24 }
 0x1cd   : > { %1344 = vst [vmem:[#allocation2] sm:$0x1] %v1343_v28  ;;  %v1348_v35 = vld [vmem:[#allocation2 + $0x18] sm:$0x1]  ;;  %v1383_v37 = vshll.u32 %v1372_v31, 16  ;;  %v1289_v38 = vshrl.u32 %v1274_v32, 16 }
 0x1ce   : > { %v1349_v41 = vsel %vm5278_vm8, %v1294_v30, %v1348_v35  ;;  %v1345_v42 = vld [vmem:[#allocation2 + $0xc] sm:$0x1]  ;;  %v1374_v44 = vld [vmem:[#allocation2 + $0x20] sm:$0x1]  ;;  %v940_v55 = vshrl.u32 %v3992_v33, 16  ;;  %v943_v56 = vshll.u32 %v3992_v33, 16  ;;  %v962_v3 = vor.u32 %v960_v45, %v959_v54 }
 0x1cf   : > { %1350 = vst [vmem:[#allocation2 + $0x18] sm:$0x1] %v1349_v41  ;;  %v1423_v48 = vsel %vm5310_vm9, %v1383_v37, %v1372_v31  ;;  %v1346_v49 = vsel %vm5278_vm8, %v1289_v38, %v1345_v42  ;;  %v1389_v50 = vshll.u32 %v1374_v44, 16  ;;  %v1428_v53 = vld [vmem:[#allocation2 + $0x20] sm:$0x1]  ;;  %v965_v58 = vshrl.u32 %v3995_v34, 16 }
 0x1d0   : > { %1424 = vst [vmem:[#allocation2 + $0x8] sm:$0x1] %v1423_v48  ;;  %1347 = vst [vmem:[#allocation2 + $0xc] sm:$0x1] %v1346_v49  ;;  %v968_v62 = vshll.u32 %v3995_v34, 16  ;;  %v948_v63 = vshrl.u32 %v3993_v40, 16  ;;  %v1088_v12 = vsel %vm5264_vm6, %v962_v3, %v1087_v51 }
 0x1d1   : > { %v1429_v59 = vsel %vm5310_vm9, %v1389_v50, %v1428_v53  ;;  %v1373_v60 = vld [vmem:[#allocation2 + $0x14] sm:$0x1]  ;;  %v963_v4 = vrot.slane %v959_v54, 4  ;;  %v942_v5 = vrot.slane %v940_v55, 7  ;;  %v5331_v6 = vpop.f32.mrb[12].mxu1  ;;  %v967_v7 = vrot.slane %v965_v58, 7 }
 0x1d2   : > { %1430 = vst [vmem:[#allocation2 + $0x20] sm:$0x1] %v1429_v59  ;;  %v1386_v1 = vshll.u32 %v1373_v60, 16  ;;  %v1425_v2 = vld [vmem:[#allocation2 + $0x14] sm:$0x1]  ;;  %v950_v8 = vrot.slane %v948_v63, 7 }
 0x1d3   : > { %v951_v9 = vshll.u32 %v3993_v40, 16  ;;  %v991_v10 = vshrl.u32 %v3998_v52, 16  ;;  %v945_v13 = vor.u32 %v943_v56, %v942_v5  ;;  %v946_v14 = vrot.slane %v942_v5, 4  ;;  %v1091_v15 = vld [vmem:[#allocation2 + $0x38] sm:$0x1]  ;;  %v5337_v17 = vpop.f32.mrb[13].mxu1 }
 0x1d4   : > { %v1426_v11 = vsel %vm5310_vm9, %v1386_v1, %v1425_v2  ;;  %1089 = vst [vmem:[#allocation2 + $0x30] sm:$0xf] %v1088_v12  ;;  %v970_v18 = vor.u32 %v968_v62, %v967_v7  ;;  %v972_v19 = vrot.slane %v967_v7, 4  ;;  %v955_v21 = vrot.slane %v950_v8, 4  ;;  %v2314_v24 = vld [vmem:[#allocation2 + $0x1c] sm:$0xf] }
 0x1d5   : > { %1427 = vst [vmem:[#allocation2 + $0x14] sm:$0x1] %v1426_v11  ;;  %v953_v20 = vor.u32 %v951_v9, %v950_v8  ;;  %v1081_v25 = vsel %vm5264_vm6, %v945_v13, %v1080_v61  ;;  %v5341_v26 = vrot.slane %v991_v10, 7  ;;  %v994_v27 = vshll.u32 %v3998_v52, 16  ;;  %v5352_v35 = vpop.f32.mrb[14].mxu1 }
 0x1d6   : > { %v849_v28 = vmax.f32 %v5317_v46, 0.0  ;;  %v4406_v30 = vld [vmem:[#allocation2 + $0x18] sm:$0xff]   ;;  %1082 = vst [vmem:[#allocation2 + $0x24] sm:$0xf] %v1081_v25  ;;  %v971_v31 = vsel %vm5270_vm7, %v963_v4, %v970_v18  ;;  %v1092_v32 = vsel %vm5278_vm8, %v972_v19, %v1091_v15  ;;  %v1085_v34 = vsel %vm5278_vm8, %v955_v21, %v1084_v16  ;;  %v829_v40 = vpop.f32.mrb[15].mxu1 }
 0x1d7   : > { %v954_v33 = vsel %vm5270_vm7, %v946_v14, %v953_v20  ;;  %1090 = vst.msk [vmem:[#allocation2 + $0x34] sm:$0xf] %vm636_vm2, %v971_v31  ;;  %1093 = vst [vmem:[#allocation2 + $0x38] sm:$0x1] %v1092_v32  ;;  %v996_v37 = vor.u32 %v994_v27, %v5341_v26  ;;  %v852_v39 = vmax.f32 %v5320_v47, 0.0  ;;  %2527 = vrot.lane.b32.xlu1 %v4406_v30, %s4703_s23  ;;  %v2367_v42 = vrot.slane %v2314_v24, 5 }
 0x1d8   : > { %1083 = vst.msk [vmem:[#allocation2 + $0x28] sm:$0xf] %vm636_vm2, %v954_v33  ;;  %1086 = vst [vmem:[#allocation2 + $0x2c] sm:$0x1] %v1085_v34  ;;  %v3996_v38 = vpack.c.bf16 %v849_v28, %v849_v28  ;;  %v850_v48 = vmax.f32 %v5329_v0, 0.0  ;;  %v4407_v49 = vld [vmem:[#allocation2 + $0x18] sm:$0xff]   ;;  %v5374_v59 = vadd.f32 %v5254_v57, %v829_v40 }
 0x1d9   : > { %v2315_v41 = vld [vmem:[#allocation2 + $0x20] sm:$0x1]  ;;  %v1102_v44 = vsel %vm5264_vm6, %v996_v37, %v1101_v22  ;;  %v5361_v46 = vpack.c.bf16 %v852_v39, %v852_v39  ;;  %v2313_v50 = vld [vmem:[#allocation2 + $0x18] sm:$0xe]  ;;  %v1094_v55 = vld [vmem:[#allocation2 + $0x3c] sm:$0xf] }
 0x1da   : > { %v974_v45 = vshrl.u32 %v3996_v38, 16  ;;  %1103 = vst [vmem:[#allocation2 + $0x48] sm:$0xf] %v1102_v44  ;;  %v977_v47 = vshll.u32 %v3996_v38, 16  ;;  %v2370_v51 = vrot.slane %v2315_v41, 5  ;;  %v2369_v58 = vrot.slane %v2367_v42, 4 }
 0x1db   : > { %v5364_v52 = vld [vmem:[#allocation2 + $0x18] sm:$0xe]  ;;  %v1277_v53 = vld [vmem:[#allocation2 + $0x30] sm:$0x1]  ;;  %2023 = vrot.lane.b32.xlu1 %v4407_v49, %s4704_s12  ;;  %v5376_v60 = vld [vmem:[#allocation2 + $0x1c] sm:$0xf]  ;;  %v3997_v3 = vpack.c.bf16 %v850_v48, %v850_v48 }
 0x1dc   : > { %v1354_v54 = vld [vmem:[#allocation2 + $0x30] sm:$0x1]  ;;  %v1304_v61 = vshrl.u32 %v1277_v53, 16  ;;  %v5378_v62 = vrot.slane %v974_v45, 7  ;;  %v3893_v63 = vrot.slane %v2313_v50, 9  ;;  %v999_v2 = vshrl.u32 %v5361_v46, 16 }
 0x1dd   : > { %v1276_v0 = vld [vmem:[#allocation2 + $0x24] sm:$0x1]  ;;  %v2371_v4 = vsel %vm5369_vm12, %v2369_v58, %v2370_v51  ;;  %v4408_v5 = vld [vmem:[#allocation2 + $0xc] sm:$0xff]   ;;  %v2881_v13 = vrot.slane %v5376_v60, 5  ;;  %v3924_v19 = vrot.slane %v5364_v52, 9  ;;  %v997_v31 = vrot.slane %v5341_v26, 4 }
 0x1de   : > { %v1351_v1 = vld [vmem:[#allocation2 + $0x24] sm:$0x1]  ;;  %v1355_v7 = vsel %vm5278_vm8, %v1304_v61, %v1354_v54  ;;  %v1299_v8 = vshrl.u32 %v1276_v0, 16  ;;  %v1376_v9 = vld [vmem:[#allocation2 + $0x38] sm:$0x1]  ;;  %v979_v11 = vor.u32 %v977_v47, %v5378_v62  ;;  %v2368_v12 = vsel %vm5369_vm12, %v3893_v63, %v2367_v42  ;;  %v5408_v42 = vpop.f32.mrb[4].mxu0 }
 0x1df   : > { %v1434_v10 = vld [vmem:[#allocation2 + $0x38] sm:$0x1]  ;;  %1356 = vst [vmem:[#allocation2 + $0x30] sm:$0x1] %v1355_v7  ;;  %v1395_v14 = vshll.u32 %v1376_v9, 16  ;;  %v3901_v16 = vcombine.low %v2368_v12, %v2371_v4  ;;  %2021 = vrot.lane.b32.xlu1 %v4408_v5, %s4704_s12  ;;  %v1001_v34 = vrot.slane %v999_v2, 7  ;;  %v5415_v49 = vsel %vm5369_vm12, %v3924_v19, %v2881_v13 }
 0x1e0   : > { %v1375_v15 = vld [vmem:[#allocation2 + $0x2c] sm:$0x1]  ;;  %v5390_v18 = vld [vmem:[#allocation2 + $0x10] sm:$0xf]  ;;  %v1352_v20 = vsel %vm5278_vm8, %v1299_v8, %v1351_v1  ;;  %v1095_v24 = vsel %vm5264_vm6, %v979_v11, %v1094_v55  ;;  %v5397_v27 = vld [vmem:[#allocation2] sm:$0xe]  ;;  %v835_v9 = vadd.f32 %v5331_v6, %v5254_v57 }
 0x1e1   : > { %v1392_v21 = vshll.u32 %v1375_v15, 16  ;;  %v1431_v22 = vld [vmem:[#allocation2 + $0x2c] sm:$0x1]  ;;  %v1105_v25 = vld [vmem:[#allocation2 + $0x50] sm:$0x1]  ;;  %v1435_v30 = vsel %vm5310_vm9, %v1395_v14, %v1434_v10  ;;  %2440 = vrot.lane.b32.xlu0 %v3901_v16, %s4705_s21  ;;  %v1002_v39 = vshll.u32 %v5361_v46, 16 }
 0x1e2   : > { %v5399_v28 = vld [vmem:[#allocation2 + $0x4] sm:$0xf]  ;;  %1353 = vst [vmem:[#allocation2 + $0x24] sm:$0x1] %v1352_v20  ;;  %v1279_v32 = vld [vmem:[#allocation2 + $0x48] sm:$0x1] }
 0x1e3   : > { %v1360_v33 = vld [vmem:[#allocation2 + $0x48] sm:$0x1]  ;;  %1096 = vst [vmem:[#allocation2 + $0x3c] sm:$0xf] %v1095_v24  ;;  %1436 = vst [vmem:[#allocation2 + $0x38] sm:$0x1] %v1435_v30  ;;  %v1432_v37 = vsel %vm5310_vm9, %v1392_v21, %v1431_v22  ;;  %v1004_v46 = vor.u32 %v1002_v39, %v1001_v34 }
 0x1e4   : > { %v1314_v38 = vshrl.u32 %v1279_v32, 16  ;;  %v982_v40 = vshrl.u32 %v3997_v3, 16  ;;  %v2312_v41 = vld [vmem:[#allocation2 + $0x14] sm:$0x1]  ;;  %1433 = vst [vmem:[#allocation2 + $0x2c] sm:$0x1] %v1432_v37 }
 0x1e5   : > { %v980_v26 = vrot.slane %v5378_v62, 4  ;;  %v1006_v44 = vrot.slane %v1001_v34, 4  ;;  %v985_v45 = vshll.u32 %v3997_v3, 16  ;;  %v2310_v48 = vld [vmem:[#allocation2 + $0xc] sm:$0xe]  ;;  %v2360_v51 = vrot.slane %v5390_v18, 5 }
 0x1e6   : > { %v1361_v50 = vsel %vm5278_vm8, %v1314_v38, %v1360_v33  ;;  %v984_v47 = vrot.slane %v982_v40, 7  ;;  %v1803_v52 = vld [vmem:[#allocation2 + $0x8] sm:$0x1]  ;;  %v1098_v54 = vld [vmem:[#allocation2 + $0x44] sm:$0x1]  ;;  %v2363_v55 = vrot.slane %v2312_v41, 5  ;;  %v1005_v63 = vsel %vm5270_vm7, %v997_v31, %v1004_v46 }
 0x1e7   : > { %1362 = vst [vmem:[#allocation2 + $0x48] sm:$0x1] %v1361_v50  ;;  %v1106_v53 = vsel %vm5278_vm8, %v1006_v44, %v1105_v25  ;;  %v3860_v58 = vrot.slane %v5397_v27, 9  ;;  %v1854_v61 = vrot.slane %v5399_v28, 5  ;;  %v4195_v62 = vpop.f32.mrb[5].mxu0  ;;  %v3892_v2 = vrot.slane %v2310_v48, 9 }
 0x1e8   : > { %1107 = vst [vmem:[#allocation2 + $0x50] sm:$0x1] %v1106_v53  ;;  %v987_v0 = vor.u32 %v985_v45, %v984_v47  ;;  %v989_v1 = vrot.slane %v984_v47, 4  ;;  %v1525_v3 = vld [vmem:[#allocation2] sm:$0xf]  ;;  %v2362_v4 = vrot.slane %v2360_v51, 4  ;;  %v827_v18 = vadd.f32 %v5254_v57, %v5337_v17 }
 0x1e9   : > { %1104 = vst.msk [vmem:[#allocation2 + $0x4c] sm:$0xf] %vm636_vm2, %v1005_v63  ;;  %v1856_v5 = vrot.slane %v1854_v61, 4  ;;  %v1857_v7 = vrot.slane %v1803_v52, 5  ;;  %v2833_v8 = vld [vmem:[#allocation2 + $0x20] sm:$0x1]  ;;  %v2361_v15 = vsel %vm5369_vm12, %v3892_v2, %v2360_v51  ;;  %v1855_v20 = vsel %vm5369_vm12, %v3860_v58, %v1854_v61 }
 0x1ea   : > { %v1278_v10 = vld [vmem:[#allocation2 + $0x3c] sm:$0x1]  ;;  %v988_v12 = vsel %vm5270_vm7, %v980_v26, %v987_v0  ;;  %v1099_v14 = vsel %vm5278_vm8, %v989_v1, %v1098_v54  ;;  %v1526_v16 = vld [vmem:[#allocation2 + $0x4] sm:$0xf]  ;;  %v2364_v6 = vsel %vm5369_vm12, %v2362_v4, %v2363_v55  ;;  %v1527_v22 = vld [vmem:[#allocation2 + $0x8] sm:$0x1]  ;;  %v838_v48 = vadd.f32 %v5352_v35, %v5254_v57 }
 0x1eb   : > { %v1357_v11 = vld [vmem:[#allocation2 + $0x3c] sm:$0x1]  ;;  %v1309_v19 = vshrl.u32 %v1278_v10, 16  ;;  %1097 = vst.msk [vmem:[#allocation2 + $0x40] sm:$0xf] %vm636_vm2, %v988_v12  ;;  %v1858_v21 = vsel %vm5369_vm12, %v1856_v5, %v1857_v7  ;;  %v3900_v27 = vcombine.low %v2361_v15, %v2364_v6  ;;  %v2883_v28 = vrot.slane %v2881_v13, 4 }
 0x1ec   : > { %1100 = vst [vmem:[#allocation2 + $0x44] sm:$0x1] %v1099_v14  ;;  %v5444_v24 = vld [vmem:[#allocation2 + $0x30] sm:$0xe]  ;;  %v5446_v25 = vld [vmem:[#allocation2 + $0x24] sm:$0xe]  ;;  %v3868_v17 = vcombine.low %v1855_v20, %v1858_v21 }
 0x1ed   : > { %v2884_v30 = vrot.slane %v2833_v8, 5  ;;  %v5450_v31 = vld [vmem:[#allocation2 + $0x34] sm:$0xf]  ;;  %v1358_v32 = vsel %vm5278_vm8, %v1309_v19, %v1357_v11  ;;  %v1553_v33 = vshrl.u32 %v1525_v3, 16  ;;  %v1556_v34 = vshll.u32 %v1525_v3, 16  ;;  %2438 = vrot.lane.b32.xlu0 %v3900_v27, %s4705_s21 }
 0x1ee   : > { %v1562_v37 = vshll.u32 %v1526_v16, 16  ;;  %1359 = vst [vmem:[#allocation2 + $0x3c] sm:$0x1] %v1358_v32  ;;  %1932 = vrot.lane.b32.xlu1 %v3868_v17, %s4703_s23  ;;  %v1566_v39 = vshrl.u32 %v1526_v16, 16  ;;  %v1572_v60 = vshll.u32 %v1527_v22, 16  ;;  %v855_v13 = vmax.f32 %v835_v9, 0.0 }
 0x1ef   : > { %v2885_v38 = vsel %vm5369_vm12, %v2883_v28, %v2884_v30  ;;  %v1378_v40 = vld [vmem:[#allocation2 + $0x50] sm:$0x1]  ;;  %v1555_v44 = vrot.slane %v1553_v33, 4  ;;  %v1558_v45 = vrot.slane %v1556_v34, 5  ;;  %v3926_v50 = vrot.slane %v5444_v24, 9 }
 0x1f0   : > { %v1440_v41 = vld [vmem:[#allocation2 + $0x50] sm:$0x1]  ;;  %v3932_v26 = vcombine.low %v5415_v49, %v2885_v38  ;;  %v5462_v46 = vld [vmem:[#allocation2 + $0x28] sm:$0xf]  ;;  %v1401_v47 = vshll.u32 %v1378_v40, 16  ;;  %v1564_v51 = vrot.slane %v1562_v37, 5  ;;  %v4002_v58 = vpack.c.bf16 %v855_v13, %v855_v13 }
 0x1f1   : > { %v1568_v52 = vrot.slane %v1566_v39, 4  ;;  %v1807_v53 = vld [vmem:[#allocation2 + $0x18] sm:$0xe]  ;;  %v3925_v54 = vrot.slane %v5446_v25, 9  ;;  %v1559_v55 = vor.u32 %v1558_v45, %v1555_v44  ;;  %v853_v49 = vmax.f32 %v827_v18, 0.0  ;;  %v5484_v40 = vpop.f32.mrb[6].mxu0 }
 0x1f2   : > { %2967 = vst.msk [vmem:[#allocation3 + $0x10] sm:$0xff] %vm1516_vm13, %v3932_v26  ;;  %v2895_v61 = vrot.slane %v5450_v31, 5  ;;  %v1441_v57 = vsel %vm5310_vm9, %v1401_v47, %v1440_v41  ;;  %v1574_v0 = vrot.slane %v1572_v60, 5  ;;  %v2888_v1 = vrot.slane %v5462_v46, 5  ;;  %v1808_v11 = vld [vmem:[#allocation2 + $0x1c] sm:$0xf] }
 0x1f3   : > { %v1377_v35 = vld [vmem:[#allocation2 + $0x44] sm:$0x1]  ;;  %v1569_v63 = vor.u32 %v1568_v52, %v1564_v51  ;;  %1442 = vst [vmem:[#allocation2 + $0x50] sm:$0x1] %v1441_v57  ;;  %v1560_v4 = vrot.slane %v1559_v55, 4  ;;  %v1025_v5 = vshrl.u32 %v4002_v58, 16  ;;  %v4000_v9 = vpack.c.bf16 %v853_v49, %v853_v49 }
 0x1f4   : > { %v1437_v62 = vld [vmem:[#allocation2 + $0x44] sm:$0x1]  ;;  %v1398_v2 = vshll.u32 %v1377_v35, 16  ;;  %v1028_v8 = vshll.u32 %v4002_v58, 16  ;;  %v856_v10 = vmax.f32 %v838_v48, 0.0  ;;  %v3862_v19 = vrot.slane %v1807_v53, 9 }
 0x1f5   : > { %v1570_v7 = vrot.slane %v1569_v63, 4  ;;  %v1565_v14 = vsel %vm5472_vm0, %v1560_v4, %v1564_v51  ;;  %v1027_v15 = vrot.slane %v1025_v5, 7  ;;  %v1115_v16 = vld [vmem:[#allocation2 + $0x60] sm:$0xf]  ;;  %v1008_v20 = vshrl.u32 %v4000_v9, 16  ;;  %v4410_v57 = vld [vmem:[#allocation2 + $0x30] sm:$0xff]  }
 0x1f6   : > { %v1438_v12 = vsel %vm5310_vm9, %v1398_v2, %v1437_v62  ;;  %v1809_v18 = vld [vmem:[#allocation2 + $0x20] sm:$0x1]  ;;  %v1011_v21 = vshll.u32 %v4000_v9, 16  ;;  %v4003_v22 = vpack.c.bf16 %v856_v10, %v856_v10  ;;  %v1804_v27 = vld [vmem:[#allocation2 + $0xc] sm:$0xe]  ;;  %v1868_v33 = vrot.slane %v1808_v11, 5 }
 0x1f7   : > { %1439 = vst [vmem:[#allocation2 + $0x44] sm:$0x1] %v1438_v12  ;;  %v1575_v6 = vsel %vm5472_vm0, %v1570_v7, %v1574_v0  ;;  %v1805_v17 = vld [vmem:[#allocation2 + $0x10] sm:$0xf]  ;;  %v1030_v30 = vor.u32 %v1028_v8, %v1027_v15  ;;  %v1031_v32 = vrot.slane %v1027_v15, 4  ;;  %v5482_v38 = vrot.slane %v1008_v20, 7 }
 0x1f8   : > { %v3852_v28 = vcombine.low %v1565_v14, %v1575_v6  ;;  %v1806_v34 = vld [vmem:[#allocation2 + $0x14] sm:$0x1]  ;;  %v1033_v39 = vshrl.u32 %v4003_v22, 16  ;;  %v1036_v60 = vshll.u32 %v4003_v22, 16  ;;  %v1871_v13 = vrot.slane %v1809_v18, 5  ;;  %v4196_v14 = vpop.f32.mrb[7].mxu0 }
 0x1f9   : > { %v2977_v37 = vld [vmem:[#allocation3 + $0x10] sm:$0xff]  ;;  %v1116_v41 = vsel %vm5264_vm6, %v1030_v30, %v1115_v16  ;;  %v1108_v26 = vld [vmem:[#allocation2 + $0x54] sm:$0xf]  ;;  %v1869_v44 = vsel %vm5369_vm12, %v3862_v19, %v1868_v33  ;;  %v1870_v45 = vrot.slane %v1868_v33, 4  ;;  %v854_v48 = vmax.f32 %v5374_v59, 0.0 }
 0x1fa   : > { %4201 = vmatprep.mubr.msk.bf16.mxu0 %vm1516_vm13, %v2977_v37  ;;  %1768 = vrot.lane.b32.xlu0 %v3852_v28, %s4705_s21  ;;  %1117 = vst [vmem:[#allocation2 + $0x60] sm:$0xf] %v1116_v41  ;;  %v1013_v47 = vor.u32 %v1011_v21, %v5482_v38  ;;  %v1014_v51 = vrot.slane %v5482_v38, 4  ;;  %v1035_v52 = vrot.slane %v1033_v39, 7  ;;  %v1119_v53 = vld [vmem:[#allocation2 + $0x68] sm:$0x1] }
 0x1fb   : > { %v3861_v55 = vrot.slane %v1804_v27, 9  ;;  %v1872_v58 = vsel %vm5369_vm12, %v1870_v45, %v1871_v13  ;;  %v4001_v49 = vpack.c.bf16 %v854_v48, %v854_v48  ;;  %v1861_v35 = vrot.slane %v1805_v17, 5  ;;  %v2559_v63 = vld [vmem:[#allocation2 + $0x18] sm:$0xf]  ;;  %v5497_v0 = vld [vmem:[#allocation2 + $0x48] sm:$0xe] }
 0x1fc   : > { %v1864_v62 = vrot.slane %v1806_v34, 5  ;;  %v1109_v59 = vsel %vm5264_vm6, %v1013_v47, %v1108_v26  ;;  %v1038_v2 = vor.u32 %v1036_v60, %v1035_v52  ;;  %v1040_v4 = vrot.slane %v1035_v52, 4  ;;  %v2560_v7 = vld [vmem:[#allocation2 + $0x1c] sm:$0xf]  ;;  %v2561_v18 = vld [vmem:[#allocation2 + $0x20] sm:$0x1] }
 0x1fd   : > { %v3870_v5 = vcombine.low %v1869_v44, %v1872_v58  ;;  %v5501_v8 = vld [vmem:[#allocation2 + $0x3c] sm:$0xe]  ;;  %1110 = vst [vmem:[#allocation2 + $0x54] sm:$0xf] %v1109_v59  ;;  %v1016_v9 = vshrl.u32 %v4001_v49, 16  ;;  %v1019_v10 = vshll.u32 %v4001_v49, 16  ;;  %v1862_v11 = vsel %vm5369_vm12, %v3861_v55, %v1861_v35 }
 0x1fe   : > { %2531 = vrot.lane.b32.xlu0 %v4410_v57, %s4703_s23  ;;  %v1863_v12 = vrot.slane %v1861_v35, 4  ;;  %v1039_v15 = vsel %vm5270_vm7, %v1031_v32, %v1038_v2  ;;  %v1120_v16 = vsel %vm5278_vm8, %v1040_v4, %v1119_v53  ;;  %v2584_v19 = vshrl.u32 %v2559_v63, 16  ;;  %v1112_v21 = vld [vmem:[#allocation2 + $0x5c] sm:$0x1]  ;;  %v5518_v30 = vld [vmem:[#allocation2 + $0x40] sm:$0xf] }
 0x1ff   : > { %1936 = vrot.lane.b32.xlu1 %v3870_v5, %s4703_s23  ;;  %v2587_v6 = vshll.u32 %v2559_v63, 16  ;;  %1118 = vst.msk [vmem:[#allocation2 + $0x64] sm:$0xf] %vm636_vm2, %v1039_v15  ;;  %1121 = vst [vmem:[#allocation2 + $0x68] sm:$0x1] %v1120_v16  ;;  %v1018_v20 = vrot.slane %v1016_v9, 7  ;;  %v5557_v9 = vsel %vm5369_vm12, %v3925_v54, %v2888_v1 }
 0x200   : > { %v1865_v22 = vsel %vm5369_vm12, %v1863_v12, %v1864_v62  ;;  %v2593_v27 = vshll.u32 %v2560_v7, 16  ;;  %v2597_v17 = vshrl.u32 %v2560_v7, 16  ;;  %v5516_v28 = vrot.slane %v2888_v1, 4  ;;  %v4424_v37 = vld [vmem:[%s6305_s26 + $0x40] sm:$0xff]   ;;  %v5530_v44 = vld [vmem:[#allocation2 + $0x4c] sm:$0xf] }
 0x201   : > { %v3869_v32 = vcombine.low %v1862_v11, %v1865_v22  ;;  %v2586_v33 = vrot.slane %v2584_v19, 4  ;;  %v2589_v34 = vrot.slane %v2587_v6, 5  ;;  %v3928_v38 = vrot.slane %v5497_v0, 9  ;;  %v1281_v60 = vld [vmem:[#allocation2 + $0x60] sm:$0x1]  ;;  %v4412_v53 = vld [vmem:[#allocation2 + $0x30] sm:$0xff]   ;;  %4041 = vmatprep.subr.bf16.mxu1 %v4424_v37 }
 0x202   : > { %v3927_v39 = vrot.slane %v5501_v8, 9  ;;  %v1366_v13 = vld [vmem:[#allocation2 + $0x60] sm:$0x1]  ;;  %v1021_v41 = vor.u32 %v1019_v10, %v1018_v20  ;;  %v1324_v45 = vshrl.u32 %v1281_v60, 16  ;;  %v1023_v48 = vrot.slane %v1018_v20, 4  ;;  %v4426_v2 = vld [vmem:[%s6305_s26 + $0x48] sm:$0xff]  }
 0x203   : > { %v5528_v26 = vld [vmem:[%s6307_s4] ss:$0 sm:$0xff]  ;;  %1934 = vrot.lane.b32.xlu1 %v3869_v32, %s4703_s23  ;;  %v2590_v47 = vor.u32 %v2589_v34, %v2586_v33  ;;  %v2603_v52 = vshll.u32 %v2561_v18, 16  ;;  %v2902_v58 = vrot.slane %v5518_v30, 5  ;;  %v5537_v49 = vld [vmem:[#allocation2 + $0x60] sm:$0xe]  ;;  %v5565_v10 = vsel %vm5369_vm12, %v3926_v50, %v2895_v61 }
 0x204   : > { %v4425_v55 = vld [vmem:[%s6305_s26] sm:$0xff]   ;;  %v1022_v57 = vsel %vm5270_vm7, %v1014_v51, %v1021_v41  ;;  %v2595_v35 = vrot.slane %v2593_v27, 5  ;;  %v2599_v62 = vrot.slane %v2597_v17, 4  ;;  %v2836_v63 = vld [vmem:[#allocation2 + $0x2c] sm:$0x1]  ;;  %v1367_v4 = vsel %vm5278_vm8, %v1324_v45, %v1366_v13  ;;  %v4428_v45 = vld [vmem:[%s6305_s26 + $0x50] sm:$0xff]  }
 0x205   : > { %v2839_v59 = vld [vmem:[#allocation2 + $0x38] sm:$0x1]  ;;  %v1280_v5 = vld [vmem:[#allocation2 + $0x54] sm:$0x1]  ;;  %v5546_v8 = vld [vmem:[#allocation2 + $0x54] sm:$0xe]  ;;  %v1113_v51 = vsel %vm5278_vm8, %v1023_v48, %v1112_v21  ;;  %4042 = vmatpush3.bf16.msra.mxu1 %v4425_v55  ;;  %v5577_v18 = vsel %vm5369_vm12, %v3927_v39, %v2902_v58  ;;  %v5581_v19 = vadd.f32 %v5528_v26, %v5408_v42 }
 0x206   : > { %v1363_v7 = vld [vmem:[#allocation2 + $0x54] sm:$0x1]  ;;  %1111 = vst.msk [vmem:[#allocation2 + $0x58] sm:$0xf] %vm636_vm2, %v1022_v57  ;;  %v1531_v11 = vld [vmem:[#allocation2 + $0x18] sm:$0xf]  ;;  %v2600_v14 = vor.u32 %v2599_v62, %v2595_v35  ;;  %4043 = vmatprep.subr.bf16.mxu1 %v4426_v2 }
 0x207   : > { %v2909_v12 = vrot.slane %v5530_v44, 5  ;;  %1368 = vst [vmem:[#allocation2 + $0x60] sm:$0x1] %v1367_v4  ;;  %v1319_v46 = vshrl.u32 %v1280_v5, 16  ;;  %1114 = vst [vmem:[#allocation2 + $0x5c] sm:$0x1] %v1113_v51  ;;  %2027 = vrot.lane.b32.xlu1 %v4412_v53, %s4704_s12 }
 0x208   : > { %v2591_v25 = vrot.slane %v2590_v47, 4  ;;  %v1532_v15 = vld [vmem:[#allocation2 + $0x1c] sm:$0xf]  ;;  %v4427_v54 = vld [vmem:[%s6305_s26 + $0x8] sm:$0xff]   ;;  %v3930_v24 = vrot.slane %v5537_v49, 9  ;;  %v2605_v16 = vrot.slane %v2603_v52, 5 }
 0x209   : > { %v1380_v1 = vld [vmem:[#allocation2 + $0x68] sm:$0x1]  ;;  %v1364_v6 = vsel %vm5278_vm8, %v1319_v46, %v1363_v7  ;;  %v3929_v20 = vrot.slane %v5546_v8, 9  ;;  %v2601_v27 = vrot.slane %v2600_v14, 4  ;;  %v2891_v17 = vrot.slane %v2836_v63, 5  ;;  %4044 = vmatpush3.bf16.msra.mxu1 %v4427_v54  ;;  %v4429_v53 = vld [vmem:[%s6305_s26 + $0x10] sm:$0xff]  }
 0x20a   : > { %v1446_v50 = vld [vmem:[#allocation2 + $0x68] sm:$0x1]  ;;  %v1407_v21 = vshll.u32 %v1380_v1, 16  ;;  %v2596_v22 = vsel %vm5472_vm0, %v2591_v25, %v2595_v35  ;;  %1365 = vst [vmem:[#allocation2 + $0x54] sm:$0x1] %v1364_v6  ;;  %v2897_v32 = vrot.slane %v2895_v61, 4  ;;  %4045 = vmatprep.subr.bf16.mxu1 %v4428_v45 }
 0x20b   : > { %v2898_v33 = vrot.slane %v2839_v59, 5  ;;  %v1533_v34 = vld [vmem:[#allocation2 + $0x20] sm:$0x1]  ;;  %v5592_v37 = vld [vmem:[#allocation2 + $0x64] sm:$0xf]  ;;  %v1601_v39 = vshrl.u32 %v1531_v11, 16  ;;  %v2606_v31 = vsel %vm5472_vm0, %v2601_v27, %v2605_v16  ;;  %v2892_v61 = vsel %vm5369_vm12, %v5516_v28, %v2891_v17 }
 0x20c   : > { %v1447_v42 = vsel %vm5310_vm9, %v1407_v21, %v1446_v50  ;;  %v1604_v60 = vshll.u32 %v1531_v11, 16  ;;  %v1610_v13 = vshll.u32 %v1532_v15, 16  ;;  %v2319_v41 = vld [vmem:[#allocation2 + $0x30] sm:$0xe]  ;;  %v1614_v47 = vshrl.u32 %v1532_v15, 16  ;;  %v4430_v28 = vld [vmem:[%s6305_s26 + $0x58] sm:$0xff]  }
 0x20d   : > { %1448 = vst [vmem:[#allocation2 + $0x68] sm:$0x1] %v1447_v42  ;;  %v2899_v48 = vsel %vm5369_vm12, %v2897_v32, %v2898_v33  ;;  %v2320_v52 = vld [vmem:[#allocation2 + $0x34] sm:$0xf]  ;;  %v3916_v55 = vcombine.low %v2596_v22, %v2606_v31  ;;  %v3933_v57 = vcombine.low %v5557_v9, %v2892_v61  ;;  %v1603_v62 = vrot.slane %v1601_v39, 4  ;;  %4046 = vmatpush3.bf16.msra.mxu1 %v4429_v53  ;;  %v4414_v44 = vld [vmem:[#allocation2 + $0x24] sm:$0xff]  }
 0x20e   : > { %v3934_v35 = vcombine.low %v5565_v10, %v2899_v48  ;;  %v2321_v63 = vld [vmem:[#allocation2 + $0x38] sm:$0x1]  ;;  %v2923_v59 = vrot.slane %v5592_v37, 5  ;;  %v1379_v2 = vld [vmem:[#allocation2 + $0x5c] sm:$0x1]  ;;  %v1606_v5 = vrot.slane %v1604_v60, 5  ;;  %v5619_v9 = vsel %vm5369_vm12, %v3928_v38, %v2909_v12  ;;  %4047 = vmatprep.subr.bf16.mxu1 %v4430_v28 }
 0x20f   : > { %v1443_v4 = vld [vmem:[#allocation2 + $0x5c] sm:$0x1]  ;;  %v2316_v7 = vld [vmem:[#allocation2 + $0x24] sm:$0xe]  ;;  %v2317_v51 = vld [vmem:[#allocation2 + $0x28] sm:$0xf]  ;;  %v5623_v10 = vadd.f32 %v5528_v26, %v5484_v40  ;;  %2799 = vrot.lane.b32.xlu0 %v3916_v55, %s4704_s12 }
 0x210   : > { %v1404_v11 = vshll.u32 %v1379_v2, 16  ;;  %2968 = vst.msk [vmem:[#allocation3 + $0x28] sm:$0xff] %vm1516_vm13, %v3933_v57  ;;  %2969 = vst.msk [vmem:[#allocation3 + $0x40] sm:$0xff] %vm1516_vm13, %v3934_v35  ;;  %v1612_v46 = vrot.slane %v1610_v13, 5  ;;  %v1616_v25 = vrot.slane %v1614_v47, 4  ;;  %v1620_v14 = vshll.u32 %v1533_v34, 16 }
 0x211   : > { %v2842_v0 = vld [vmem:[#allocation2 + $0x44] sm:$0x1]  ;;  %v1607_v15 = vor.u32 %v1606_v5, %v1603_v62  ;;  %v3895_v38 = vrot.slane %v2319_v41, 9  ;;  %v2381_v54 = vrot.slane %v2320_v52, 5  ;;  %v2384_v1 = vrot.slane %v2321_v63, 5 }
 0x212   : > { %v2318_v50 = vld [vmem:[#allocation2 + $0x2c] sm:$0x1]  ;;  %v1444_v40 = vsel %vm5310_vm9, %v1404_v11, %v1443_v4  ;;  %v4413_v26 = vld [vmem:[#allocation2 + $0x24] sm:$0xff]   ;;  %v1617_v16 = vor.u32 %v1616_v25, %v1612_v46  ;;  %v1622_v6 = vrot.slane %v1620_v14, 5  ;;  %v2904_v21 = vrot.slane %v2902_v58, 4 }
 0x213   : > { %1445 = vst [vmem:[#allocation2 + $0x5c] sm:$0x1] %v1444_v40  ;;  %v1608_v22 = vrot.slane %v1607_v15, 4  ;;  %v2382_v27 = vsel %vm5369_vm12, %v3895_v38, %v2381_v54  ;;  %v2383_v17 = vrot.slane %v2381_v54, 4  ;;  %v2905_v32 = vrot.slane %v2842_v0, 5  ;;  %2529 = vrot.lane.b32.xlu0 %v4413_v26, %s4703_s23 }
 0x214   : > { %v2845_v33 = vld [vmem:[#allocation2 + $0x50] sm:$0x1]  ;;  %v1528_v34 = vld [vmem:[#allocation2 + $0xc] sm:$0xf]  ;;  %v1618_v42 = vrot.slane %v1617_v16, 4  ;;  %v3894_v39 = vrot.slane %v2316_v7, 9 }
 0x215   : > { %v2374_v60 = vrot.slane %v2317_v51, 5  ;;  %v2377_v13 = vrot.slane %v2318_v50, 5  ;;  %v1529_v41 = vld [vmem:[#allocation2 + $0x10] sm:$0xf]  ;;  %v1613_v30 = vsel %vm5472_vm0, %v1608_v22, %v1612_v46  ;;  %v2385_v58 = vsel %vm5369_vm12, %v2383_v17, %v2384_v1  ;;  %v1530_v63 = vld [vmem:[#allocation2 + $0x14] sm:$0x1] }
 0x216   : > { %v2906_v45 = vsel %vm5369_vm12, %v2904_v21, %v2905_v32  ;;  %v1237_v31 = vmax.f32 %v5581_v19, 0.0  ;;  %v1623_v61 = vsel %vm5472_vm0, %v1618_v42, %v1622_v6  ;;  %v3903_v48 = vcombine.low %v2382_v27, %v2385_v58  ;;  %v5652_v5 = vld [vmem:[#allocation2 + $0x58] sm:$0xf]  ;;  %v1266_v25 = vld [vmem:[#allocation2 + $0x6c] sm:$0xf] }
 0x217   : > { %v3935_v47 = vcombine.low %v5577_v18, %v2906_v45  ;;  %v2375_v52 = vsel %vm5369_vm12, %v3894_v39, %v2374_v60  ;;  %v2980_v53 = vld [vmem:[#allocation3 + $0x28] sm:$0xff]  ;;  %v3854_v55 = vcombine.low %v1613_v30, %v1623_v61  ;;  %v2376_v57 = vrot.slane %v2374_v60, 4  ;;  %v2983_v19 = vld [vmem:[#allocation3 + $0x40] sm:$0xff]  ;;  %v1813_v38 = vld [vmem:[#allocation2 + $0x30] sm:$0xe] }
 0x218   : > { %v4004_v35 = vpack.c.bf16 %v1237_v31, %v1237_v31  ;;  %v2911_v62 = vrot.slane %v2909_v12, 4  ;;  %4202 = vmatmul.mubr.msk.bf16.vlgmr.msra.gmra.mrb[8].mxu0 %vm1516_vm13, %v2980_v53  ;;  %2444 = vrot.lane.b32.xlu0 %v3903_v48, %s4705_s21  ;;  %v2912_v28 = vrot.slane %v2845_v33, 5  ;;  %v1577_v18 = vshrl.u32 %v1528_v34, 16  ;;  %v1814_v54 = vld [vmem:[#allocation2 + $0x34] sm:$0xf]  ;;  %v4431_v6 = vld [vmem:[%s6305_s26 + $0x18] sm:$0xff]  }
 0x219   : > { %2970 = vst.msk [vmem:[#allocation3 + $0x58] sm:$0xff] %vm1516_vm13, %v3935_v47  ;;  %v1580_v2 = vshll.u32 %v1528_v34, 16  ;;  %v1586_v4 = vshll.u32 %v1529_v41, 16  ;;  %4205 = vmatprep.mubr.msk.bf16.mxu0 %vm1516_vm13, %v2983_v19  ;;  %1772 = vrot.lane.b32.xlu1 %v3854_v55, %s4705_s21  ;;  %v2378_v12 = vsel %vm5369_vm12, %v2376_v57, %v2377_v13  ;;  %v1590_v11 = vshrl.u32 %v1529_v41, 16  ;;  %v1815_v16 = vld [vmem:[#allocation2 + $0x38] sm:$0x1] }
 0x21a   : > { %v1246_v7 = vshrl.u32 %v4004_v35, 16  ;;  %v1249_v51 = vshll.u32 %v4004_v35, 16  ;;  %v3902_v46 = vcombine.low %v2375_v52, %v2378_v12  ;;  %v2913_v14 = vsel %vm5369_vm12, %v2911_v62, %v2912_v28  ;;  %v4415_v17 = vld [vmem:[#allocation2 + $0x48] sm:$0xff]   ;;  %v4432_v33 = vld [vmem:[#allocation2] sm:$0xff]   ;;  %v2565_v60 = vld [vmem:[#allocation2 + $0x30] sm:$0xf]  ;;  %4048 = vmatpush3.bf16.msra.mxu1 %v4431_v6 }
 0x21b   : > { %v1579_v0 = vrot.slane %v1577_v18, 4  ;;  %v1582_v15 = vrot.slane %v1580_v2, 5  ;;  %v3936_v50 = vcombine.low %v5619_v9, %v2913_v14  ;;  %v1588_v40 = vrot.slane %v1586_v4, 5  ;;  %v2566_v13 = vld [vmem:[#allocation2 + $0x34] sm:$0xf]  ;;  %1517 = vst.msk [vmem:[#allocation3] sm:$0xff] %vm1516_vm13, %v4432_v33 }
 0x21c   : > { %v5660_v1 = vrot.slane %v1246_v7, 7  ;;  %v1592_v26 = vrot.slane %v1590_v11, 4  ;;  %v2916_v21 = vrot.slane %v5652_v5, 5  ;;  %2442 = vrot.lane.b32.xlu0 %v3902_v46, %s4705_s21  ;;  %v1596_v27 = vshll.u32 %v1530_v63, 16  ;;  %v2567_v31 = vld [vmem:[#allocation2 + $0x38] sm:$0x1] }
 0x21d   : > { %v1583_v22 = vor.u32 %v1582_v15, %v1579_v0  ;;  %v1238_v32 = vmax.f32 %v5623_v10, 0.0  ;;  %2025 = vrot.lane.b32.xlu1 %v4414_v44, %s4704_s12  ;;  %2971 = vst.msk [vmem:[#allocation3 + $0x70] sm:$0xff] %vm1516_vm13, %v3936_v50  ;;  %v3864_v42 = vrot.slane %v1813_v38, 9  ;;  %v1882_v39 = vrot.slane %v1814_v54, 5  ;;  %v4433_v10 = vld [vmem:[%s6305_s26 + $0x60] sm:$0xff]   ;;  %v4436_v33 = vld [vmem:[%s6305_s26 + $0x28] sm:$0xff]  }
 0x21e   : > { %v1251_v9 = vor.u32 %v1249_v51, %v5660_v1  ;;  %v1593_v34 = vor.u32 %v1592_v26, %v1588_v40  ;;  %v1598_v30 = vrot.slane %v1596_v27, 5  ;;  %v1885_v45 = vrot.slane %v1815_v16, 5  ;;  %v4434_v55 = vld [vmem:[%s6305_s26 + $0x20] sm:$0xff]   ;;  %v1811_v44 = vld [vmem:[#allocation2 + $0x28] sm:$0xf]  ;;  %4049 = vmatprep.subr.bf16.mxu1 %v4433_v10 }
 0x21f   : > { %v1584_v41 = vrot.slane %v1583_v22, 4  ;;  %v4005_v58 = vpack.c.bf16 %v1238_v32, %v1238_v32  ;;  %v1252_v48 = vrot.slane %v5660_v1, 4  ;;  %v1884_v53 = vrot.slane %v1882_v39, 4  ;;  %v1810_v19 = vld [vmem:[#allocation2 + $0x24] sm:$0xe]  ;;  %4050 = vmatpush3.bf16.msra.mxu1 %v4434_v55 }
 0x220   : > { %v2986_v61 = vld [vmem:[#allocation3 + $0x58] sm:$0xff]  ;;  %v1267_v47 = vsel %vm5264_vm6, %v1251_v9, %v1266_v25  ;;  %v1594_v52 = vrot.slane %v1593_v34, 4  ;;  %2535 = vrot.lane.b32.xlu0 %v4415_v17, %s4703_s23  ;;  %v2632_v63 = vshrl.u32 %v2565_v60, 16  ;;  %v1883_v18 = vsel %vm5369_vm12, %v3864_v42, %v1882_v39  ;;  %v1812_v46 = vld [vmem:[#allocation2 + $0x2c] sm:$0x1]  ;;  %4051 = vmatprep.subr.bf16.mxu1 %v4435_v23 }
 0x221   : > { %4206 = vmatmul.mubr.msk.bf16.gmra.mrb[12].mxu0 %vm1516_vm13, %v2986_v61  ;;  %1268 = vst [vmem:[#allocation2 + $0x6c] sm:$0xf] %v1267_v47  ;;  %v1589_v57 = vsel %vm5472_vm0, %v1584_v41, %v1588_v40  ;;  %v1254_v35 = vshrl.u32 %v4005_v58, 16  ;;  %v1257_v62 = vshll.u32 %v4005_v58, 16  ;;  %v2635_v2 = vshll.u32 %v2565_v60, 16 }
 0x222   : > { %v1599_v28 = vsel %vm5472_vm0, %v1594_v52, %v1598_v30  ;;  %v2641_v4 = vshll.u32 %v2566_v13, 16  ;;  %v1886_v51 = vsel %vm5369_vm12, %v1884_v53, %v1885_v45  ;;  %v2634_v11 = vrot.slane %v2632_v63, 4  ;;  %v1270_v25 = vld [vmem:[#allocation2 + $0x74] sm:$0x1]  ;;  %v1537_v16 = vld [vmem:[#allocation2 + $0x30] sm:$0xf] }
 0x223   : > { %v3853_v12 = vcombine.low %v1589_v57, %v1599_v28  ;;  %v1256_v7 = vrot.slane %v1254_v35, 7  ;;  %v2637_v14 = vrot.slane %v2635_v2, 5  ;;  %v2645_v15 = vshrl.u32 %v2566_v13, 16  ;;  %v1538_v32 = vld [vmem:[#allocation2 + $0x34] sm:$0xf]  ;;  %4052 = vmatpush3.bf16.msra.mxu1 %v4436_v33 }
 0x224   : > { %v2643_v0 = vrot.slane %v2641_v4, 5  ;;  %v2651_v38 = vshll.u32 %v2567_v31, 16  ;;  %v2989_v54 = vld [vmem:[#allocation3 + $0x70] sm:$0xff]  ;;  %v3863_v40 = vrot.slane %v1810_v19, 9  ;;  %v1875_v26 = vrot.slane %v1811_v44, 5  ;;  %v4437_v13 = vld [vmem:[%s6305_s26 + $0x70] sm:$0xff]  }
 0x225   : > { %1770 = vrot.lane.b32.xlu1 %v3853_v12, %s4705_s21  ;;  %v1259_v1 = vor.u32 %v1257_v62, %v1256_v7  ;;  %v1261_v50 = vrot.slane %v1256_v7, 4  ;;  %4209 = vmatprep.mubr.msk.bf16.mxu0 %vm1516_vm13, %v2989_v54  ;;  %v3872_v6 = vcombine.low %v1883_v18, %v1886_v51  ;;  %v2638_v22 = vor.u32 %v2637_v14, %v2634_v11  ;;  %v1539_v60 = vld [vmem:[#allocation2 + $0x38] sm:$0x1]  ;;  %v2562_v47 = vld [vmem:[#allocation2 + $0x24] sm:$0xf]  ;;  %v4438_v52 = vld [vmem:[%s6305_s26 + $0x30] sm:$0xff]  }
 0x226   : > { %v2647_v27 = vrot.slane %v2645_v15, 4  ;;  %v1878_v17 = vrot.slane %v1812_v46, 5  ;;  %v2653_v42 = vrot.slane %v2651_v38, 5  ;;  %v1877_v39 = vrot.slane %v1875_v26, 4  ;;  %4053 = vmatprep.subr.bf16.mxu1 %v4437_v13  ;;  %v4439_v62 = vld [vmem:[%s6305_s26 + $0x78] sm:$0xff]  }
 0x227   : > { %v1260_v9 = vsel %vm5270_vm7, %v1252_v48, %v1259_v1  ;;  %v1271_v34 = vsel %vm5278_vm8, %v1261_v50, %v1270_v25  ;;  %v1876_v36 = vsel %vm5369_vm12, %v3863_v40, %v1875_v26  ;;  %v2639_v61 = vrot.slane %v2638_v22, 4  ;;  %v2563_v18 = vld [vmem:[#allocation2 + $0x28] sm:$0xf]  ;;  %4054 = vmatpush3.bf16.msra.mxu1 %v4438_v52  ;;  %v4440_v7 = vld [vmem:[%s6305_s26 + $0x38] sm:$0xff]   ;;  %v2564_v46 = vld [vmem:[#allocation2 + $0x2c] sm:$0x1] }
 0x228   : > { %v1282_v41 = vld [vmem:[#allocation2 + $0x6c] sm:$0x1]  ;;  %v5707_v58 = vld [vmem:[#allocation2 + $0x6c] sm:$0xe]  ;;  %1269 = vst.msk [vmem:[#allocation2 + $0x70] sm:$0xf] %vm636_vm2, %v1260_v9  ;;  %v2648_v45 = vor.u32 %v2647_v27, %v2643_v0  ;;  %v1879_v48 = vsel %vm5369_vm12, %v1877_v39, %v1878_v17  ;;  %4055 = vmatprep.subr.bf16.mxu1 %v4439_v62  ;;  %v5749_v33 = vsel %vm5369_vm12, %v3930_v24, %v2923_v59 }
 0x229   : > { %v1369_v30 = vld [vmem:[#allocation2 + $0x6c] sm:$0x1]  ;;  %1272 = vst [vmem:[#allocation2 + $0x74] sm:$0x1] %v1271_v34  ;;  %v1329_v31 = vshrl.u32 %v1282_v41, 16  ;;  %v3931_v10 = vrot.slane %v5707_v58, 9  ;;  %1940 = vrot.lane.b32.xlu1 %v3872_v6, %s4703_s23  ;;  %v3871_v55 = vcombine.low %v1876_v36, %v1879_v48  ;;  %v2644_v19 = vsel %vm5472_vm0, %v2639_v61, %v2643_v0 }
 0x22a   : > { %v2649_v53 = vrot.slane %v2648_v45, 4  ;;  %v1649_v57 = vshrl.u32 %v1537_v16, 16  ;;  %v1652_v35 = vshll.u32 %v1537_v16, 16  ;;  %v1658_v23 = vshll.u32 %v1538_v32, 16  ;;  %v2325_v14 = vld [vmem:[#allocation2 + $0x48] sm:$0xe] }
 0x22b   : > { %v1370_v63 = vsel %vm5278_vm8, %v1329_v31, %v1369_v30  ;;  %v1662_v28 = vshrl.u32 %v1538_v32, 16  ;;  %v1668_v12 = vshll.u32 %v1539_v60, 16  ;;  %v2608_v25 = vshrl.u32 %v2562_v47, 16  ;;  %v4441_v0 = vld [vmem:[#allocation2 + $0x18] sm:$0xff]   ;;  %v2326_v50 = vld [vmem:[#allocation2 + $0x4c] sm:$0xf]  ;;  %4056 = vmatpush3.bf16.msra.mxu1 %v4440_v7 }
 0x22c   : > { %1371 = vst [vmem:[#allocation2 + $0x6c] sm:$0x1] %v1370_v63  ;;  %v2654_v2 = vsel %vm5472_vm0, %v2649_v53, %v2653_v42  ;;  %v1651_v4 = vrot.slane %v1649_v57, 4  ;;  %v1654_v44 = vrot.slane %v1652_v35, 5  ;;  %v1660_v51 = vrot.slane %v1658_v23, 5  ;;  %v4442_v40 = vld [vmem:[#allocation2 + $0xc] sm:$0xff]  }
 0x22d   : > { %v3918_v43 = vcombine.low %v2644_v19, %v2654_v2  ;;  %1938 = vrot.lane.b32.xlu1 %v3871_v55, %s4703_s23  ;;  %v1664_v11 = vrot.slane %v1662_v28, 4  ;;  %v1670_v38 = vrot.slane %v1668_v12, 5  ;;  %v2611_v54 = vshll.u32 %v2562_v47, 16  ;;  %v4416_v22 = vld [vmem:[#allocation2 + $0x3c] sm:$0xff]   ;;  %v2327_v17 = vld [vmem:[#allocation2 + $0x50] sm:$0x1] }
 0x22e   : > { %v1655_v15 = vor.u32 %v1654_v44, %v1651_v4  ;;  %v2617_v1 = vshll.u32 %v2563_v18, 16  ;;  %v5741_v32 = vsel %vm5369_vm12, %v3929_v20, %v2916_v21  ;;  %1519 = vst.msk [vmem:[#allocation3 + $0x30] sm:$0xff] %vm1516_vm13, %v4441_v0  ;;  %v2610_v39 = vrot.slane %v2608_v25, 4  ;;  %1518 = vst.msk [vmem:[#allocation3 + $0x18] sm:$0xff] %vm1516_vm13, %v4442_v40  ;;  %v1534_v41 = vld [vmem:[#allocation2 + $0x24] sm:$0xf] }
 0x22f   : > { %v5732_v6 = vld [vmem:[#allocation2 + $0x70] sm:$0xf]  ;;  %2803 = vrot.lane.b32.xlu0 %v3918_v43, %s4704_s12  ;;  %v1665_v27 = vor.u32 %v1664_v11, %v1660_v51  ;;  %v2613_v20 = vrot.slane %v2611_v54, 5  ;;  %v2621_v13 = vshrl.u32 %v2563_v18, 16  ;;  %v2627_v30 = vshll.u32 %v2564_v46, 16  ;;  %v4417_v18 = vld [vmem:[#allocation2 + $0x3c] sm:$0xff]  }
 0x230   : > { %v1381_v26 = vld [vmem:[#allocation2 + $0x74] sm:$0x1]  ;;  %v2930_v34 = vrot.slane %v5732_v6, 5  ;;  %v1656_v42 = vrot.slane %v1655_v15, 4  ;;  %v2619_v60 = vrot.slane %v2617_v1, 5  ;;  %v3897_v45 = vrot.slane %v2325_v14, 9 }
 0x231   : > { %v1449_v16 = vld [vmem:[#allocation2 + $0x74] sm:$0x1]  ;;  %v1410_v9 = vshll.u32 %v1381_v26, 16  ;;  %v1666_v8 = vrot.slane %v1665_v27, 4  ;;  %v2614_v31 = vor.u32 %v2613_v20, %v2610_v39  ;;  %v2623_v61 = vrot.slane %v2621_v13, 4  ;;  %v4445_v20 = vld [vmem:[#allocation2 + $0x48] sm:$0xff]  }
 0x232   : > { %v1661_v24 = vsel %vm5472_vm0, %v1656_v42, %v1660_v51  ;;  %v2395_v48 = vrot.slane %v2326_v50, 5  ;;  %v1535_v47 = vld [vmem:[#allocation2 + $0x28] sm:$0xf]  ;;  %v1536_v52 = vld [vmem:[#allocation2 + $0x2c] sm:$0x1]  ;;  %v2629_v55 = vrot.slane %v2627_v30, 5 }
 0x233   : > { %v1450_v49 = vsel %vm5310_vm9, %v1410_v9, %v1449_v16  ;;  %2533 = vrot.lane.b32.xlu0 %v4416_v22, %s4703_s23  ;;  %v1671_v36 = vsel %vm5472_vm0, %v1666_v8, %v1670_v38  ;;  %v2398_v29 = vrot.slane %v2327_v17, 5  ;;  %v1625_v57 = vshrl.u32 %v1534_v41, 16  ;;  %v2322_v35 = vld [vmem:[#allocation2 + $0x3c] sm:$0xe]  ;;  %v2323_v62 = vld [vmem:[#allocation2 + $0x40] sm:$0xf] }
 0x234   : > { %1451 = vst [vmem:[#allocation2 + $0x74] sm:$0x1] %v1450_v49  ;;  %v3856_v53 = vcombine.low %v1661_v24, %v1671_v36  ;;  %v2615_v63 = vrot.slane %v2614_v31, 4  ;;  %v2624_v19 = vor.u32 %v2623_v61, %v2619_v60  ;;  %v5763_v23 = vsel %vm5369_vm12, %v3897_v45, %v2395_v48  ;;  %v2324_v7 = vld [vmem:[#allocation2 + $0x44] sm:$0x1]  ;;  %v4443_v50 = vld [vmem:[#allocation2 + $0x30] sm:$0xff]  }
 0x235   : > { %v2397_v28 = vrot.slane %v2395_v48, 4  ;;  %v1627_v2 = vrot.slane %v1625_v57, 4  ;;  %v1628_v4 = vshll.u32 %v1534_v41, 16  ;;  %v1634_v44 = vshll.u32 %v1535_v47, 16  ;;  %v1816_v25 = vld [vmem:[#allocation2 + $0x3c] sm:$0xe] }
 0x236   : > { %1776 = vrot.lane.b32.xlu1 %v3856_v53, %s4705_s21  ;;  %v1638_v12 = vshrl.u32 %v1535_v47, 16  ;;  %v2620_v43 = vsel %vm5472_vm0, %v2615_v63, %v2619_v60  ;;  %v2625_v51 = vrot.slane %v2624_v19, 4  ;;  %v1644_v46 = vshll.u32 %v1536_v52, 16  ;;  %v1817_v14 = vld [vmem:[#allocation2 + $0x40] sm:$0xf]  ;;  %v4444_v17 = vld [vmem:[#allocation2 + $0x24] sm:$0xff]  }
 0x237   : > { %v2399_v11 = vsel %vm5369_vm12, %v2397_v28, %v2398_v29  ;;  %v1630_v15 = vrot.slane %v1628_v4, 5  ;;  %v1636_v38 = vrot.slane %v1634_v44, 5  ;;  %v1818_v1 = vld [vmem:[#allocation2 + $0x44] sm:$0x1]  ;;  %v3896_v16 = vrot.slane %v2322_v35, 9  ;;  %1521 = vst.msk [vmem:[#allocation3 + $0x60] sm:$0xff] %vm1516_vm13, %v4443_v50 }
 0x238   : > { %v3905_v0 = vcombine.low %v5763_v23, %v2399_v11  ;;  %v1640_v54 = vrot.slane %v1638_v12, 4  ;;  %v2630_v40 = vsel %vm5472_vm0, %v2625_v51, %v2629_v55  ;;  %v1646_v26 = vrot.slane %v1644_v46, 5  ;;  %v2571_v27 = vld [vmem:[#allocation2 + $0x48] sm:$0xf]  ;;  %1520 = vst.msk [vmem:[#allocation3 + $0x48] sm:$0xff] %vm1516_vm13, %v4444_v17  ;;  %v4446_v24 = vld [vmem:[#allocation2 + $0x3c] sm:$0xff]  }
 0x239   : > { %v2388_v22 = vrot.slane %v2323_v62, 5  ;;  %v3917_v9 = vcombine.low %v2620_v43, %v2630_v40  ;;  %v1631_v42 = vor.u32 %v1630_v15, %v1627_v2  ;;  %v2391_v8 = vrot.slane %v2324_v7, 5  ;;  %v2572_v31 = vld [vmem:[#allocation2 + $0x4c] sm:$0xf]  ;;  %1523 = vst.msk [vmem:[#allocation3 + $0x90] sm:$0xff] %vm1516_vm13, %v4445_v20  ;;  %1522 = vst.msk [vmem:[#allocation3 + $0x78] sm:$0xff] %vm1516_vm13, %v4446_v24 }
 0x23a   : > { %2029 = vrot.lane.b32.xlu1 %v4417_v18, %s4704_s12  ;;  %v1641_v39 = vor.u32 %v1640_v54, %v1636_v38  ;;  %v3865_v41 = vrot.slane %v1816_v25, 9  ;;  %v1889_v49 = vrot.slane %v1817_v14, 5  ;;  %v1892_v36 = vrot.slane %v1818_v1, 5  ;;  %v2573_v53 = vld [vmem:[#allocation2 + $0x50] sm:$0x1]  ;;  %v4447_v23 = vld [vmem:[#allocation2 + $0x54] sm:$0xff]  }
 0x23b   : > { %v2389_v60 = vsel %vm5369_vm12, %v3896_v16, %v2388_v22  ;;  %v2390_v13 = vrot.slane %v2388_v22, 4  ;;  %2801 = vrot.lane.b32.xlu0 %v3917_v9, %s4704_s12  ;;  %v1632_v30 = vrot.slane %v1631_v42, 4  ;;  %v2680_v61 = vshrl.u32 %v2571_v27, 16  ;;  %v2848_v63 = vld [vmem:[#allocation2 + $0x5c] sm:$0x1]  ;;  %1524 = vst.msk [vmem:[#allocation3 + $0xa8] sm:$0xff] %vm1516_vm13, %v4447_v23 }
 0x23c   : > { %v1642_v45 = vrot.slane %v1641_v39, 4  ;;  %v1890_v47 = vsel %vm5369_vm12, %v3865_v41, %v1889_v49  ;;  %v1891_v52 = vrot.slane %v1889_v49, 4  ;;  %v2683_v55 = vshll.u32 %v2571_v27, 16  ;;  %v2568_v19 = vld [vmem:[#allocation2 + $0x3c] sm:$0xf] }
 0x23d   : > { %v2392_v48 = vsel %vm5369_vm12, %v2390_v13, %v2391_v8  ;;  %v1637_v29 = vsel %vm5472_vm0, %v1632_v30, %v1636_v38  ;;  %v2682_v62 = vrot.slane %v2680_v61, 4  ;;  %v2689_v4 = vshll.u32 %v2572_v31, 16  ;;  %v2569_v44 = vld [vmem:[#allocation2 + $0x40] sm:$0xf]  ;;  %v2570_v11 = vld [vmem:[#allocation2 + $0x44] sm:$0x1] }
 0x23e   : > { %v1647_v57 = vsel %vm5472_vm0, %v1642_v45, %v1646_v26  ;;  %v3904_v35 = vcombine.low %v2389_v60, %v2392_v48  ;;  %v1893_v18 = vsel %vm5369_vm12, %v1891_v52, %v1892_v36  ;;  %v2685_v2 = vrot.slane %v2683_v55, 5  ;;  %v2851_v38 = vld [vmem:[#allocation2 + $0x68] sm:$0x1]  ;;  %v1544_v42 = vld [vmem:[#allocation2 + $0x4c] sm:$0xf] }
 0x23f   : > { %v3855_v28 = vcombine.low %v1637_v29, %v1647_v57  ;;  %2448 = vrot.lane.b32.xlu0 %v3905_v0, %s4705_s21  ;;  %v3873_v12 = vcombine.low %v1890_v47, %v1893_v18  ;;  %v2693_v7 = vshrl.u32 %v2572_v31, 16  ;;  %v2699_v43 = vshll.u32 %v2573_v53, 16  ;;  %v1543_v54 = vld [vmem:[#allocation2 + $0x48] sm:$0xf]  ;;  %v1545_v36 = vld [vmem:[#allocation2 + $0x50] sm:$0x1] }
 0x240   : > { %v2918_v51 = vrot.slane %v2916_v21, 4  ;;  %v2686_v46 = vor.u32 %v2685_v2, %v2682_v62  ;;  %v2691_v25 = vrot.slane %v2689_v4, 5  ;;  %v2919_v14 = vrot.slane %v2848_v63, 5  ;;  %v1540_v52 = vld [vmem:[#allocation2 + $0x3c] sm:$0xf] }
 0x241   : > { %1774 = vrot.lane.b32.xlu1 %v3855_v28, %s4705_s21  ;;  %v2656_v15 = vshrl.u32 %v2568_v19, 16  ;;  %v2695_v1 = vrot.slane %v2693_v7, 4  ;;  %v2701_v50 = vrot.slane %v2699_v43, 5  ;;  %v2659_v0 = vshll.u32 %v2568_v19, 16  ;;  %v1541_v53 = vld [vmem:[#allocation2 + $0x40] sm:$0xf] }
 0x242   : > { %v2665_v40 = vshll.u32 %v2569_v44, 16  ;;  %v2687_v26 = vrot.slane %v2686_v46, 4  ;;  %v2920_v5 = vsel %vm5369_vm12, %v2918_v51, %v2919_v14  ;;  %v2669_v16 = vshrl.u32 %v2569_v44, 16  ;;  %v1542_v62 = vld [vmem:[#allocation2 + $0x44] sm:$0x1] }
 0x243   : > { %v2658_v21 = vrot.slane %v2656_v15, 4  ;;  %2446 = vrot.lane.b32.xlu0 %v3904_v35, %s4705_s21  ;;  %v2696_v22 = vor.u32 %v2695_v1, %v2691_v25  ;;  %v3937_v27 = vcombine.low %v5741_v32, %v2920_v5  ;;  %v2661_v17 = vrot.slane %v2659_v0, 5  ;;  %v4418_v32 = vld [vmem:[#allocation2 + $0x48] sm:$0xff]   ;;  %v1821_v7 = vld [vmem:[#allocation2 + $0x50] sm:$0x1] }
 0x244   : > { %v2667_v9 = vrot.slane %v2665_v40, 5  ;;  %v2692_v39 = vsel %vm5472_vm0, %v2687_v26, %v2691_v25  ;;  %v2671_v8 = vrot.slane %v2669_v16, 4  ;;  %v2675_v20 = vshll.u32 %v2570_v11, 16  ;;  %v1819_v63 = vld [vmem:[#allocation2 + $0x48] sm:$0xe] }
 0x245   : > { %1942 = vrot.lane.b32.xlu1 %v3873_v12, %s4703_s23  ;;  %v2925_v60 = vrot.slane %v2923_v59, 4  ;;  %v2697_v13 = vrot.slane %v2696_v22, 4  ;;  %2972 = vst.msk [vmem:[#allocation3 + $0x88] sm:$0xff] %vm1516_vm13, %v3937_v27  ;;  %v2662_v41 = vor.u32 %v2661_v17, %v2658_v21  ;;  %v2926_v49 = vrot.slane %v2851_v38, 5  ;;  %v1820_v2 = vld [vmem:[#allocation2 + $0x4c] sm:$0xf] }
 0x246   : > { %v1697_v24 = vshrl.u32 %v1543_v54, 16  ;;  %v2672_v30 = vor.u32 %v2671_v8, %v2667_v9  ;;  %v2677_v45 = vrot.slane %v2675_v20, 5  ;;  %v1700_v31 = vshll.u32 %v1543_v54, 16  ;;  %v2328_v43 = vld [vmem:[#allocation2 + $0x54] sm:$0xe] }
 0x247   : > { %v1706_v61 = vshll.u32 %v1544_v42, 16  ;;  %v2702_v48 = vsel %vm5472_vm0, %v2697_v13, %v2701_v50  ;;  %v2663_v47 = vrot.slane %v2662_v41, 4  ;;  %v2927_v37 = vsel %vm5369_vm12, %v2925_v60, %v2926_v49  ;;  %v2329_v50 = vld [vmem:[#allocation2 + $0x58] sm:$0xf]  ;;  %v2330_v17 = vld [vmem:[#allocation2 + $0x5c] sm:$0x1] }
 0x248   : > { %v1699_v59 = vrot.slane %v1697_v24, 4  ;;  %v3920_v55 = vcombine.low %v2692_v39, %v2702_v48  ;;  %v2673_v29 = vrot.slane %v2672_v30, 4  ;;  %v3938_v57 = vcombine.low %v5749_v33, %v2927_v37  ;;  %v4419_v60 = vld [vmem:[#allocation2 + $0x54] sm:$0xff]  }
 0x249   : > { %2031 = vrot.lane.b32.xlu1 %v4418_v32, %s4704_s12  ;;  %v1702_v35 = vrot.slane %v1700_v31, 5  ;;  %v2668_v19 = vsel %vm5472_vm0, %v2663_v47, %v2667_v9  ;;  %v1708_v23 = vrot.slane %v1706_v61, 5  ;;  %v1710_v28 = vshrl.u32 %v1544_v42, 16  ;;  %v2574_v9 = vld [vmem:[#allocation2 + $0x54] sm:$0xf] }
 0x24a   : > { %v1716_v18 = vshll.u32 %v1545_v36, 16  ;;  %2807 = vrot.lane.b32.xlu0 %v3920_v55, %s4704_s12  ;;  %v2678_v4 = vsel %vm5472_vm0, %v2673_v29, %v2677_v45  ;;  %2973 = vst.msk [vmem:[#allocation3 + $0xa0] sm:$0xff] %vm1516_vm13, %v3938_v57  ;;  %v1673_v12 = vshrl.u32 %v1540_v52, 16  ;;  %v1676_v33 = vshll.u32 %v1540_v52, 16  ;;  %v2575_v32 = vld [vmem:[#allocation2 + $0x58] sm:$0xf] }
 0x24b   : > { %v1703_v44 = vor.u32 %v1702_v35, %v1699_v59  ;;  %v3919_v51 = vcombine.low %v2668_v19, %v2678_v4  ;;  %v1712_v11 = vrot.slane %v1710_v28, 4  ;;  %v1682_v25 = vshll.u32 %v1541_v53, 16  ;;  %v2576_v61 = vld [vmem:[#allocation2 + $0x5c] sm:$0x1]  ;;  %v1822_v55 = vld [vmem:[#allocation2 + $0x54] sm:$0xe] }
 0x24c   : > { %v1718_v46 = vrot.slane %v1716_v18, 5  ;;  %v2992_v14 = vld [vmem:[#allocation3 + $0x88] sm:$0xff]  ;;  %v1675_v38 = vrot.slane %v1673_v12, 4  ;;  %v1678_v54 = vrot.slane %v1676_v33, 5  ;;  %v1686_v1 = vshrl.u32 %v1541_v53, 16 }
 0x24d   : > { %v1704_v15 = vrot.slane %v1703_v44, 4  ;;  %4210 = vmatmul.mubr.msk.bf16.gmra.mrb[16].mxu0 %vm1516_vm13, %v2992_v14  ;;  %v1713_v0 = vor.u32 %v1712_v11, %v1708_v23  ;;  %v1684_v40 = vrot.slane %v1682_v25, 5  ;;  %v1692_v26 = vshll.u32 %v1542_v62, 16  ;;  %v2854_v53 = vld [vmem:[#allocation2 + $0x74] sm:$0x1] }
 0x24e   : > { %v3866_v5 = vrot.slane %v1819_v63, 9  ;;  %2805 = vrot.lane.b32.xlu0 %v3919_v51, %s4704_s12  ;;  %v1679_v16 = vor.u32 %v1678_v54, %v1675_v38  ;;  %v1688_v22 = vrot.slane %v1686_v1, 4  ;;  %v1896_v27 = vrot.slane %v1820_v2, 5  ;;  %v1823_v63 = vld [vmem:[#allocation2 + $0x58] sm:$0xf] }
 0x24f   : > { %v1709_v21 = vsel %vm5472_vm0, %v1704_v15, %v1708_v23  ;;  %v1714_v42 = vrot.slane %v1713_v0, 4  ;;  %v1694_v39 = vrot.slane %v1692_v26, 5  ;;  %v1899_v8 = vrot.slane %v1821_v7, 5  ;;  %v4420_v23 = vld [vmem:[#allocation2 + $0x60] sm:$0xff]   ;;  %v1824_v4 = vld [vmem:[#allocation2 + $0x5c] sm:$0x1] }
 0x250   : > { %v3898_v20 = vrot.slane %v2328_v43, 9  ;;  %v1680_v13 = vrot.slane %v1679_v16, 4  ;;  %v1689_v41 = vor.u32 %v1688_v22, %v1684_v40  ;;  %v5824_v49 = vsel %vm5369_vm12, %v3866_v5, %v1896_v27  ;;  %v2577_v43 = vld [vmem:[#allocation2 + $0x60] sm:$0xf]  ;;  %v2578_v51 = vld [vmem:[#allocation2 + $0x64] sm:$0xf] }
 0x251   : > { %v1898_v24 = vrot.slane %v1896_v27, 4  ;;  %v2995_v30 = vld [vmem:[#allocation3 + $0xa0] sm:$0xff]  ;;  %v1719_v45 = vsel %vm5472_vm0, %v1714_v42, %v1718_v46  ;;  %v2402_v36 = vrot.slane %v2329_v50, 5  ;;  %v2405_v31 = vrot.slane %v2330_v17, 5  ;;  %v1546_v22 = vld [vmem:[#allocation2 + $0x54] sm:$0xf] }
 0x252   : > { %v2704_v48 = vshrl.u32 %v2574_v9, 16  ;;  %4213 = vmatprep.mubr.msk.bf16.mxu0 %vm1516_vm13, %v2995_v30  ;;  %v3858_v47 = vcombine.low %v1709_v21, %v1719_v45  ;;  %2537 = vrot.lane.b32.xlu0 %v4419_v60, %s4703_s23  ;;  %v1685_v37 = vsel %vm5472_vm0, %v1680_v13, %v1684_v40  ;;  %v1690_v59 = vrot.slane %v1689_v41, 4  ;;  %v2579_v40 = vld [vmem:[#allocation2 + $0x68] sm:$0x1]  ;;  %v1548_v60 = vld [vmem:[#allocation2 + $0x5c] sm:$0x1] }
 0x253   : > { %v1900_v52 = vsel %vm5369_vm12, %v1898_v24, %v1899_v8  ;;  %v2403_v57 = vsel %vm5369_vm12, %v3898_v20, %v2402_v36  ;;  %v2404_v35 = vrot.slane %v2402_v36, 4  ;;  %v2707_v28 = vshll.u32 %v2574_v9, 16  ;;  %v1547_v9 = vld [vmem:[#allocation2 + $0x58] sm:$0xf] }
 0x254   : > { %v3874_v29 = vcombine.low %v5824_v49, %v1900_v52  ;;  %v2706_v62 = vrot.slane %v2704_v48, 4  ;;  %1780 = vrot.lane.b32.xlu1 %v3858_v47, %s4705_s21  ;;  %v1695_v19 = vsel %vm5472_vm0, %v1690_v59, %v1694_v39  ;;  %v2713_v18 = vshll.u32 %v2575_v32, 16  ;;  %v2333_v48 = vld [vmem:[#allocation2 + $0x68] sm:$0x1]  ;;  %v5865_v47 = vpop.permute.xlu1 %2527 }
 0x255   : > { %v2717_v2 = vshrl.u32 %v2575_v32, 16  ;;  %v3857_v44 = vcombine.low %v1685_v37, %v1695_v19  ;;  %v2406_v12 = vsel %vm5369_vm12, %v2404_v35, %v2405_v31  ;;  %v2723_v33 = vshll.u32 %v2576_v61, 16  ;;  %v2331_v32 = vld [vmem:[#allocation2 + $0x60] sm:$0xe]  ;;  %v2332_v61 = vld [vmem:[#allocation2 + $0x64] sm:$0xf] }
 0x256   : > { %v2931_v7 = vsel %vm5369_vm12, %v3931_v10, %v2930_v34  ;;  %2539 = vrot.lane.b32.xlu0 %v4420_v23, %s4703_s23  ;;  %v3906_v11 = vcombine.low %v2403_v57, %v2406_v12  ;;  %v2709_v46 = vrot.slane %v2707_v28, 5  ;;  %v2715_v25 = vrot.slane %v2713_v18, 5  ;;  %v4421_v37 = vld [vmem:[#allocation2 + $0x54] sm:$0xff]   ;;  %v2580_v18 = vld [vmem:[#allocation2 + $0x6c] sm:$0xf] }
 0x257   : > { %v2719_v14 = vrot.slane %v2717_v2, 4  ;;  %v2725_v15 = vrot.slane %v2723_v33, 5  ;;  %v2932_v38 = vrot.slane %v2930_v34, 4  ;;  %v2933_v54 = vrot.slane %v2854_v53, 5  ;;  %v2581_v33 = vld [vmem:[#allocation2 + $0x70] sm:$0xf] }
 0x258   : > { %v3867_v1 = vrot.slane %v1822_v55, 9  ;;  %1778 = vrot.lane.b32.xlu1 %v3857_v44, %s4705_s21  ;;  %v2710_v58 = vor.u32 %v2709_v46, %v2706_v62  ;;  %v1903_v0 = vrot.slane %v1823_v63, 5  ;;  %v1906_v10 = vrot.slane %v1824_v4, 5  ;;  %v5871_v46 = vpop.permute.xlu0 %2440 }
 0x259   : > { %v2720_v50 = vor.u32 %v2719_v14, %v2715_v25  ;;  %v2934_v26 = vsel %vm5369_vm12, %v2932_v38, %v2933_v54  ;;  %v2728_v5 = vshrl.u32 %v2577_v43, 16  ;;  %v2731_v21 = vshll.u32 %v2577_v43, 16 }
 0x25a   : > { %v2737_v16 = vshll.u32 %v2578_v51, 16  ;;  %2450 = vrot.lane.b32.xlu0 %v3906_v11, %s4705_s21  ;;  %v2711_v6 = vrot.slane %v2710_v58, 4  ;;  %v3939_v27 = vcombine.low %v2931_v7, %v2934_v26  ;;  %v1904_v17 = vsel %vm5369_vm12, %v3867_v1, %v1903_v0  ;;  %v5875_v1 = vpop.permute.xlu1 %2023 }
 0x25b   : > { %v2721_v34 = vrot.slane %v2720_v50, 4  ;;  %v1905_v42 = vrot.slane %v1903_v0, 4  ;;  %v2730_v39 = vrot.slane %v2728_v5, 4  ;;  %v2733_v8 = vrot.slane %v2731_v21, 5  ;;  %v2582_v0 = vld [vmem:[#allocation2 + $0x74] sm:$0x1] }
 0x25c   : > { %v2739_v20 = vrot.slane %v2737_v16, 5  ;;  %1944 = vrot.lane.b32.xlu1 %v3874_v29, %s4703_s23  ;;  %v2716_v13 = vsel %vm5472_vm0, %v2711_v6, %v2715_v25  ;;  %2974 = vst.msk [vmem:[#allocation3 + $0xb8] sm:$0xff] %vm1516_vm13, %v3939_v27  ;;  %v2741_v49 = vshrl.u32 %v2578_v51, 16  ;;  %v2747_v24 = vshll.u32 %v2579_v40, 16 }
 0x25d   : > { %v2726_v41 = vsel %vm5472_vm0, %v2721_v34, %v2725_v15  ;;  %v1907_v45 = vsel %vm5369_vm12, %v1905_v42, %v1906_v10  ;;  %v2734_v36 = vor.u32 %v2733_v8, %v2730_v39  ;;  %v1721_v31 = vshrl.u32 %v1546_v22, 16  ;;  %v2058_v42 = vld [vmem:[#allocation2 + $0x1c] sm:$0xf] }
 0x25e   : > { %v3921_v30 = vcombine.low %v2716_v13, %v2726_v41  ;;  %v3875_v59 = vcombine.low %v1904_v17, %v1907_v45  ;;  %v2743_v52 = vrot.slane %v2741_v49, 4  ;;  %v2749_v53 = vrot.slane %v2747_v24, 5  ;;  %v2055_v49 = vld [vmem:[#allocation2 + $0x10] sm:$0xf] }
 0x25f   : > { %v1724_v55 = vshll.u32 %v1546_v22, 16  ;;  %v2735_v29 = vrot.slane %v2734_v36, 4  ;;  %v1723_v57 = vrot.slane %v1721_v31, 4  ;;  %v1730_v35 = vshll.u32 %v1547_v9, 16  ;;  %v2057_v22 = vld [vmem:[#allocation2 + $0x18] sm:$0xf]  ;;  %v5888_v24 = vpop.permute.xlu0 %2438  ;;  %v2022_v31 = vpop.permute.xlu1 %2021 }
 0x260   : > { %2809 = vrot.lane.b32.xlu0 %v3921_v30, %s4704_s12  ;;  %v1734_v62 = vshrl.u32 %v1547_v9, 16  ;;  %2033 = vrot.lane.b32.xlu1 %v4421_v37, %s4704_s12  ;;  %v2744_v63 = vor.u32 %v2743_v52, %v2739_v20  ;;  %v1740_v23 = vshll.u32 %v1548_v60, 16  ;;  %v3899_v28 = vrot.slane %v2331_v32, 9  ;;  %v2059_v9 = vld [vmem:[#allocation2 + $0x20] sm:$0x1] }
 0x261   : > { %v1726_v19 = vrot.slane %v1724_v55, 5  ;;  %v2740_v2 = vsel %vm5472_vm0, %v2735_v29, %v2739_v20  ;;  %v1732_v4 = vrot.slane %v1730_v35, 5  ;;  %v2409_v12 = vrot.slane %v2332_v61, 5  ;;  %v2056_v61 = vld [vmem:[#allocation2 + $0x14] sm:$0x1] }
 0x262   : > { %v1736_v44 = vrot.slane %v1734_v62, 4  ;;  %v2745_v7 = vrot.slane %v2744_v63, 4  ;;  %v1742_v51 = vrot.slane %v1740_v23, 5  ;;  %v2412_v11 = vrot.slane %v2333_v48, 5  ;;  %v4422_v62 = vld [vmem:[#allocation2 + $0x60] sm:$0xff]  }
 0x263   : > { %v1727_v43 = vor.u32 %v1726_v19, %v1723_v57  ;;  %v2998_v25 = vld [vmem:[#allocation3 + $0xb8] sm:$0xff]  ;;  %v2410_v15 = vsel %vm5369_vm12, %v3899_v28, %v2409_v12  ;;  %v2411_v38 = vrot.slane %v2409_v12, 4  ;;  %v2752_v54 = vshrl.u32 %v2580_v18, 16 }
 0x264   : > { %v1737_v14 = vor.u32 %v1736_v44, %v1732_v4  ;;  %4214 = vmatmul.mubr.msk.bf16.gmra.mrb[20].mxu0 %vm1516_vm13, %v2998_v25  ;;  %1946 = vrot.lane.b32.xlu1 %v3875_v59, %s4703_s23  ;;  %v2750_v58 = vsel %vm5472_vm0, %v2745_v7, %v2749_v53  ;;  %v2755_v10 = vshll.u32 %v2580_v18, 16  ;;  %v2761_v40 = vshll.u32 %v2581_v33, 16  ;;  %v2054_v53 = vld [vmem:[#allocation2 + $0xc] sm:$0xf]  ;;  %v2063_v25 = vld [vmem:[#allocation2 + $0x30] sm:$0xf] }
 0x265   : > { %v1728_v50 = vrot.slane %v1727_v43, 4  ;;  %v3922_v26 = vcombine.low %v2740_v2, %v2750_v58  ;;  %v2413_v21 = vsel %vm5369_vm12, %v2411_v38, %v2412_v11  ;;  %v2754_v16 = vrot.slane %v2752_v54, 4  ;;  %v4423_v18 = vld [vmem:[#allocation2 + $0x6c] sm:$0xff]   ;;  %v1933_v54 = vpop.permute.xlu1 %1932  ;;  %v2064_v58 = vld [vmem:[#allocation2 + $0x34] sm:$0xf] }
 0x266   : > { %v1738_v5 = vrot.slane %v1737_v14, 4  ;;  %v3907_v34 = vcombine.low %v2410_v15, %v2413_v21  ;;  %v2757_v27 = vrot.slane %v2755_v10, 5  ;;  %v2763_v17 = vrot.slane %v2761_v40, 5 }
 0x267   : > { %v1733_v6 = vsel %vm5472_vm0, %v1728_v50, %v1732_v4  ;;  %2811 = vrot.lane.b32.xlu0 %v3922_v26, %s4704_s12  ;;  %v2765_v8 = vshrl.u32 %v2581_v33, 16  ;;  %v2771_v20 = vshll.u32 %v2582_v0, 16  ;;  %v2103_v13 = vshrl.u32 %v2057_v22, 16 }
 0x268   : > { %v1743_v39 = vsel %vm5472_vm0, %v1738_v5, %v1742_v51  ;;  %v2758_v60 = vor.u32 %v2757_v27, %v2754_v16  ;;  %v2106_v41 = vshll.u32 %v2057_v22, 16  ;;  %v2122_v45 = vshll.u32 %v2059_v9, 16  ;;  %v2065_v5 = vld [vmem:[#allocation2 + $0x38] sm:$0x1] }
 0x269   : > { %v3859_v56 = vcombine.low %v1733_v6, %v1743_v39  ;;  %v2767_v32 = vrot.slane %v2765_v8, 4  ;;  %v2773_v30 = vrot.slane %v2771_v20, 5  ;;  %v2112_v36 = vshll.u32 %v2058_v42, 16  ;;  %v2061_v20 = vld [vmem:[#allocation2 + $0x28] sm:$0xf] }
 0x26a   : > { %v2759_v48 = vrot.slane %v2758_v60, 4  ;;  %v2105_v37 = vrot.slane %v2103_v13, 4  ;;  %v2108_v59 = vrot.slane %v2106_v41, 5  ;;  %v2116_v52 = vshrl.u32 %v2058_v42, 16 }
 0x26b   : > { %1782 = vrot.lane.b32.xlu1 %v3859_v56, %s4705_s21  ;;  %2452 = vrot.lane.b32.xlu0 %v3907_v34, %s4705_s21  ;;  %v2768_v55 = vor.u32 %v2767_v32, %v2763_v17  ;;  %v2124_v29 = vrot.slane %v2122_v45, 5  ;;  %v2114_v57 = vrot.slane %v2112_v36, 5  ;;  %v2088_v35 = vshll.u32 %v2055_v49, 16  ;;  %s6320_s21 = sld [smem:[#allocation34_spill]] }
 0x26c   : > { %v2764_v63 = vsel %vm5472_vm0, %v2759_v48, %v2763_v17  ;;  %v2109_v19 = vor.u32 %v2108_v59, %v2105_v37  ;;  %v2118_v23 = vrot.slane %v2116_v52, 4  ;;  %v2092_v28 = vshrl.u32 %v2055_v49, 16  ;;  %v1769_v11 = vpop.permute.xlu0 %1768  ;;  %v2060_v17 = vld [vmem:[#allocation2 + $0x24] sm:$0xf]  ;;  %v2069_v59 = vld [vmem:[#allocation2 + $0x48] sm:$0xf] }
 0x26d   : > { %v2769_v2 = vrot.slane %v2768_v55, 4  ;;  %v2090_v4 = vrot.slane %v2088_v35, 5  ;;  %v2098_v44 = vshll.u32 %v2056_v61, 16  ;;  %v2079_v12 = vshrl.u32 %v2054_v53, 16  ;;  %1793 = vst.msk [vmem:[#allocation3] sm:$0xff] %vm1792_vm1, %v1769_v11 }
 0x26e   : > { %v2110_v33 = vrot.slane %v2109_v19, 4  ;;  %v2119_v7 = vor.u32 %v2118_v23, %v2114_v57  ;;  %v2094_v43 = vrot.slane %v2092_v28, 4  ;;  %v2082_v51 = vshll.u32 %v2054_v53, 16 }
 0x26f   : > { %2035 = vrot.lane.b32.xlu1 %v4422_v62, %s4704_s12  ;;  %2541 = vrot.lane.b32.xlu0 %v4423_v18, %s4703_s23  ;;  %v2774_v14 = vsel %vm5472_vm0, %v2769_v2, %v2773_v30  ;;  %v2100_v15 = vrot.slane %v2098_v44, 5  ;;  %v2081_v38 = vrot.slane %v2079_v12, 4  ;;  %vm1956_vm2 = vcmask 785920   ;;  %v2062_v30 = vld [vmem:[#allocation2 + $0x2c] sm:$0x1]  ;;  %s3981_s23 = sshll.u32 %s6325_s7, 5 }
 0x270   : > { %v3923_v50 = vcombine.low %v2764_v63, %v2774_v14  ;;  %v2115_v0 = vsel %vm5472_vm0, %v2110_v33, %v2114_v57  ;;  %v2120_v10 = vrot.slane %v2119_v7, 4  ;;  %v2095_v40 = vor.u32 %v2094_v43, %v2090_v4  ;;  %1957 = vst.msk [vmem:[#allocation3] sm:$0xff] %vm1956_vm2, %v1933_v54  ;;  %v2070_v57 = vld [vmem:[#allocation2 + $0x4c] sm:$0xf]  ;;  %v2071_v12 = vld [vmem:[#allocation2 + $0x50] sm:$0x1] }
 0x271   : > { %v2084_v26 = vrot.slane %v2082_v51, 5  ;;  %v2151_v21 = vshrl.u32 %v2063_v25, 16  ;;  %v2154_v16 = vshll.u32 %v2063_v25, 16  ;;  %2046 = vst.msk [vmem:[#allocation3] sm:$0xff] %vm2045_vm3, %v2022_v31  ;;  %v2160_v34 = vshll.u32 %v2064_v58, 16  ;;  %v5913_v23 = vpop.permute.xlu1 %1936  ;;  %s6321_s28 = smov %s6320_s21 }
 0x272   : > { %v2125_v22 = vsel %vm5472_vm0, %v2120_v10, %v2124_v29  ;;  %v2096_v6 = vrot.slane %v2095_v40, 4  ;;  %v2164_v27 = vshrl.u32 %v2064_v58, 16  ;;  %v2170_v41 = vshll.u32 %v2065_v5, 16  ;;  %v2066_v43 = vld [vmem:[#allocation2 + $0x3c] sm:$0xf] }
 0x273   : > { %2813 = vrot.lane.b32.xlu0 %v3923_v50, %s4704_s12  ;;  %v3885_v9 = vcombine.low %v2115_v0, %v2125_v22  ;;  %v2085_v42 = vor.u32 %v2084_v26, %v2081_v38  ;;  %v2153_v39 = vrot.slane %v2151_v21, 4  ;;  %v2156_v8 = vrot.slane %v2154_v16, 5  ;;  %v5924_v38 = vpop.permute.xlu0 %2531  ;;  %s3614_s12 = sadd.s32 %s4006_s8, %s3981_s23 }
 0x274   : > { %v2101_v56 = vsel %vm5472_vm0, %v2096_v6, %v2100_v15  ;;  %v2162_v60 = vrot.slane %v2160_v34, 5  ;;  %v2166_v13 = vrot.slane %v2164_v27, 4  ;;  %v2127_v45 = vshrl.u32 %v2060_v17, 16  ;;  %v2067_v15 = vld [vmem:[#allocation2 + $0x40] sm:$0xf]  ;;  %s3982_s13 = sshll.u32 %s3614_s12, 7 }
 0x275   : > { %2303 = vst.msk [vmem:[#allocation3 + $0x20] sm:$0xff] %vm1516_vm13, %v3885_v9  ;;  %v2086_v49 = vrot.slane %v2085_v42, 4  ;;  %v2157_v32 = vor.u32 %v2156_v8, %v2153_v39  ;;  %v2130_v36 = vshll.u32 %v2060_v17, 16  ;;  %v2172_v61 = vrot.slane %v2170_v41, 5  ;;  %v2072_v6 = vld [vmem:[#allocation2 + $0x54] sm:$0xf]  ;;  %v5931_v34 = vpop.permute.xlu1 %1934  ;;  %s6131_s20 = scalar_lea.hbm %s6326_s9, %s3982_s13 }
 0x276   : > { %2463 = vst.msk [vmem:[#allocation3 + $0x20] sm:$0xff] %vm1792_vm1, %v5871_v46  ;;  %v2167_v31 = vor.u32 %v2166_v13, %v2162_v60  ;;  %v2136_v48 = vshll.u32 %v2061_v20, 16  ;;  %v2140_v37 = vshrl.u32 %v2061_v20, 16  ;;  %v2129_v55 = vrot.slane %v2127_v45, 4  ;;  %v2073_v39 = vld [vmem:[#allocation2 + $0x58] sm:$0xf] }
 0x277   : > { %v2091_v52 = vsel %vm5472_vm0, %v2086_v49, %v2090_v4  ;;  %v2158_v53 = vrot.slane %v2157_v32, 4  ;;  %v2132_v29 = vrot.slane %v2130_v36, 5  ;;  %v2146_v18 = vshll.u32 %v2062_v30, 16 }
 0x278   : > { %v3884_v35 = vcombine.low %v2091_v52, %v2101_v56  ;;  %v2168_v62 = vrot.slane %v2167_v31, 4  ;;  %v2138_v63 = vrot.slane %v2136_v48, 5  ;;  %v2142_v19 = vrot.slane %v2140_v37, 4 }
 0x279   : > { %v2163_v46 = vsel %vm5472_vm0, %v2158_v53, %v2162_v60  ;;  %v2133_v28 = vor.u32 %v2132_v29, %v2129_v55  ;;  %v2199_v2 = vshrl.u32 %v2069_v59, 16  ;;  %v2202_v33 = vshll.u32 %v2069_v59, 16  ;;  %v2075_v55 = vld [vmem:[#allocation2 + $0x60] sm:$0xf] }
 0x27a   : > { %2302 = vst.msk [vmem:[#allocation3 + $0x8] sm:$0xff] %vm1516_vm13, %v3884_v35  ;;  %v2173_v4 = vsel %vm5472_vm0, %v2168_v62, %v2172_v61  ;;  %v2143_v44 = vor.u32 %v2142_v19, %v2138_v63  ;;  %v2208_v7 = vshll.u32 %v2070_v57, 16  ;;  %v2148_v25 = vrot.slane %v2146_v18, 5  ;;  %v2074_v61 = vld [vmem:[#allocation2 + $0x5c] sm:$0x1]  ;;  %v5939_v19 = vpop.permute.xlu1 %2027 }
 0x27b   : > { %2462 = vst.msk [vmem:[#allocation3 + $0x8] sm:$0xff] %vm1792_vm1, %v5888_v24  ;;  %v3887_v51 = vcombine.low %v2163_v46, %v2173_v4  ;;  %v2134_v11 = vrot.slane %v2133_v28, 4  ;;  %v2201_v14 = vrot.slane %v2199_v2, 4  ;;  %v2204_v58 = vrot.slane %v2202_v33, 5 }
 0x27c   : > { %2551 = vst.msk [vmem:[#allocation3 + $0x8] sm:$0xff] %vm1956_vm2, %v5865_v47  ;;  %v2144_v54 = vrot.slane %v2143_v44, 4  ;;  %v2210_v50 = vrot.slane %v2208_v7, 5  ;;  %v2212_v0 = vshrl.u32 %v2070_v57, 16  ;;  %v2218_v24 = vshll.u32 %v2071_v12, 16 }
 0x27d   : > { %2305 = vst.msk [vmem:[#allocation3 + $0x50] sm:$0xff] %vm1516_vm13, %v3887_v51  ;;  %v2139_v10 = vsel %vm5472_vm0, %v2134_v11, %v2138_v63  ;;  %v2175_v40 = vshrl.u32 %v2066_v43, 16  ;;  %v2178_v26 = vshll.u32 %v2066_v43, 16  ;;  %v2205_v21 = vor.u32 %v2204_v58, %v2201_v14  ;;  %v2068_v47 = vld [vmem:[#allocation2 + $0x44] sm:$0x1] }
 0x27e   : > { %v2149_v5 = vsel %vm5472_vm0, %v2144_v54, %v2148_v25  ;;  %v2214_v16 = vrot.slane %v2212_v0, 4  ;;  %v2184_v22 = vshll.u32 %v2067_v15, 16  ;;  %v2220_v17 = vrot.slane %v2218_v24, 5  ;;  %v2076_v63 = vld [vmem:[#allocation2 + $0x64] sm:$0xf] }
 0x27f   : > { %v3886_v27 = vcombine.low %v2139_v10, %v2149_v5  ;;  %v2177_v9 = vrot.slane %v2175_v40, 4  ;;  %v2180_v42 = vrot.slane %v2178_v26, 5  ;;  %v2206_v8 = vrot.slane %v2205_v21, 4  ;;  %v2077_v11 = vld [vmem:[#allocation2 + $0x68] sm:$0x1] }
 0x280   : > { %v2215_v20 = vor.u32 %v2214_v16, %v2210_v50  ;;  %v2186_v56 = vrot.slane %v2184_v22, 5  ;;  %v2188_v60 = vshrl.u32 %v2067_v15, 16  ;;  %v2194_v41 = vshll.u32 %v2068_v47, 16 }
 0x281   : > { %2304 = vst.msk [vmem:[#allocation3 + $0x38] sm:$0xff] %vm1516_vm13, %v3886_v27  ;;  %v2181_v13 = vor.u32 %v2180_v42, %v2177_v9  ;;  %v2223_v49 = vshrl.u32 %v2072_v6, 16  ;;  %v2226_v32 = vshll.u32 %v2072_v6, 16  ;;  %v2800_v30 = vpop.permute.xlu0 %2799  ;;  %v2211_v45 = vsel %vm5472_vm0, %v2206_v8, %v2210_v50  ;;  %v2975_v6 = vld [vmem:[#allocation3] sm:$0xff] }
 0x282   : > { %v2216_v36 = vrot.slane %v2215_v20, 4  ;;  %v2190_v31 = vrot.slane %v2188_v60, 4  ;;  %v2232_v48 = vshll.u32 %v2073_v39, 16  ;;  %2823 = vst.msk [vmem:[#allocation3 + $0x8] sm:$0xff] %vm2045_vm3, %v2800_v30  ;;  %v2196_v59 = vrot.slane %v2194_v41, 5 }
 0x283   : > { %v2182_v37 = vrot.slane %v2181_v13, 4  ;;  %v2225_v52 = vrot.slane %v2223_v49, 4  ;;  %v2228_v53 = vrot.slane %v2226_v32, 5  ;;  %v2236_v62 = vshrl.u32 %v2073_v39, 16 }
 0x284   : > { %v2221_v29 = vsel %vm5472_vm0, %v2216_v36, %v2220_v17  ;;  %v2191_v57 = vor.u32 %v2190_v31, %v2186_v56  ;;  %v2234_v35 = vrot.slane %v2232_v48, 5  ;;  %v2242_v2 = vshll.u32 %v2074_v61, 16 }
 0x285   : > { %v3889_v46 = vcombine.low %v2211_v45, %v2221_v29  ;;  %v2187_v28 = vsel %vm5472_vm0, %v2182_v37, %v2186_v56  ;;  %v2229_v18 = vor.u32 %v2228_v53, %v2225_v52  ;;  %v2530_v4 = vpop.permute.xlu0 %2529  ;;  %v2238_v12 = vrot.slane %v2236_v62, 4 }
 0x286   : > { %v2192_v44 = vrot.slane %v2191_v57, 4  ;;  %v2247_v33 = vshrl.u32 %v2075_v55, 16  ;;  %v2250_v7 = vshll.u32 %v2075_v55, 16  ;;  %2552 = vst.msk [vmem:[#allocation3 + $0x20] sm:$0xff] %vm1956_vm2, %v2530_v4  ;;  %v2244_v51 = vrot.slane %v2242_v2, 5 }
 0x287   : > { %2307 = vst.msk [vmem:[#allocation3 + $0x80] sm:$0xff] %vm1516_vm13, %v3889_v46  ;;  %v2230_v43 = vrot.slane %v2229_v18, 4  ;;  %v2256_v25 = vshll.u32 %v2076_v63, 16  ;;  %v2260_v14 = vshrl.u32 %v2076_v63, 16  ;;  %v2239_v54 = vor.u32 %v2238_v12, %v2234_v35 }
 0x288   : > { %v2197_v15 = vsel %vm5472_vm0, %v2192_v44, %v2196_v59  ;;  %v2249_v58 = vrot.slane %v2247_v33, 4  ;;  %v2252_v50 = vrot.slane %v2250_v7, 5  ;;  %v2266_v47 = vshll.u32 %v2077_v11, 16 }
 0x289   : > { %v3888_v0 = vcombine.low %v2187_v28, %v2197_v15  ;;  %v2258_v10 = vrot.slane %v2256_v25, 5  ;;  %v2262_v24 = vrot.slane %v2260_v14, 4  ;;  %v2976_v26 = vld [vmem:[#allocation3 + $0x8] sm:$0xff]  ;;  %v2235_v5 = vsel %vm5472_vm0, %v2230_v43, %v2234_v35 }
 0x28a   : > { %v2445_v40 = vpop.permute.xlu0 %2444  ;;  %v2240_v21 = vrot.slane %v2239_v54, 4  ;;  %v2253_v16 = vor.u32 %v2252_v50, %v2249_v58  ;;  %3206 = vmatprep.mubr.bf16.mxu1 %v2976_v26  ;;  %v2268_v42 = vrot.slane %v2266_v47, 5 }
 0x28b   : > { %v1773_v22 = vpop.permute.xlu1 %1772  ;;  %2465 = vst.msk [vmem:[#allocation3 + $0x50] sm:$0xff] %vm1792_vm1, %v2445_v40  ;;  %v2263_v27 = vor.u32 %v2262_v24, %v2258_v10  ;;  %3207 = vmatmul.mubr.bf16.vlgmr.msra.gmra.mrb[16].mxu1 %v2975_v6 }
 0x28c   : > { %2306 = vst.msk [vmem:[#allocation3 + $0x68] sm:$0xff] %vm1516_vm13, %v3888_v0  ;;  %v2245_v17 = vsel %vm5472_vm0, %v2240_v21, %v2244_v51  ;;  %v2254_v9 = vrot.slane %v2253_v16, 4 }
 0x28d   : > { %1795 = vst.msk [vmem:[#allocation3 + $0x30] sm:$0xff] %vm1792_vm1, %v1773_v22  ;;  %v3890_v39 = vcombine.low %v2235_v5, %v2245_v17  ;;  %v2264_v8 = vrot.slane %v2263_v27, 4  ;;  %v4448_v27 = vld [vmem:[%s6320_s21] sm:$0xff]   ;;  %v4449_v17 = vld [vmem:[%s6321_s28 + $0x8] sm:$0xff]   ;;  %s3617_s21 = sshll.u32 %s6083_s3, 4  ;;  %s6125_s21 = int_to_ptr.vmem [resolvable:$true] %s3617_s21 }
 0x28e   : > { %1959 = vst.msk [vmem:[#allocation3 + $0x30] sm:$0xff] %vm1956_vm2, %v5913_v23  ;;  %v2443_v20 = vpop.permute.xlu0 %2442  ;;  %v2259_v56 = vsel %vm5472_vm0, %v2254_v9, %v2258_v10  ;;  %4217 = vmatprep.subr.bf16.mxu0 %v4448_v27  ;;  %s4540_s5 = scalar_lea.vmem %s6125_s21, 2048 }
 0x28f   : > { %v2026_v60 = vpop.permute.xlu1 %2025  ;;  %2464 = vst.msk [vmem:[#allocation3 + $0x38] sm:$0xff] %vm1792_vm1, %v2443_v20  ;;  %v2269_v13 = vsel %vm5472_vm0, %v2264_v8, %v2268_v42  ;;  %4218 = vmatpush3.bf16.msra.mxu0 %v4448_v27  ;;  %p4541_p3 = scmp.ne.s32.totalorder %s6125_s21, %s4540_s5 }
 0x290   : > { %2308 = vst.msk [vmem:[#allocation3 + $0x98] sm:$0xff] %vm1516_vm13, %v3890_v39  ;;  %v3891_v23 = vcombine.low %v2259_v56, %v2269_v13  ;;  %4219 = vmatprep.subr.bf16.mxu0 %v4449_v17 }
 0x291   : > { %2048 = vst.msk [vmem:[#allocation3 + $0x30] sm:$0xff] %vm2045_vm3, %v2026_v60  ;;  %p4542_p7 = pnand %p4541_p3, %p6327_p9 }
 0x292   : > { %2553 = vst.msk [vmem:[#allocation3 + $0x38] sm:$0xff] %vm1956_vm2, %v5924_v38  ;;  %v2536_v49 = vpop.permute.xlu0 %2535 }
 0x293   : > { %2309 = vst.msk [vmem:[#allocation3 + $0xb0] sm:$0xff] %vm1516_vm13, %v3891_v23  ;;  %4220 = vmatpush3.bf16.msra.mxu0 %v4449_v17  ;;  %p4543_p6 = pneg %p4542_p7 }
 0x297   : > { %v1771_v41 = vpop.permute.xlu1 %1770 }
 0x298   : > { %1794 = vst.msk [vmem:[#allocation3 + $0x18] sm:$0xff] %vm1792_vm1, %v1771_v41  ;;  %v2981_v55 = vld [vmem:[#allocation3 + $0x30] sm:$0xff]  ;;  %v6032_v41 = vld [vmem:[%s6322_s17] ss:$0 sm:$0xff]  ;;  %s3601_s17 = scalar_lea.sflag [#allocation6], %s5100_s6 }
 0x299   : > { %1958 = vst.msk [vmem:[#allocation3 + $0x18] sm:$0xff] %vm1956_vm2, %v5931_v34 }
 0x29a   : > { %2047 = vst.msk [vmem:[#allocation3 + $0x18] sm:$0xff] %vm2045_vm3, %v5875_v1 }
 0x29b   : > { %v1941_v3 = vpop.permute.xlu1 %1940 }
 0x29f   : > { %v1939_v30 = vpop.permute.xlu1 %1938 }
 0x2a1   : > { %v2804_v32 = vpop.permute.xlu0 %2803  ;;  %v2978_v37 = vld [vmem:[#allocation3 + $0x18] sm:$0xff] }
 0x2a2   : > { %2825 = vst.msk [vmem:[#allocation3 + $0x38] sm:$0xff] %vm2045_vm3, %v2804_v32 }
 0x2a5   : > { %v2534_v45 = vpop.permute.xlu0 %2533 }
 0x2a6   : > { %2554 = vst.msk [vmem:[#allocation3 + $0x50] sm:$0xff] %vm1956_vm2, %v2534_v45 }
 0x2a8   : > { %v1777_v38 = vpop.permute.xlu1 %1776 }
 0x2a9   : > { %1797 = vst.msk [vmem:[#allocation3 + $0x60] sm:$0xff] %vm1792_vm1, %v1777_v38  ;;  %v2982_v59 = vld [vmem:[#allocation3 + $0x38] sm:$0xff] }
 0x2aa   : > { %1961 = vst.msk [vmem:[#allocation3 + $0x60] sm:$0xff] %vm1956_vm2, %v1941_v3 }
 0x2ac   : > { %v2030_v36 = vpop.permute.xlu1 %2029 }
 0x2ad   : > { %2050 = vst.msk [vmem:[#allocation3 + $0x60] sm:$0xff] %vm2045_vm3, %v2030_v36  ;;  %v2802_v34 = vpop.permute.xlu0 %2801 }
 0x2ae   : > { %2824 = vst.msk [vmem:[#allocation3 + $0x20] sm:$0xff] %vm2045_vm3, %v2802_v34 }
 0x2b1   : > { %v2449_v1 = vpop.permute.xlu0 %2448 }
 0x2b2   : > { %2467 = vst.msk [vmem:[#allocation3 + $0x80] sm:$0xff] %vm1792_vm1, %v2449_v1 }
 0x2b3   : > { %v1775_v31 = vpop.permute.xlu1 %1774 }
 0x2b4   : > { %1796 = vst.msk [vmem:[#allocation3 + $0x48] sm:$0xff] %vm1792_vm1, %v1775_v31  ;;  %v2987_v12 = vld [vmem:[#allocation3 + $0x60] sm:$0xff] }
 0x2b5   : > { %1960 = vst.msk [vmem:[#allocation3 + $0x48] sm:$0xff] %vm1956_vm2, %v1939_v30  ;;  %v2447_v61 = vpop.permute.xlu0 %2446  ;;  %v2979_v48 = vld [vmem:[#allocation3 + $0x20] sm:$0xff] }
 0x2b6   : > { %2049 = vst.msk [vmem:[#allocation3 + $0x48] sm:$0xff] %vm2045_vm3, %v5939_v19  ;;  %3214 = vmatprep.mubr.bf16.mxu1 %v2979_v48 }
 0x2b7   : > { %2466 = vst.msk [vmem:[#allocation3 + $0x68] sm:$0xff] %vm1792_vm1, %v2447_v61  ;;  %3215 = vmatmul.mubr.bf16.gmra.mrb[20].mxu1 %v2978_v37  ;;  %v1943_v52 = vpop.permute.xlu1 %1942 }
 0x2b8   : > { %2555 = vst.msk [vmem:[#allocation3 + $0x68] sm:$0xff] %vm1956_vm2, %v2536_v49  ;;  %3222 = vmatprep.mubr.bf16.mxu1 %v2982_v59 }
 0x2bb   : > { %v2032_v29 = vpop.permute.xlu1 %2031 }
 0x2bc   : > { %v2808_v53 = vpop.permute.xlu0 %2807 }
 0x2bd   : > { %2827 = vst.msk [vmem:[#allocation3 + $0x68] sm:$0xff] %vm2045_vm3, %v2808_v53  ;;  %v2984_v46 = vld [vmem:[#allocation3 + $0x48] sm:$0xff] }
 0x2bf   : > { %3223 = vmatmul.mubr.bf16.gmra.mrb[24].mxu1 %v2981_v55 }
 0x2c0   : > { %v2806_v57 = vpop.permute.xlu0 %2805 }
 0x2c1   : > { %2826 = vst.msk [vmem:[#allocation3 + $0x50] sm:$0xff] %vm2045_vm3, %v2806_v57 }
 0x2c4   : > { %v2538_v35 = vpop.permute.xlu0 %2537  ;;  %v2988_v18 = vld [vmem:[#allocation3 + $0x68] sm:$0xff] }
 0x2c5   : > { %2556 = vst.msk [vmem:[#allocation3 + $0x80] sm:$0xff] %vm1956_vm2, %v2538_v35 }
 0x2c6   : > { %v1781_v62 = vpop.permute.xlu1 %1780 }
 0x2c7   : > { %1799 = vst.msk [vmem:[#allocation3 + $0x90] sm:$0xff] %vm1792_vm1, %v1781_v62 }
 0x2c8   : > { %v2540_v63 = vpop.permute.xlu0 %2539  ;;  %v2985_v19 = vld [vmem:[#allocation3 + $0x50] sm:$0xff] }
 0x2c9   : > { %3230 = vmatprep.mubr.bf16.mxu1 %v2985_v19 }
 0x2ca   : > { %v1779_v28 = vpop.permute.xlu1 %1778  ;;  %3231 = vmatmul.mubr.bf16.gmra.mrb[28].mxu1 %v2984_v46 }
 0x2cb   : > { %1798 = vst.msk [vmem:[#allocation3 + $0x78] sm:$0xff] %vm1792_vm1, %v1779_v28  ;;  %3238 = vmatprep.mubr.bf16.mxu1 %v2988_v18 }
 0x2cc   : > { %1962 = vst.msk [vmem:[#allocation3 + $0x78] sm:$0xff] %vm1956_vm2, %v1943_v52  ;;  %v2451_v2 = vpop.permute.xlu0 %2450 }
 0x2cd   : > { %2051 = vst.msk [vmem:[#allocation3 + $0x78] sm:$0xff] %vm2045_vm3, %v2032_v29 }
 0x2ce   : > { %2468 = vst.msk [vmem:[#allocation3 + $0x98] sm:$0xff] %vm1792_vm1, %v2451_v2  ;;  %v1945_v4 = vpop.permute.xlu1 %1944 }
 0x2cf   : > { %2557 = vst.msk [vmem:[#allocation3 + $0x98] sm:$0xff] %vm1956_vm2, %v2540_v63  ;;  %1963 = vst.msk [vmem:[#allocation3 + $0x90] sm:$0xff] %vm1956_vm2, %v1945_v4 }
 0x2d2   : > { %v2810_v44 = vpop.permute.xlu0 %2809  ;;  %v2034_v33 = vpop.permute.xlu1 %2033  ;;  %3239 = vmatmul.mubr.bf16.gmra.mrb[32].mxu1 %v2987_v12 }
 0x2d3   : > { %2828 = vst.msk [vmem:[#allocation3 + $0x80] sm:$0xff] %vm2045_vm3, %v2810_v44  ;;  %2052 = vst.msk [vmem:[#allocation3 + $0x90] sm:$0xff] %vm2045_vm3, %v2034_v33 }
 0x2d4   : > { %v2990_v11 = vld [vmem:[#allocation3 + $0x78] sm:$0xff] }
 0x2d6   : > { %v1947_v7 = vpop.permute.xlu1 %1946 }
 0x2d9   : > { %v2812_v43 = vpop.permute.xlu0 %2811 }
 0x2da   : > { %v2991_v51 = vld [vmem:[#allocation3 + $0x80] sm:$0xff]  ;;  %2829 = vst.msk [vmem:[#allocation3 + $0x98] sm:$0xff] %vm2045_vm3, %v2812_v43  ;;  %v2993_v50 = vld [vmem:[#allocation3 + $0x90] sm:$0xff] }
 0x2db   : > { %3246 = vmatprep.mubr.bf16.mxu1 %v2991_v51 }
 0x2dc   : > { %3247 = vmatmul.mubr.bf16.gmra.mrb[36].mxu1 %v2990_v11 }
 0x2dd   : > { %v1783_v25 = vpop.permute.xlu1 %1782  ;;  %v2453_v14 = vpop.permute.xlu0 %2452 }
 0x2de   : > { %1800 = vst.msk [vmem:[#allocation3 + $0xa8] sm:$0xff] %vm1792_vm1, %v1783_v25  ;;  %2469 = vst.msk [vmem:[#allocation3 + $0xb0] sm:$0xff] %vm1792_vm1, %v2453_v14 }
 0x2df   : > { %1964 = vst.msk [vmem:[#allocation3 + $0xa8] sm:$0xff] %vm1956_vm2, %v1947_v7 }
 0x2e1   : > { %v2036_v15 = vpop.permute.xlu1 %2035  ;;  %v2542_v54 = vpop.permute.xlu0 %2541  ;;  %v2994_v58 = vld [vmem:[#allocation3 + $0x98] sm:$0xff] }
 0x2e2   : > { %2053 = vst.msk [vmem:[#allocation3 + $0xa8] sm:$0xff] %vm2045_vm3, %v2036_v15  ;;  %3254 = vmatprep.mubr.bf16.mxu1 %v2994_v58 }
 0x2e3   : > { %2558 = vst.msk [vmem:[#allocation3 + $0xb0] sm:$0xff] %vm1956_vm2, %v2542_v54 }
 0x2e4   : > { %3255 = vmatmul.mubr.bf16.gmra.mrb[40].mxu1 %v2993_v50 }
 0x2e5   : > { %v2814_v0 = vpop.permute.xlu0 %2813 }
 0x2e6   : > { %2830 = vst.msk [vmem:[#allocation3 + $0xb0] sm:$0xff] %vm2045_vm3, %v2814_v0 }
 0x2e9   : > { %v2996_v5 = vld [vmem:[#allocation3 + $0xa8] sm:$0xff] }
 0x2eb   : > { %v4203_v10 = vpop.f32.mrb[8].mxu0 }
 0x2ec   : > { %v3305_v24 = vpop.f32.mrb[9].mxu0 }
 0x2ed   : > { %v2997_v40 = vld [vmem:[#allocation3 + $0xb0] sm:$0xff]  ;;  %v4204_v26 = vpop.f32.mrb[10].mxu0 }
 0x2ee   : > { %3262 = vmatprep.mubr.bf16.mxu1 %v2997_v40  ;;  %v3308_v21 = vpop.f32.mrb[11].mxu0 }
 0x2ef   : > { %3263 = vmatmul.mubr.bf16.gmra.mrb[44].mxu1 %v2996_v5 }
 0x2f4   : > { %v6003_v16 = vpop.f32.mrb[12].mxu0 }
 0x2f5   : > { %v3321_v47 = vpop.f32.mrb[13].mxu0 }
 0x2f6   : > { %v6005_v22 = vpop.f32.mrb[14].mxu0 }
 0x2f7   : > { %v3324_v6 = vpop.f32.mrb[15].mxu0 }
 0x320   : > { %v6013_v9 = vpop.f32.mrb[16].mxu0 }
 0x321   : > { %v6015_v42 = vpop.f32.mrb[17].mxu0 }
 0x322   : > { %v6017_v39 = vpop.f32.mrb[18].mxu0 }
 0x323   : > { %v6019_v8 = vpop.f32.mrb[19].mxu0 }
 0x337   : > { %v6021_v20 = vpop.f32.mrb[20].mxu0 }
 0x338   : > { %v6023_v56 = vpop.f32.mrb[21].mxu0 }
 0x339   : > { %v6025_v60 = vpop.f32.mrb[22].mxu0 }
 0x33a   : > { %v6027_v13 = vpop.f32.mrb[23].mxu0 }
 0x35e   : > { %v4057_v23 = vpop.f32.mrb[16].mxu1 }
 0x35f   : > { %v4058_v49 = vpop.f32.mrb[17].mxu1 }
 0x360   : > { %v4059_v3 = vadd.f32 %v4058_v49, %v4057_v23  ;;  %v4060_v32 = vpop.f32.mrb[18].mxu1 }
 0x361   : > { %v4061_v30 = vpop.f32.mrb[19].mxu1 }
 0x362   : > { %v3209_v45 = vadd.f32 %v4059_v3, %v6032_v41  ;;  %v4062_v38 = vadd.f32 %v4061_v30, %v4060_v32 }
 0x364   : > { %v3306_v36 = vadd.f32 %v3305_v24, %v3209_v45  ;;  %v3212_v34 = vadd.f32 %v4062_v38, %v6032_v41 }
 0x366   : > { %v3309_v1 = vadd.f32 %v3308_v21, %v3212_v34  ;;  %v3368_v31 = vmax.f32 %v3306_v36, 0.0 }
 0x368   : > { %v3369_v61 = vmax.f32 %v3309_v1, 0.0 }
 0x36a   : > { %v3384_v48 = vpack.c.bf16 %v3369_v61, %v3368_v31 }
 0x36c   : > { %4221 = vmatprep.mubr.msk.bf16.mxu0 %vm1516_vm13, %v3384_v48 }
 0x38a   : > { %v4063_v37 = vpop.f32.mrb[20].mxu1 }
 0x38b   : > { %v4064_v59 = vpop.f32.mrb[21].mxu1 }
 0x38c   : > { %v4065_v52 = vadd.f32 %v4064_v59, %v4063_v37  ;;  %v4066_v53 = vpop.f32.mrb[22].mxu1 }
 0x38d   : > { %v4067_v55 = vpop.f32.mrb[23].mxu1 }
 0x38e   : > { %v3217_v29 = vadd.f32 %v4065_v52, %v6032_v41  ;;  %v4068_v57 = vadd.f32 %v4067_v55, %v4066_v53 }
 0x390   : > { %v3314_v35 = vadd.f32 %v4203_v10, %v3217_v29  ;;  %v3220_v62 = vadd.f32 %v4068_v57, %v6032_v41 }
 0x392   : > { %v3317_v63 = vadd.f32 %v4204_v26, %v3220_v62  ;;  %v4069_v19 = vpop.f32.mrb[24].mxu1  ;;  %v3370_v28 = vmax.f32 %v3314_v35, 0.0 }
 0x393   : > { %v4070_v46 = vpop.f32.mrb[25].mxu1 }
 0x394   : > { %v3371_v18 = vmax.f32 %v3317_v63, 0.0  ;;  %v4071_v2 = vadd.f32 %v4070_v46, %v4069_v19  ;;  %v4072_v4 = vpop.f32.mrb[26].mxu1 }
 0x395   : > { %v4073_v44 = vpop.f32.mrb[27].mxu1 }
 0x396   : > { %v3385_v12 = vpack.c.bf16 %v3371_v18, %v3370_v28  ;;  %v3225_v33 = vadd.f32 %v4071_v2, %v6032_v41  ;;  %v4074_v7 = vadd.f32 %v4073_v44, %v4072_v4 }
 0x398   : > { %v3322_v43 = vadd.f32 %v3321_v47, %v3225_v33  ;;  %v3228_v51 = vadd.f32 %v4074_v7, %v6032_v41  ;;  %4222 = vmatmul.mubr.msk.bf16.vlgmr.msra.gmra.mrb[24].mxu0 %vm1516_vm13, %v3385_v12 }
 0x39a   : > { %v3325_v11 = vadd.f32 %v3324_v6, %v3228_v51  ;;  %v3372_v25 = vmax.f32 %v3322_v43, 0.0 }
 0x39c   : > { %v3373_v14 = vmax.f32 %v3325_v11, 0.0 }
 0x39d   : > { %v4075_v15 = vpop.f32.mrb[28].mxu1 }
 0x39e   : > { %v3386_v54 = vpack.c.bf16 %v3373_v14, %v3372_v25  ;;  %v4076_v58 = vpop.f32.mrb[29].mxu1 }
 0x39f   : > { %v4077_v50 = vadd.f32 %v4076_v58, %v4075_v15  ;;  %v4078_v0 = vpop.f32.mrb[30].mxu1 }
 0x3a0   : > { %v4079_v10 = vpop.f32.mrb[31].mxu1  ;;  %4225 = vmatprep.mubr.msk.bf16.mxu0 %vm1516_vm13, %v3386_v54 }
 0x3a1   : > { %v3233_v24 = vadd.f32 %v4077_v50, %v6032_v41  ;;  %v4080_v40 = vadd.f32 %v4079_v10, %v4078_v0  ;;  %v6071_v10 = vld [vmem:[%s6323_s29] ss:$0 sm:$0xff]  ;;  %s4544_s29 = sshll.u32 %s4706_s19, 4  ;;  %s4545_s29 = int_to_ptr.vmem [resolvable:$false] %s4544_s29 }
 0x3a2   : > { %s4546_s24 = scalar_lea.vmem %s4545_s29, 4096  ;;  %p4547_p4 = scmp.lt.s32.totalorder %s6125_s21, %s4545_s29 }
 0x3a3   : > { %v3330_v26 = vadd.f32 %v6003_v16, %v3233_v24  ;;  %v3236_v5 = vadd.f32 %v4080_v40, %v6032_v41  ;;  %v3538_v40 = vld [vmem:[%s5106_s25 + $0x10] sm:$0xff]  ;;  %p4548_p0 = scmp.lt.s32.totalorder %s4546_s24, %s4540_s5 }
 0x3a5   : > { %v3333_v21 = vadd.f32 %v6005_v22, %v3236_v5  ;;  %v4081_v47 = vpop.f32.mrb[32].mxu1  ;;  %v3374_v27 = vmax.f32 %v3330_v26, 0.0  ;;  %p4549_p12 = por %p4548_p0, %p4547_p4 }
 0x3a6   : > { %v4082_v6 = vpop.f32.mrb[33].mxu1 }
 0x3a7   : > { %v3375_v17 = vmax.f32 %v3333_v21, 0.0  ;;  %v4083_v23 = vadd.f32 %v4082_v6, %v4081_v47  ;;  %v4084_v49 = vpop.f32.mrb[34].mxu1  ;;  %v3539_v21 = vld [vmem:[%s5106_s25 + $0x18] sm:$0xff]  ;;  %p4550_p11 = pnand %p4549_p12, %p4543_p6 }
 0x3a8   : > { %v4085_v3 = vpop.f32.mrb[35].mxu1 }
 0x3a9   : > { %v3387_v32 = vpack.c.bf16 %v3375_v17, %v3374_v27  ;;  %v3241_v30 = vadd.f32 %v4083_v23, %v6032_v41  ;;  %v4086_v45 = vadd.f32 %v4085_v3, %v4084_v49  ;;  %v3537_v17 = vld [vmem:[%s5106_s25 + $0x8] sm:$0xff] }
 0x3ab   : > { %v3338_v38 = vadd.f32 %v6015_v42, %v3241_v30  ;;  %v3244_v36 = vadd.f32 %v4086_v45, %v6032_v41  ;;  %4226 = vmatmul.mubr.msk.bf16.gmra.mrb[28].mxu0 %vm1516_vm13, %v3387_v32 }
 0x3ad   : > { %v3341_v16 = vadd.f32 %v6019_v8, %v3244_v36  ;;  %v3376_v34 = vmax.f32 %v3338_v38, 0.0 }
 0x3af   : > { %v4087_v22 = vpop.f32.mrb[36].mxu1  ;;  %v3377_v1 = vmax.f32 %v3341_v16, 0.0 }
 0x3b0   : > { %v4088_v31 = vpop.f32.mrb[37].mxu1 }
 0x3b1   : > { %v4089_v61 = vadd.f32 %v4088_v31, %v4087_v22  ;;  %v4090_v48 = vpop.f32.mrb[38].mxu1  ;;  %v3388_v37 = vpack.c.bf16 %v3377_v1, %v3376_v34  ;;  %v3542_v22 = vld [vmem:[%s5106_s25 + $0x30] sm:$0xff]  ;;  %v3540_v31 = vld [vmem:[%s5106_s25 + $0x20] sm:$0xff] }
 0x3b2   : > { %v4091_v59 = vpop.f32.mrb[39].mxu1 }
 0x3b3   : > { %v3249_v52 = vadd.f32 %v4089_v61, %v6032_v41  ;;  %v4092_v53 = vadd.f32 %v4091_v59, %v4090_v48  ;;  %4229 = vmatprep.mubr.msk.bf16.mxu0 %vm1516_vm13, %v3388_v37  ;;  %v3543_v37 = vld [vmem:[%s5106_s25 + $0x38] sm:$0xff] }
 0x3b5   : > { %v3346_v42 = vadd.f32 %v6013_v9, %v3249_v52  ;;  %v3252_v55 = vadd.f32 %v4092_v53, %v6032_v41 }
 0x3b7   : > { %v3349_v29 = vadd.f32 %v6017_v39, %v3252_v55  ;;  %v4093_v8 = vpop.f32.mrb[40].mxu1  ;;  %v3378_v35 = vmax.f32 %v3346_v42, 0.0  ;;  %v3541_v42 = vld [vmem:[%s5106_s25 + $0x28] sm:$0xff] }
 0x3b8   : > { %v4094_v57 = vpop.f32.mrb[41].mxu1 }
 0x3b9   : > { %v3379_v62 = vmax.f32 %v3349_v29, 0.0  ;;  %v4095_v63 = vadd.f32 %v4094_v57, %v4093_v8  ;;  %v4096_v19 = vpop.f32.mrb[42].mxu1 }
 0x3ba   : > { %v4097_v46 = vpop.f32.mrb[43].mxu1 }
 0x3bb   : > { %v3389_v28 = vpack.c.bf16 %v3379_v62, %v3378_v35  ;;  %v3257_v18 = vadd.f32 %v4095_v63, %v6032_v41  ;;  %v4098_v2 = vadd.f32 %v4097_v46, %v4096_v19 }
 0x3bd   : > { %v3354_v4 = vadd.f32 %v6023_v56, %v3257_v18  ;;  %v3260_v44 = vadd.f32 %v4098_v2, %v6032_v41  ;;  %4230 = vmatmul.mubr.msk.bf16.gmra.mrb[32].mxu0 %vm1516_vm13, %v3389_v28  ;;  %v3546_v28 = vld [vmem:[%s5106_s25 + $0x50] sm:$0xff] }
 0x3bf   : > { %v3357_v9 = vadd.f32 %v6027_v13, %v3260_v44  ;;  %v3380_v39 = vmax.f32 %v3354_v4, 0.0  ;;  %v3544_v4 = vld [vmem:[%s5106_s25 + $0x40] sm:$0xff] }
 0x3c1   : > { %v3381_v12 = vmax.f32 %v3357_v9, 0.0 }
 0x3c2   : > { %v4099_v7 = vpop.f32.mrb[44].mxu1 }
 0x3c3   : > { %v3390_v33 = vpack.c.bf16 %v3381_v12, %v3380_v39  ;;  %v4100_v43 = vpop.f32.mrb[45].mxu1  ;;  %v3547_v39 = vld [vmem:[%s5106_s25 + $0x58] sm:$0xff] }
 0x3c4   : > { %v4101_v51 = vadd.f32 %v4100_v43, %v4099_v7  ;;  %v4102_v11 = vpop.f32.mrb[46].mxu1  ;;  %v3545_v43 = vld [vmem:[%s5106_s25 + $0x48] sm:$0xff] }
 0x3c5   : > { %4233 = vmatprep.mubr.msk.bf16.mxu0 %vm1516_vm13, %v3390_v33  ;;  %v4103_v25 = vpop.f32.mrb[47].mxu1 }
 0x3c6   : > { %v3265_v56 = vadd.f32 %v4101_v51, %v6032_v41  ;;  %v4104_v14 = vadd.f32 %v4103_v25, %v4102_v11 }
 0x3c8   : > { %v3362_v15 = vadd.f32 %v6021_v20, %v3265_v56  ;;  %v3268_v13 = vadd.f32 %v4104_v14, %v6032_v41  ;;  %v3536_v41 = vld [vmem:[%s5106_s25] sm:$0xff] }
 0x3ca   : > { %v3365_v54 = vadd.f32 %v6025_v60, %v3268_v13  ;;  %v3382_v58 = vmax.f32 %v3362_v15, 0.0 }
 0x3cc   : > { %v3383_v50 = vmax.f32 %v3365_v54, 0.0 }
 0x3ce   : > { %v3391_v0 = vpack.c.bf16 %v3383_v50, %v3382_v58  ;;  %v3550_v50 = vld [vmem:[%s5106_s25 + $0x70] sm:$0xff] }
 0x3d0   : > { %4234 = vmatmul.mubr.msk.bf16.gmra.mrb[36].mxu0 %vm1516_vm13, %v3391_v0 }
 0x46b   : > { %v4223_v24 = vpop.f32.mrb[24].mxu0 }
 0x46c   : > { %v3482_v26 = vadd.f32 %v4223_v24, %v6071_v10  ;;  %v3473_v20 = vpop.f32.mrb[25].mxu0 }
 0x46d   : > { %v3474_v60 = vadd.f32 %v6071_v10, %v3473_v20  ;;  %v4224_v5 = vpop.f32.mrb[26].mxu0 }
 0x46e   : > { %v3554_v47 = vadd.f32 %v3538_v40, %v3482_v26  ;;  %v3485_v6 = vadd.f32 %v4224_v5, %v6071_v10  ;;  %v3476_v27 = vpop.f32.mrb[27].mxu0  ;;  %v3548_v40 = vld [vmem:[%s5106_s25 + $0x60] sm:$0xff] }
 0x46f   : > { %v3552_v23 = vadd.f32 %v3536_v41, %v3474_v60  ;;  %v3477_v49 = vadd.f32 %v6071_v10, %v3476_v27  ;;  %v3551_v41 = vld [vmem:[%s5106_s25 + $0x78] sm:$0xff] }
 0x470   : > { %v3570_v3 = vmax.f32 %v3554_v47, 0.0  ;;  %v3555_v32 = vadd.f32 %v3539_v21, %v3485_v6  ;;  %v3549_v47 = vld [vmem:[%s5106_s25 + $0x68] sm:$0xff] }
 0x471   : > { %v3568_v30 = vmax.f32 %v3552_v23, 0.0  ;;  %v3553_v45 = vadd.f32 %v3537_v17, %v3477_v49 }
 0x472   : > { %3586 = vst [vmem:[%s6083_s3 + $0x10] sm:$0xff] %v3570_v3  ;;  %v3571_v38 = vmax.f32 %v3555_v32, 0.0 }
 0x473   : > { %3584 = vst [vmem:[%s6083_s3] sm:$0xff] %v3568_v30  ;;  %v3569_v36 = vmax.f32 %v3553_v45, 0.0 }
 0x474   : > { %3587 = vst [vmem:[%s6083_s3 + $0x18] sm:$0xff] %v3571_v38 }
 0x475   : > { %3585 = vst [vmem:[%s6083_s3 + $0x8] sm:$0xff] %v3569_v36 }
 0x47e   : > { %v4227_v16 = vpop.f32.mrb[28].mxu0 }
 0x47f   : > { %v3498_v34 = vadd.f32 %v4227_v16, %v6071_v10  ;;  %v3489_v1 = vpop.f32.mrb[29].mxu0 }
 0x480   : > { %v3490_v61 = vadd.f32 %v6071_v10, %v3489_v1  ;;  %v4228_v48 = vpop.f32.mrb[30].mxu0 }
 0x481   : > { %v3558_v59 = vadd.f32 %v3542_v22, %v3498_v34  ;;  %v3501_v52 = vadd.f32 %v4228_v48, %v6071_v10  ;;  %v3492_v53 = vpop.f32.mrb[31].mxu0 }
 0x482   : > { %v3556_v55 = vadd.f32 %v3540_v31, %v3490_v61  ;;  %v3493_v29 = vadd.f32 %v6071_v10, %v3492_v53 }
 0x483   : > { %v3574_v8 = vmax.f32 %v3558_v59, 0.0  ;;  %v3559_v57 = vadd.f32 %v3543_v37, %v3501_v52 }
 0x484   : > { %v3572_v35 = vmax.f32 %v3556_v55, 0.0  ;;  %v3557_v62 = vadd.f32 %v3541_v42, %v3493_v29 }
 0x485   : > { %3590 = vst [vmem:[%s6083_s3 + $0x30] sm:$0xff] %v3574_v8  ;;  %v3575_v63 = vmax.f32 %v3559_v57, 0.0 }
 0x486   : > { %3588 = vst [vmem:[%s6083_s3 + $0x20] sm:$0xff] %v3572_v35  ;;  %v3573_v19 = vmax.f32 %v3557_v62, 0.0 }
 0x487   : > { %3591 = vst [vmem:[%s6083_s3 + $0x38] sm:$0xff] %v3575_v63 }
 0x488   : > { %3589 = vst [vmem:[%s6083_s3 + $0x28] sm:$0xff] %v3573_v19 }
 0x490   : > { %v4231_v46 = vpop.f32.mrb[32].mxu0 }
 0x491   : > { %v3514_v18 = vadd.f32 %v4231_v46, %v6071_v10  ;;  %v3505_v2 = vpop.f32.mrb[33].mxu0 }
 0x492   : > { %v3506_v44 = vadd.f32 %v6071_v10, %v3505_v2  ;;  %v4232_v9 = vpop.f32.mrb[34].mxu0 }
 0x493   : > { %v3562_v12 = vadd.f32 %v3546_v28, %v3514_v18  ;;  %v3517_v33 = vadd.f32 %v4232_v9, %v6071_v10  ;;  %v3508_v7 = vpop.f32.mrb[35].mxu0 }
 0x494   : > { %v3560_v51 = vadd.f32 %v3544_v4, %v3506_v44  ;;  %v3509_v11 = vadd.f32 %v6071_v10, %v3508_v7 }
 0x495   : > { %v3578_v25 = vmax.f32 %v3562_v12, 0.0  ;;  %v3563_v56 = vadd.f32 %v3547_v39, %v3517_v33 }
 0x496   : > { %v3576_v14 = vmax.f32 %v3560_v51, 0.0  ;;  %v3561_v15 = vadd.f32 %v3545_v43, %v3509_v11 }
 0x497   : > { %3594 = vst [vmem:[%s6083_s3 + $0x50] sm:$0xff] %v3578_v25  ;;  %v3579_v13 = vmax.f32 %v3563_v56, 0.0 }
 0x498   : > { %3592 = vst [vmem:[%s6083_s3 + $0x40] sm:$0xff] %v3576_v14  ;;  %v3577_v54 = vmax.f32 %v3561_v15, 0.0 }
 0x499   : > { %3595 = vst [vmem:[%s6083_s3 + $0x58] sm:$0xff] %v3579_v13 }
 0x49a   : > { %3593 = vst [vmem:[%s6083_s3 + $0x48] sm:$0xff] %v3577_v54 }
 0x4a3   : > { %v4235_v58 = vpop.f32.mrb[36].mxu0 }
 0x4a4   : > { %v3530_v0 = vadd.f32 %v4235_v58, %v6071_v10  ;;  %v3521_v24 = vpop.f32.mrb[37].mxu0 }
 0x4a5   : > { %v3522_v26 = vadd.f32 %v6071_v10, %v3521_v24  ;;  %v4236_v20 = vpop.f32.mrb[38].mxu0 }
 0x4a6   : > { %v3566_v60 = vadd.f32 %v3550_v50, %v3530_v0  ;;  %v3533_v5 = vadd.f32 %v4236_v20, %v6071_v10  ;;  %v3524_v21 = vpop.f32.mrb[39].mxu0 }
 0x4a7   : > { %v3564_v6 = vadd.f32 %v3548_v40, %v3522_v26  ;;  %v3525_v27 = vadd.f32 %v6071_v10, %v3524_v21 }
 0x4a8   : > { %v3582_v17 = vmax.f32 %v3566_v60, 0.0  ;;  %v3567_v23 = vadd.f32 %v3551_v41, %v3533_v5 }
 0x4a9   : > { %v3580_v49 = vmax.f32 %v3564_v6, 0.0  ;;  %v3565_v3 = vadd.f32 %v3549_v47, %v3525_v27 }
 0x4aa   : > { %3598 = vst [vmem:[%s6083_s3 + $0x70] sm:$0xff] %v3582_v17  ;;  %v3583_v32 = vmax.f32 %v3567_v23, 0.0 }
 0x4ab   : > { %3596 = vst [vmem:[%s6083_s3 + $0x60] sm:$0xff] %v3580_v49  ;;  %v3581_v30 = vmax.f32 %v3565_v3, 0.0 }
 0x4ac   : > { %3599 = vst [vmem:[%s6083_s3 + $0x78] sm:$0xff] %v3583_v32 }
 0x4ad   : > { %3597 = vst [vmem:[%s6083_s3 + $0x68] sm:$0xff] %v3581_v30 }
 0x4ae   : > { %4553 = shalt.err (!%p4550_p11)
}
 0x4af   : > { %s4554_s3 = scalar_lea.hbm %s6131_s20, 2048  ;;  %s4558_s23 = scalar_lea.hbm %s6326_s9, 8192 }
 0x4b0   : > { %p4555_p2 = scmp.ne.s32.totalorder %s6131_s20, %s4554_s3  ;;  %p4559_p8 = scmp.lt.u32.totalorder %s6131_s20, %s6326_s9 }
 0x4b1   : > { %p4560_p13 = scmp.lt.u32.totalorder %s4558_s23, %s4554_s3  ;;  %p4562_p3 = scmp.lt.u32.totalorder %s4554_s3, %s6131_s20 }
 0x4b2   : > { %p4556_p1 = pnand %p4555_p2, %p6327_p9 }
 0x4b3   : > { %p4561_p10 = por %p4560_p13, %p4559_p8 }
 0x4b4   : > { %p4557_p5 = pneg %p4556_p1 }
 0x4b5   : > { %p4563_p7 = por %p4562_p3, %p4561_p10 }
 0x4b7   : > { %p4564_p6 = pnand %p4563_p7, %p4557_p5 }
 0x4b9   : > { %4567 = shalt.err (!%p4564_p6)
}
 0x4ba   : > { %s4707_s25 = smov 128   ;;  %s4708_s30 = smov 8  }
 0x4bb   : > { %4243 = dma.vmem_to_hbm [thread:$0]  (%p6327_p9), %s6125_s21, 2048, %s6131_s20, %s3601_s17, %s4707_s25, %s4707_s25, %s4708_s30  }
 0x4bc PF: > { %p4260_p4 = scmp.ge.s32.totalorder %s4694_s22, 2  ;;  %s3632_s5 = sand.u32 1, %s4666_s15  }
 0x4bd   : > { %p6328_p0 = scmp.ne.s32.totalorder %s6282_s27, 0  ;;  %s3633_s19 = scalar_lea.sflag [#allocation6], %s3632_s5 }
 0x4bf   : > { %p4256_p12 = pnand %p4260_p4, %p6328_p0 }
 0x4c1   : > { %4637 = dma.done.wait (!%p4256_p12), %s3633_s19, 2048  }
 0x4c2   : > { %4639 = vsyncadd (!%p4256_p12), %s3633_s19, 4294965248  ;;  %s28_s22 = sadd.s32 1, %s4694_s22   ;;  %s6330_s12 = sld [smem:[#allocation15_spill]] }
 0x4c3   : > { %p6164_p11 = scmp.ge.s32.totalorder %s28_s22, 6   ;;  %s6331_s18 = sld [smem:[#allocation25_spill]] }
 0x4c4   : > { %s6332_s6 = sld [smem:[#allocation16_spill]]  ;;  %s6333_s17 = sld [smem:[#allocation26_spill]] }
 0x4c5   : > { %s6334_s27 = sld [smem:[#allocation19_spill]]  ;;  %s6335_s19 = sld [smem:[#allocation20_spill]] }
 0x4c6   : > { %s6336_s20 = sld [smem:[#allocation21_spill]]  ;;  %s6337_s21 = sld [smem:[#allocation22_spill]] }
 0x4c7   : > { %s6338_s30 = smov %s4646_s10  ;;  %s6339_s10 = smov %s4650_s11 }
 0x4c8   : > { %s6340_s11 = smov %s5050_s1  ;;  %s6341_s13 = smov %s4662_s14 }
 0x4c9   : > { %s6342_s14 = smov %s6331_s18  ;;  %s6343_s15 = smov %s4670_s16 }
 0x4ca   : > { %s6344_s16 = smov %s6332_s6  ;;  %27 = sbr.rel (!%p6164_p11) target bundleno = 23 (0x17), region = 128 }
 0x4cb   : > { %s6345_s18 = smov %s6334_s27 }
 0x4d1   :  { %3638 = vsyncpa [#allocation5], 1 }
 0x4d2   :  { %3640 = vsyncpa [#allocation5 + $0x1], 1 }
 0x4d3   :  { %3641 = vsyncpa [#allocation8], 1 }
 0x4d4   :  { %3643 = vsyncpa [#allocation8 + $0x1], 1 }
 0x4d5   :  { %3644 = vsyncpa [#allocation6], 1 }
 0x4d6   :  { %3646 = vsyncpa [#allocation6 + $0x1], 1 }

</bundles_post_ra>
